<compile_context>
chip_gen: v6e
topology: v6e:2x2x1
jax: 0.10.0
libtpu: 0.0.40
codegen_flags: <defaults>
</compile_context>

<pallas_src>
import jax
import jax.numpy as jnp
from jax.experimental import pallas as pl
from jax.experimental.pallas import tpu as pltpu

IN_FEATURES = 12288   # 3 * 64 * 64
HIDDEN = 256
OUT_FEATURES = 96
OUT_PADDED = 128      # lane-dense output width (zero-padded columns)
TK = 6144             # K tile for the fc_1 reduction; 12288 / 6144 = 2 grid steps


def _mlp_kernel(x_ref, w1_ref, b1_ref, w2_ref, b2_ref, o_ref, h_acc):
    k = pl.program_id(0)

    @pl.when(k == 0)
    def _():
        # Fold the fc_1 bias into the accumulator init.
        h_acc[...] = jnp.broadcast_to(b1_ref[...], h_acc.shape)

    # Partial fc_1: (B, TK) @ (TK, 256). x tile is f32 in VMEM; cast to bf16
    # in-register (free VPU slot), bf16 x bf16 on the MXU with f32 accumulation.
    h_acc[...] += jnp.dot(x_ref[...].astype(jnp.bfloat16), w1_ref[...],
                          preferred_element_type=jnp.float32)

    @pl.when(k == pl.num_programs(0) - 1)
    def _():
        # ReLU in f32, then classifier matmul (bf16 operands, f32 acc) + bias.
        h = jnp.maximum(h_acc[...], 0.0)
        out = jnp.dot(h.astype(jnp.bfloat16), w2_ref[...],
                      preferred_element_type=jnp.float32) + b2_ref[...]
        o_ref[...] = out.astype(o_ref.dtype)


def prepare_params(w1, b1, w2, b2):
    """One-time conversion of f32 Linear params into kernel-ready buffers.

    Returns (w1_bf16 (12288,256), b1 (1,256) f32, w2_pad (256,128) bf16,
    b2_pad (1,128) f32). Call once and reuse; do NOT call per forward.
    """
    w1_bf16 = w1.astype(jnp.bfloat16)
    w2_pad = jnp.zeros((HIDDEN, OUT_PADDED), jnp.bfloat16).at[:, :OUT_FEATURES].set(
        w2.astype(jnp.bfloat16))
    b2_pad = jnp.zeros((1, OUT_PADDED), jnp.float32).at[:, :OUT_FEATURES].set(
        b2.reshape(1, OUT_FEATURES))
    return w1_bf16, b1.reshape(1, HIDDEN).astype(jnp.float32), w2_pad, b2_pad


def nn3_forward(x, w1_bf16, b1, w2_pad, b2_pad):
    """x: (B, C, H, W) float32 with C*H*W == 12288. Params from prepare_params.

    Returns (B, 96) float32.
    """
    B = x.shape[0]
    x_flat = x.reshape(B, -1)                      # matches nn.Flatten on NCHW
    assert x_flat.shape[1] == IN_FEATURES

    num_k = IN_FEATURES // TK

    grid_spec = pltpu.PrefetchScalarGridSpec(
        num_scalar_prefetch=0,
        grid=(num_k,),
        in_specs=[
            pl.BlockSpec((B, TK), lambda k: (0, k)),               # x K-tile (f32)
            pl.BlockSpec((TK, HIDDEN), lambda k: (k, 0)),          # w1 K-tile (bf16, pipelined)
            pl.BlockSpec((1, HIDDEN), lambda k: (0, 0)),           # b1 (resident)
            pl.BlockSpec((HIDDEN, OUT_PADDED), lambda k: (0, 0)),  # w2 (resident)
            pl.BlockSpec((1, OUT_PADDED), lambda k: (0, 0)),       # b2 (resident)
        ],
        out_specs=pl.BlockSpec((B, OUT_PADDED), lambda k: (0, 0)),
        scratch_shapes=[pltpu.VMEM((B, HIDDEN), jnp.float32)],     # fc_1 accumulator
    )

    cost = pl.CostEstimate(
        flops=2 * B * IN_FEATURES * HIDDEN + 2 * B * HIDDEN * OUT_PADDED,
        transcendentals=0,
        bytes_accessed=(IN_FEATURES * HIDDEN * 2       # w1 bf16 (dominant)
                        + B * IN_FEATURES * 4          # x f32
                        + HIDDEN * OUT_PADDED * 2      # w2 bf16
                        + HIDDEN * 4 + OUT_PADDED * 4  # biases
                        + B * OUT_PADDED * 4),         # output
    )

    out_pad = pl.pallas_call(
        _mlp_kernel,
        out_shape=jax.ShapeDtypeStruct((B, OUT_PADDED), jnp.float32),
        grid_spec=grid_spec,
        compiler_params=pltpu.CompilerParams(
            dimension_semantics=("arbitrary",),        # K is a reduction axis
            vmem_limit_bytes=32 << 20,                 # 2x3.1 MB w1 bufs + headroom; < v7x 64 MiB
        ),
        cost_estimate=cost,
    )(x_flat, w1_bf16, b1, w2_pad, b2_pad)

    # TODO(synk): if batch grows, add a leading "parallel" M grid axis (M tile 128/256)
    # with constant weight index_maps so w1/w2 stay VMEM-resident and v7x's second
    # TensorCore is used.
    return out_pad[:, :OUT_FEATURES]


def init_params(key):
    """Deterministic init mirroring nn.Linear's uniform(-1/sqrt(fan_in), +1/sqrt(fan_in))."""
    k1, k2, k3, k4 = jax.random.split(key, 4)
    bound1 = 1.0 / jnp.sqrt(jnp.float32(IN_FEATURES))
    bound2 = 1.0 / jnp.sqrt(jnp.float32(HIDDEN))
    w1 = jax.random.uniform(k1, (IN_FEATURES, HIDDEN), jnp.float32, -bound1, bound1)
    b1 = jax.random.uniform(k2, (1, HIDDEN), jnp.float32, -bound1, bound1)
    w2 = jax.random.uniform(k3, (HIDDEN, OUT_FEATURES), jnp.float32, -bound2, bound2)
    b2 = jax.random.uniform(k4, (1, OUT_FEATURES), jnp.float32, -bound2, bound2)
    return w1, b1, w2, b2


if __name__ == "__main__":
    key = jax.random.PRNGKey(0)
    k_x, k_p = jax.random.split(key)

    B = 2
    x = jax.random.normal(k_x, (B, 3, 64, 64), jnp.float32)   # NCHW, flattens to 12288
    w1, b1, w2, b2 = init_params(k_p)

    # One-time param prep (hoisted out of the forward path).
    w1_bf16, b1_k, w2_pad, b2_pad = prepare_params(w1, b1, w2, b2)
    w1_bf16, b1_k, w2_pad, b2_pad = jax.block_until_ready(
        (w1_bf16, b1_k, w2_pad, b2_pad))

    out = nn3_forward(x, w1_bf16, b1_k, w2_pad, b2_pad)
    out = jax.block_until_ready(out)
    assert out.shape == (B, OUT_FEATURES)

    # Reference with the SAME bf16 operands / f32 accumulation as the kernel.
    xf = x.reshape(B, -1).astype(jnp.bfloat16)
    w1b = w1.astype(jnp.bfloat16)
    w2b = w2.astype(jnp.bfloat16)
    h_ref = jnp.maximum(
        jnp.dot(xf, w1b, preferred_element_type=jnp.float32) + b1, 0.0)
    ref = jnp.dot(h_ref.astype(jnp.bfloat16), w2b,
                  preferred_element_type=jnp.float32) + b2
    assert jnp.allclose(out, ref, atol=5e-3, rtol=5e-3), (
        float(jnp.max(jnp.abs(out - ref))))

    # Sanity vs. full-f32 math (looser tolerance for the bf16 weight cast; this is
    # an explicit accuracy decision: bf16 weights/activations, f32 accumulation).
    ref_f32 = jnp.maximum(x.reshape(B, -1) @ w1 + b1, 0.0) @ w2 + b2
    assert jnp.allclose(out, ref_f32, atol=5e-2, rtol=5e-2)

    print("KERNEL_OK")
</pallas_src>

<mosaic_0001>
module attributes {stable_mosaic.version = 11 : i64} {
  func.func @_mlp_kernel(%arg0: i32, %arg1: memref<2x6144xf32, #tpu.memory_space<vmem>>, %arg2: memref<6144x256xbf16, #tpu.memory_space<vmem>>, %arg3: memref<1x256xf32, #tpu.memory_space<vmem>>, %arg4: memref<256x128xbf16, #tpu.memory_space<vmem>>, %arg5: memref<1x128xf32, #tpu.memory_space<vmem>>, %arg6: memref<2x128xf32, #tpu.memory_space<vmem>>, %arg7: memref<2x256xf32, #tpu.memory_space<vmem>>) attributes {dimension_semantics = [#tpu.dimension_semantics<arbitrary>], iteration_bounds = array<i64: 2>, scalar_prefetch = 0 : i64, scratch_operands = 1 : i64, tpu.core_type = #tpu.core_type<tc>, window_params = [{transform_indices = @transform_0, window_bounds = array<i64: 2, 6144>}, {transform_indices = @transform_1, window_bounds = array<i64: 6144, 256>}, {pipeline_mode = #tpu.pipeline_mode<synchronous>, transform_indices = @transform_2, window_bounds = array<i64: 1, 256>}, {pipeline_mode = #tpu.pipeline_mode<synchronous>, transform_indices = @transform_3, window_bounds = array<i64: 256, 128>}, {pipeline_mode = #tpu.pipeline_mode<synchronous>, transform_indices = @transform_4, window_bounds = array<i64: 1, 128>}, {pipeline_mode = #tpu.pipeline_mode<synchronous>, transform_indices = @transform_5, window_bounds = array<i64: 2, 128>}]} {
    %c0_i32 = arith.constant 0 : i32
    %0 = arith.cmpi eq, %arg0, %c0_i32 : i32
    %1 = arith.extui %0 : i1 to i32
    %c0_i32_0 = arith.constant 0 : i32
    %2 = arith.cmpi ne, %1, %c0_i32_0 : i32
    scf.if %2 {
      %c0_9 = arith.constant 0 : index
      %c0_10 = arith.constant 0 : index
      %13 = vector.load %arg3[%c0_9, %c0_10] : memref<1x256xf32, #tpu.memory_space<vmem>>, vector<1x256xf32>
      %14 = vector.shape_cast %13 : vector<1x256xf32> to vector<1x256xf32>
      %15 = vector.broadcast %14 : vector<1x256xf32> to vector<2x256xf32>
      %c0_11 = arith.constant 0 : index
      %c0_12 = arith.constant 0 : index
      %16 = vector.load %arg7[%c0_11, %c0_12] : memref<2x256xf32, #tpu.memory_space<vmem>>, vector<2x256xf32>
      tpu.vector_store %arg7[%c0_11, %c0_12], %15 {strides = array<i32>} : memref<2x256xf32, #tpu.memory_space<vmem>>, vector<2x256xf32>,
    } else {
    }
    %c0 = arith.constant 0 : index
    %c0_1 = arith.constant 0 : index
    %3 = vector.load %arg7[%c0, %c0_1] : memref<2x256xf32, #tpu.memory_space<vmem>>, vector<2x256xf32>
    %c0_2 = arith.constant 0 : index
    %c0_3 = arith.constant 0 : index
    %4 = vector.load %arg1[%c0_2, %c0_3] : memref<2x6144xf32, #tpu.memory_space<vmem>>, vector<2x6144xf32>
    %5 = arith.truncf %4 : vector<2x6144xf32> to vector<2x6144xbf16>
    %c0_4 = arith.constant 0 : index
    %c0_5 = arith.constant 0 : index
    %6 = vector.load %arg2[%c0_4, %c0_5] : memref<6144x256xbf16, #tpu.memory_space<vmem>>, vector<6144x256xbf16>
    %cst = arith.constant dense<0.000000e+00> : vector<2x256xf32>
    %7 = tpu.matmul %5, %6, %cst {dimension_numbers = #tpu.dot_dimension_numbers<[1], [0], [0], [1], [0, 0, 1, 1], [], []>} : vector<2x6144xbf16>, vector<6144x256xbf16>, vector<2x256xf32> -> vector<2x256xf32>
    %8 = arith.addf %3, %7 : vector<2x256xf32>
    %c0_6 = arith.constant 0 : index
    %c0_7 = arith.constant 0 : index
    %9 = vector.load %arg7[%c0_6, %c0_7] : memref<2x256xf32, #tpu.memory_space<vmem>>, vector<2x256xf32>
    tpu.vector_store %arg7[%c0_6, %c0_7], %8 {strides = array<i32>} : memref<2x256xf32, #tpu.memory_space<vmem>>, vector<2x256xf32>,
    %c1_i32 = arith.constant 1 : i32
    %10 = arith.cmpi eq, %arg0, %c1_i32 : i32
    %11 = arith.extui %10 : i1 to i32
    %c0_i32_8 = arith.constant 0 : i32
    %12 = arith.cmpi ne, %11, %c0_i32_8 : i32
    scf.if %12 {
      %c0_9 = arith.constant 0 : index
      %c0_10 = arith.constant 0 : index
      %13 = vector.load %arg7[%c0_9, %c0_10] : memref<2x256xf32, #tpu.memory_space<vmem>>, vector<2x256xf32>
      %cst_11 = arith.constant 0.000000e+00 : f32
      %14 = vector.broadcast %cst_11 : f32 to vector<2x256xf32>
      %15 = arith.maximumf %13, %14 : vector<2x256xf32>
      %16 = arith.truncf %15 : vector<2x256xf32> to vector<2x256xbf16>
      %c0_12 = arith.constant 0 : index
      %c0_13 = arith.constant 0 : index
      %17 = vector.load %arg4[%c0_12, %c0_13] : memref<256x128xbf16, #tpu.memory_space<vmem>>, vector<256x128xbf16>
      %cst_14 = arith.constant dense<0.000000e+00> : vector<2x128xf32>
      %18 = tpu.matmul %16, %17, %cst_14 {dimension_numbers = #tpu.dot_dimension_numbers<[1], [0], [0], [1], [0, 0, 1, 1], [], []>} : vector<2x256xbf16>, vector<256x128xbf16>, vector<2x128xf32> -> vector<2x128xf32>
      %c0_15 = arith.constant 0 : index
      %c0_16 = arith.constant 0 : index
      %19 = vector.load %arg5[%c0_15, %c0_16] : memref<1x128xf32, #tpu.memory_space<vmem>>, vector<1x128xf32>
      %20 = vector.broadcast %19 : vector<1x128xf32> to vector<2x128xf32>
      %21 = arith.addf %18, %20 : vector<2x128xf32>
      %c0_17 = arith.constant 0 : index
      %c0_18 = arith.constant 0 : index
      %22 = vector.load %arg6[%c0_17, %c0_18] : memref<2x128xf32, #tpu.memory_space<vmem>>, vector<2x128xf32>
      tpu.vector_store %arg6[%c0_17, %c0_18], %21 {strides = array<i32>} : memref<2x128xf32, #tpu.memory_space<vmem>>, vector<2x128xf32>,
    } else {
    }
    return
  }
  func.func @transform_0(%arg0: i32) -> (i32, i32) {
    %c0_i32 = arith.constant 0 : i32
    %c0_i32_0 = arith.constant 0 : i32
    return %c0_i32, %arg0 : i32, i32
  }
  func.func @transform_1(%arg0: i32) -> (i32, i32) {
    %c0_i32 = arith.constant 0 : i32
    %c0_i32_0 = arith.constant 0 : i32
    return %arg0, %c0_i32 : i32, i32
  }
  func.func @transform_2(%arg0: i32) -> (i32, i32) {
    %c0_i32 = arith.constant 0 : i32
    %c0_i32_0 = arith.constant 0 : i32
    %c0_i32_1 = arith.constant 0 : i32
    return %c0_i32, %c0_i32_0 : i32, i32
  }
  func.func @transform_3(%arg0: i32) -> (i32, i32) {
    %c0_i32 = arith.constant 0 : i32
    %c0_i32_0 = arith.constant 0 : i32
    %c0_i32_1 = arith.constant 0 : i32
    return %c0_i32, %c0_i32_0 : i32, i32
  }
  func.func @transform_4(%arg0: i32) -> (i32, i32) {
    %c0_i32 = arith.constant 0 : i32
    %c0_i32_0 = arith.constant 0 : i32
    %c0_i32_1 = arith.constant 0 : i32
    return %c0_i32, %c0_i32_0 : i32, i32
  }
  func.func @transform_5(%arg0: i32) -> (i32, i32) {
    %c0_i32 = arith.constant 0 : i32
    %c0_i32_0 = arith.constant 0 : i32
    %c0_i32_1 = arith.constant 0 : i32
    return %c0_i32, %c0_i32_0 : i32, i32
  }
}

</mosaic_0001>

<bundles_post_ra>
// kernel: tpu_custom_call.1
= control target key start
LH: loop header
LB: loop body
LE: loop exit
PB: predicated region body
PF: predicated region fallthrough
CT: control target
= control target key end

     0   :  { %10 = vsyncpa [#allocation4], 0  ;;  %s10117_s0 = inlined_call_operand.hbm [shape: f32[2,12288], index: 0, kind: input, shape index: {}]   ;;  %s10118_s1 = inlined_call_operand.hbm [shape: bf16[12288,256], index: 1, kind: input, shape index: {}]   ;;  %s10119_s2 = inlined_call_operand.hbm [shape: f32[1,256], index: 2, kind: input, shape index: {}]   ;;  %s10120_s3 = inlined_call_operand.hbm [shape: bf16[256,128], index: 3, kind: input, shape index: {}]   ;;  %s10121_s4 = inlined_call_operand.hbm [shape: f32[1,128], index: 4, kind: input, shape index: {}]   ;;  %s10122_s5 = inlined_call_operand.hbm [shape: f32[2,128], index: 5, kind: output, shape index: {}]  }
   0x1   :  { %12 = vsyncpa [#allocation4 + $0x1], 0 }
   0x2   :  { %13 = vsyncpa [#allocation7], 0 }
   0x3   :  { %15 = vsyncpa [#allocation7 + $0x1], 0 }
   0x4   :  { %16 = vsyncpa [#allocation10], 0 }
   0x5   :  { %17 = vsyncpa [#allocation5], 0  ;;  %s8922_s18 = smov 0   ;;  %s8924_s19 = smov 0  }
   0x6   :  { %s8926_s20 = smov 0   ;;  %s8928_s21 = smov 0  }
   0x7 LB: > { %s8941_s22 = sadd.s32 4294967295, %s8879_s21   ;;  %p43_p0 = scmp.ne.s32.totalorder %s8871_s19, %s8867_s18  ;;  %s8879_s21 = sphi %s8928_s21, %s10140_s21   ;;  %s8875_s20 = sphi %s8926_s20, %s10139_s20   ;;  %s8871_s19 = sphi %s8924_s19, %s10138_s19   ;;  %s8867_s18 = sphi %s8922_s18, %s10137_s18  }
   0x8   : > { %p10123_p1 = scmp.eq.s32.totalorder %s8941_s22, 0  ;;  %p6570_p2 = scmp.ge.s32.totalorder %s8879_s21, 1 }
   0x9   : > { %p164_p3 = scmp.lt.s32.totalorder %s8879_s21, 3  ;;  %s8881_s25 = smov [#allocation8]  }
   0xa   : > { %p8950_p5 = por %p10123_p1, %p43_p0  ;;  %s177_s26 = sshll.u32 %s8881_s25, 4  ;;  %s178_s26 = int_to_ptr.vmem [resolvable:$true] %s177_s26 }
   0xb   : > { %p8954_p6 = pnand %p6570_p2, %p164_p3  ;;  %s8882_s27 = smov [#allocation9]  }
   0xc   : > { %s10126_s23 = scalar_select %p8950_p5, 1, 0 }
   0xd   : > { %s10127_s24 = scalar_select %p8954_p6, 1, 0 }
   0xe   : > { %p7424_p7 = pneg %p8954_p6  ;;  %s187_s28 = sshll.u32 %s8882_s27, 4  ;;  %s188_s28 = int_to_ptr.vmem [resolvable:$true] %s187_s28 }
   0xf   : > { %s8883_s30 = smov [#allocation11]   ;;  %s8682_s7 = scalar_lea.vmem %s178_s26, 32 }
  0x10   : > { %p8962_p8 = pnand %p7424_p7, %p10123_p1  ;;  %s201_s6 = sshll.u32 %s8883_s30, 4  ;;  %s202_s6 = int_to_ptr.vmem [resolvable:$true] %s201_s6 }
  0x11   : > { %p8683_p10 = scmp.ne.s32.totalorder %s178_s26, %s8682_s7  ;;  %p8690_p13 = scmp.lt.s32.totalorder %s178_s26, %s178_s26 }
  0x12   : > { %p8673_p9 = pneg %p8962_p8  ;;  %p8691_p0 = scmp.lt.s32.totalorder %s8682_s7, %s8682_s7 }
  0x14   : > { %p8685_p11 = pnand %p8683_p10, %p8673_p9  ;;  %p8692_p2 = por %p8691_p0, %p8690_p13 }
  0x16   : > { %p8686_p12 = pneg %p8685_p11 }
  0x18   : > { %p8693_p3 = pnand %p8692_p2, %p8686_p12 }
  0x1a   : > { %8696 = shalt.err (!%p8693_p3)
}
  0x1b   : > { %7427 = dma.hbm_to_vmem [thread:$0]  (!%p8962_p8), %s10119_s2, 32, %s178_s26, [#allocation7]  }
  0x1c   : > { %s8708_s10 = scalar_lea.vmem %s188_s28, 2048  ;;  %p8716_p10 = scmp.lt.s32.totalorder %s188_s28, %s188_s28 }
  0x1d   : > { %p8709_p7 = scmp.ne.s32.totalorder %s188_s28, %s8708_s10  ;;  %p8717_p11 = scmp.lt.s32.totalorder %s8708_s10, %s8708_s10 }
  0x1f   : > { %p8711_p4 = pnand %p8709_p7, %p8673_p9  ;;  %p8718_p5 = por %p8717_p11, %p8716_p10 }
  0x21   : > { %p8712_p1 = pneg %p8711_p4 }
  0x23   : > { %p8719_p6 = pnand %p8718_p5, %p8712_p1 }
  0x25   : > { %8722 = shalt.err (!%p8719_p6)
}
  0x26   : > { %s8884_s11 = smov 64   ;;  %s8885_s12 = smov 4  }
  0x27   : > { %7430 = dma.hbm_to_vmem [thread:$0]  (!%p8962_p8), %s10120_s3, 2048, %s188_s28, [#allocation10], %s8884_s11, %s8884_s11, %s8885_s12  }
  0x28   : > { %s8734_s15 = scalar_lea.vmem %s202_s6, 16  ;;  %s8741_s16 = scalar_lea.vmem %s202_s6, 32 }
  0x29   : > { %p8735_p12 = scmp.ne.s32.totalorder %s202_s6, %s8734_s15  ;;  %p8742_p0 = scmp.lt.s32.totalorder %s202_s6, %s202_s6 }
  0x2a   : > { %p8743_p1 = scmp.lt.s32.totalorder %s8741_s16, %s8734_s15 }
  0x2b   : > { %p8737_p4 = pnand %p8735_p12, %p8673_p9 }
  0x2c   : > { %p8744_p5 = por %p8743_p1, %p8742_p0 }
  0x2d   : > { %p8738_p13 = pneg %p8737_p4 }
  0x2f   : > { %p8745_p6 = pnand %p8744_p5, %p8738_p13 }
  0x31   : > { %8748 = shalt.err (!%p8745_p6)
}
  0x32   : > { %7433 = dma.hbm_to_vmem [thread:$0]  (!%p8962_p8), %s10121_s4, 16, %s202_s6, [#allocation10]  }
  0x33   : > { %s8993_s25 = sadd.s32 1, %s8879_s21   ;;  %s30_s27 = sadd.s32 1, %s8875_s20 }
  0x34   : > { %s27_s26 = ssub.s32 %s8879_s21, %s8993_s25  ;;  %p37_p2 = scmp.ne.s32.totalorder %s8875_s20, %s8871_s19 }
  0x35   : > { %p28_p9 = scmp.eq.s32.totalorder %s27_s26, 0  ;;  %p38_p3 = scmp.eq.s32.totalorder %s8879_s21, 0 }
  0x36   : > { %p7444_p7 = scmp.lt.s32.totalorder %s8879_s21, 2  ;;  %s9006_s29 = sand.u32 1, %s8875_s20  }
  0x37   : > { %s9003_s28 = scalar_select %p28_p9, %s8875_s20, %s30_s27  }
  0x38   : > { %p39_p10 = por %p38_p3, %p37_p2  ;;  %s7400_s30 = smul.u32 96, %s9006_s29 }
  0x39   : > { %s7374_s7 = smul.u32 1536, %s8879_s21  ;;  %s213_s14 = scalar_lea.sflag [#allocation4], %s9006_s29 }
  0x3a   : > { %p9010_p8 = pnand %p7444_p7, %p39_p10  ;;  %s7401_s8 = smul.u32 6144, %s9006_s29 }
  0x3b   : > { %s9018_s11 = scalar_lea.hbm %s10117_s0, %s7374_s7  ;;  %s216_s12 = scalar_lea.vmem [#allocation3], %s7400_s30 }
  0x3c   : > { %s224_s13 = sshll.u32 %s216_s12, 4  ;;  %s8749_s15 = scalar_lea.hbm %s9018_s11, 1536  ;;  %s225_s13 = int_to_ptr.vmem [resolvable:$true] %s224_s13 }
  0x3d   : > { %p8750_p11 = scmp.ne.s32.totalorder %s9018_s11, %s8749_s15  ;;  %p8751_p12 = pneg %p9010_p8 }
  0x3e   : > { %s8754_s18 = scalar_lea.hbm %s10117_s0, 3072  ;;  %p8755_p0 = scmp.lt.s32.totalorder %s9018_s11, %s10117_s0 }
  0x3f   : > { %p8752_p4 = pnand %p8751_p12, %p8750_p11  ;;  %p8756_p1 = scmp.lt.s32.totalorder %s8754_s18, %s8749_s15 }
  0x41   : > { %p8753_p13 = pneg %p8752_p4  ;;  %p8757_p5 = por %p8756_p1, %p8755_p0 }
  0x43   : > { %p8758_p6 = pnand %p8757_p5, %p8753_p13 }
  0x45   : > { %8761 = shalt.err (!%p8758_p6)
}
  0x46   : > { %s8762_s30 = scalar_lea.vmem %s225_s13, 1536  ;;  %s8886_s7 = smov [#allocation3]  }
  0x47   : > { %p8763_p9 = scmp.ne.s32.totalorder %s225_s13, %s8762_s30  ;;  %s8767_s9 = sshll.u32 %s8886_s7, 4  ;;  %s8768_s9 = int_to_ptr.vmem [resolvable:$false] %s8767_s9 }
  0x48   : > { %s8769_s10 = scalar_lea.vmem %s8768_s9, 3072  ;;  %p8770_p7 = scmp.lt.s32.totalorder %s225_s13, %s8768_s9 }
  0x49   : > { %p8765_p2 = pnand %p8763_p9, %p8751_p12  ;;  %p8771_p10 = scmp.lt.s32.totalorder %s8769_s10, %s8762_s30 }
  0x4b   : > { %p8766_p3 = pneg %p8765_p2  ;;  %p8772_p11 = por %p8771_p10, %p8770_p7 }
  0x4d   : > { %p8773_p4 = pnand %p8772_p11, %p8766_p3 }
  0x4f   : > { %8776 = shalt.err (!%p8773_p4)
}
  0x50   : > { %7437 = dma.hbm_to_vmem [thread:$0]  (!%p9010_p8), %s9018_s11, 1536, %s225_s13, %s213_s14  }
  0x51   : > { %s231_s12 = sand.u32 1, %s8879_s21   ;;  %s235_s15 = scalar_lea.vmem [#allocation6], %s7401_s8 }
  0x52   : > { %s243_s16 = sshll.u32 %s235_s15, 4  ;;  %s7377_s17 = smul.u32 98304, %s8879_s21  ;;  %s9044_s16 = int_to_ptr.vmem [resolvable:$true] %s243_s16 }
  0x53   : > { %s9052_s30 = scalar_lea.sflag [#allocation7], %s231_s12  ;;  %s8782_s21 = scalar_lea.hbm %s10118_s1, 196608 }
  0x54   : > { %s9050_s27 = scalar_lea.hbm %s10118_s1, %s7377_s17 }
  0x55   : > { %s8777_s7 = scalar_lea.hbm %s9050_s27, 98304  ;;  %p8783_p5 = scmp.lt.s32.totalorder %s9050_s27, %s10118_s1 }
  0x56   : > { %p8778_p13 = scmp.ne.s32.totalorder %s9050_s27, %s8777_s7  ;;  %p8784_p6 = scmp.lt.s32.totalorder %s8782_s21, %s8777_s7 }
  0x58   : > { %p8780_p0 = pnand %p8778_p13, %p8751_p12  ;;  %p8785_p9 = por %p8784_p6, %p8783_p5 }
  0x5a   : > { %p8781_p1 = pneg %p8780_p0 }
  0x5c   : > { %p8786_p2 = pnand %p8785_p9, %p8781_p1 }
  0x5e   : > { %8789 = shalt.err (!%p8786_p2)
}
  0x5f   : > { %s8790_s14 = scalar_lea.vmem %s9044_s16, 98304  ;;  %s8887_s9 = smov [#allocation6]  }
  0x60   : > { %p8791_p3 = scmp.ne.s32.totalorder %s9044_s16, %s8790_s14  ;;  %s8795_s10 = sshll.u32 %s8887_s9, 4  ;;  %s8796_s10 = int_to_ptr.vmem [resolvable:$false] %s8795_s10 }
  0x61   : > { %s8797_s12 = scalar_lea.vmem %s8796_s10, 196608  ;;  %p8798_p11 = scmp.lt.s32.totalorder %s9044_s16, %s8796_s10 }
  0x62   : > { %p8793_p7 = pnand %p8791_p3, %p8751_p12  ;;  %p8799_p4 = scmp.lt.s32.totalorder %s8797_s12, %s8790_s14 }
  0x64   : > { %p8794_p10 = pneg %p8793_p7  ;;  %p8800_p13 = por %p8799_p4, %p8798_p11 }
  0x66   : > { %p8801_p0 = pnand %p8800_p13, %p8794_p10 }
  0x68   : > { %8804 = shalt.err (!%p8801_p0)
}
  0x69   : > { %s8888_s15 = smov 128   ;;  %s8889_s17 = smov 8  }
  0x6a   : > { %7440 = dma.hbm_to_vmem [thread:$0]  (!%p9010_p8), %s9050_s27, 98304, %s9044_s16, %s9052_s30, %s8888_s15, %s8888_s15, %s8889_s17  }
  0x6b   : > { %p10130_p12 = scmp.ne.s32.totalorder %s10127_s24, 0 }
  0x6c   : > { %s257_s18 = sand.u32 (!%p10130_p12), 1, %s8871_s19   ;;  %p10131_p1 = scmp.ne.s32.totalorder (!%p10130_p12), %s10126_s23, 0 }
  0x6d   : > { %255 = sbr.rel (%p10130_p12) target bundleno = 1367 (0x557), region = 40  ;;  %s258_s7 = scalar_lea.sflag (!%p10130_p12), [#allocation4], %s257_s18 }
  0x6e   : > { %s7402_s26 = smul.u32 (!%p10130_p12), 96, %s257_s18 }
  0x70   : > { %s9080_s29 = scalar_lea.vmem (!%p10130_p12), [#allocation3], %s7402_s26 }
  0x72   : > { %8846 = dma.done.wait (%p10131_p1), %s258_s7, 1536  }
  0x73   : > { %8848 = vsyncadd (%p10131_p1), %s258_s7, 4294965760  ;;  %s266_s8 = sand.u32 1, %s8941_s22   ;;  %s7403_s6 = smul.u32 6144, %s257_s18 }
  0x74   : > { %s267_s16 = scalar_lea.sflag [#allocation7], %s266_s8 }
  0x75   : > { %s9087_s27 = scalar_lea.vmem [#allocation6], %s7403_s6 }
  0x76   : > { %8850 = dma.done.wait (%p10131_p1), %s267_s16, 98304  }
  0x77   : > { %8852 = vsyncadd (%p10131_p1), %s267_s16, 4294868992  ;;  %p10132_p8 = scmp.eq.s32.totalorder %s8941_s22, 0 }
  0x79   : > { %8854 = dma.done.wait (%p10132_p8), [#allocation7], 32   ;;  %p10133_p5 = pmov %p10132_p8 }
  0x7b   : > { %8856 = vsyncadd (%p10133_p5), [#allocation7], 4294967264  ;;  %p10134_p6 = pmov %p10133_p5 }
  0x7c   : > { %p10135_p9 = pmov %p10133_p5 }
  0x7d   : > { %8858 = dma.done.wait (%p10134_p6), [#allocation10], 2064  }
  0x7e   : > { %8860 = vsyncadd (%p10135_p9), [#allocation10], 4294965232  ;;  %p10136_p2 = scmp.ne.s32.totalorder %s8941_s22, 0 }
  0x80   : > { %315 = sbr.rel (%p10136_p2) target bundleno = 144 (0x90), region = 64 }
  0x85   : > { %v318_v0 = vlaneseq  ;;  %v316_v2 = vld [vmem:[#allocation8] sm:$0x3] }
  0x87   : > { %v319_v1 = vshrl.u32 %v318_v0, 7 }
  0x89   : > { %v320_v3 = vsub.s32 0, %v319_v1  ;;  %v324_v4 = vsub.s32 1, %v319_v1 }
  0x8b   : > { %v321_v5 = vrot.slane %v316_v2, %v320_v3  ;;  %v325_v6 = vrot.slane %v316_v2, %v324_v4 }
  0x8d   : > { %v326_v7 = vcombine.low %v321_v5, %v325_v6 }
  0x8f   : > { %6583 = vst.sshfl [vmem:[#allocation2] sm:$0x33 pattern:$0x76325410] %v326_v7 }
  0x90 PF: > { %v7491_v8 = vld [vmem:[%s9087_s27 + $0x74] ss:$8 sps:$4 sm:$0xff]   ;;  %v7495_v10 = vld [vmem:[%s9087_s27 + $0x70] ss:$8 sps:$4 sm:$0xff]   ;;  %v7497_v12 = vld [vmem:[%s9087_s27 + $0x64] ss:$8 sps:$4 sm:$0xff]   ;;  %v365_v46 = vlaneseq }
  0x91   : > { %v7493_v9 = vld [vmem:[%s9087_s27 + $0x174] ss:$8 sps:$4 sm:$0xff]   ;;  %5269 = vmatprep.subr.bf16.mxu0 %v7491_v8  ;;  %v7496_v11 = vld [vmem:[%s9087_s27 + $0x170] ss:$8 sps:$4 sm:$0xff]   ;;  %v7499_v13 = vld [vmem:[%s9087_s27 + $0x164] ss:$8 sps:$4 sm:$0xff]  }
  0x92   : > { %5310 = vmatprep.subr.bf16.mxu1 %v7493_v9  ;;  %5270 = vmatpush1.bf16.msra.mxu0 %v7495_v10  ;;  %v7501_v14 = vld [vmem:[%s9087_s27 + $0x60] ss:$8 sps:$4 sm:$0xff]   ;;  %v7503_v16 = vld [vmem:[%s9087_s27 + $0x54] ss:$8 sps:$4 sm:$0xff]   ;;  %v7507_v18 = vld [vmem:[%s9087_s27 + $0x50] ss:$8 sps:$4 sm:$0xff]  }
  0x93   : > { %5311 = vmatpush1.bf16.msra.mxu1 %v7496_v11  ;;  %5271 = vmatprep.subr.bf16.mxu0 %v7497_v12  ;;  %v7502_v15 = vld [vmem:[%s9087_s27 + $0x160] ss:$8 sps:$4 sm:$0xff]   ;;  %v7505_v17 = vld [vmem:[%s9087_s27 + $0x154] ss:$8 sps:$4 sm:$0xff]   ;;  %v7508_v19 = vld [vmem:[%s9087_s27 + $0x150] ss:$8 sps:$4 sm:$0xff]  }
  0x94   : > { %5312 = vmatprep.subr.bf16.mxu1 %v7499_v13  ;;  %v7509_v20 = vld [vmem:[%s9087_s27 + $0x44] ss:$8 sps:$4 sm:$0xff]   ;;  %v7513_v22 = vld [vmem:[%s9087_s27 + $0x40] ss:$8 sps:$4 sm:$0xff]   ;;  %v7515_v24 = vld [vmem:[%s9087_s27 + $0x34] ss:$8 sps:$4 sm:$0xff]  }
  0x95   : > { %v7511_v21 = vld [vmem:[%s9087_s27 + $0x144] ss:$8 sps:$4 sm:$0xff]   ;;  %v7514_v23 = vld [vmem:[%s9087_s27 + $0x140] ss:$8 sps:$4 sm:$0xff]   ;;  %v7517_v25 = vld [vmem:[%s9087_s27 + $0x134] ss:$8 sps:$4 sm:$0xff]  }
  0x96   : > { %5272 = vmatpush1.bf16.msra.mxu0 %v7501_v14  ;;  %v7519_v26 = vld [vmem:[%s9087_s27 + $0x30] ss:$8 sps:$4 sm:$0xff]   ;;  %v7521_v28 = vld [vmem:[%s9087_s27 + $0x24] ss:$8 sps:$4 sm:$0xff]   ;;  %v7525_v30 = vld [vmem:[%s9087_s27 + $0x20] ss:$8 sps:$4 sm:$0xff]  }
  0x97   : > { %5313 = vmatpush1.bf16.msra.mxu1 %v7502_v15  ;;  %5273 = vmatprep.subr.bf16.mxu0 %v7503_v16  ;;  %v7520_v27 = vld [vmem:[%s9087_s27 + $0x130] ss:$8 sps:$4 sm:$0xff]   ;;  %v7523_v29 = vld [vmem:[%s9087_s27 + $0x124] ss:$8 sps:$4 sm:$0xff]   ;;  %v7526_v31 = vld [vmem:[%s9087_s27 + $0x120] ss:$8 sps:$4 sm:$0xff]  }
  0x98   : > { %5314 = vmatprep.subr.bf16.mxu1 %v7505_v17  ;;  %v7527_v32 = vld [vmem:[%s9087_s27 + $0x14] ss:$8 sps:$4 sm:$0xff]   ;;  %v7531_v34 = vld [vmem:[%s9087_s27 + $0x10] ss:$8 sps:$4 sm:$0xff]   ;;  %v7533_v36 = vld [vmem:[%s9087_s27 + $0x4] ss:$8 sps:$4 sm:$0xff]  }
  0x99   : > { %v7529_v33 = vld [vmem:[%s9087_s27 + $0x114] ss:$8 sps:$4 sm:$0xff]   ;;  %v7532_v35 = vld [vmem:[%s9087_s27 + $0x110] ss:$8 sps:$4 sm:$0xff]   ;;  %v7535_v37 = vld [vmem:[%s9087_s27 + $0x104] ss:$8 sps:$4 sm:$0xff]  }
  0x9a   : > { %5274 = vmatpush1.bf16.msra.mxu0 %v7507_v18  ;;  %v7537_v38 = vld [vmem:[%s9087_s27] ss:$8 sps:$4 sm:$0xff]   ;;  %v7539_v40 = vld [vmem:[%s9087_s27 + $0xf4] ss:$8 sps:$4 sm:$0xff]   ;;  %v7543_v42 = vld [vmem:[%s9087_s27 + $0xf0] ss:$8 sps:$4 sm:$0xff]  }
  0x9b   : > { %5315 = vmatpush1.bf16.msra.mxu1 %v7508_v19  ;;  %5275 = vmatprep.subr.bf16.mxu0 %v7509_v20  ;;  %v7538_v39 = vld [vmem:[%s9087_s27 + $0x100] ss:$8 sps:$4 sm:$0xff]   ;;  %v7541_v41 = vld [vmem:[%s9087_s27 + $0x1f4] ss:$8 sps:$4 sm:$0xff]   ;;  %v7544_v43 = vld [vmem:[%s9087_s27 + $0x1f0] ss:$8 sps:$4 sm:$0xff]  }
  0x9c   : > { %5316 = vmatprep.subr.bf16.mxu1 %v7511_v21  ;;  %v8890_v44 = vmov 1983009808   ;;  %v7545_v47 = vld [vmem:[%s9087_s27 + $0xe4] ss:$8 sps:$4 sm:$0xff]   ;;  %v7549_v49 = vld [vmem:[%s9087_s27 + $0xe0] ss:$8 sps:$4 sm:$0xff]  }
  0x9d   : > { %v363_v45 = vunpack.c.l.s4 %v8890_v44  ;;  %v7547_v48 = vld [vmem:[%s9087_s27 + $0x1e4] ss:$8 sps:$4 sm:$0xff]   ;;  %v366_v51 = vshrl.u32 %v365_v46, 7  ;;  %v7550_v52 = vld [vmem:[%s9087_s27 + $0x1e0] ss:$8 sps:$4 sm:$0xff]   ;;  %p7352_p3 = scmp.ne.s32.totalorder %s8941_s22, 1 }
  0x9e   : > { %5276 = vmatpush1.bf16.msra.mxu0 %v7513_v22  ;;  %v7551_v53 = vld [vmem:[%s9087_s27 + $0xd4] ss:$8 sps:$4 sm:$0xff]   ;;  %v7555_v55 = vld [vmem:[%s9087_s27 + $0xd0] ss:$8 sps:$4 sm:$0xff]   ;;  %v7557_v58 = vld [vmem:[%s9087_s27 + $0xc4] ss:$8 sps:$4 sm:$0xff]  }
  0x9f   : > { %5317 = vmatpush1.bf16.msra.mxu1 %v7514_v23  ;;  %5277 = vmatprep.subr.bf16.mxu0 %v7515_v24  ;;  %v364_v50 = vunpack.c.0.s8 %v363_v45  ;;  %v7553_v54 = vld [vmem:[%s9087_s27 + $0x1d4] ss:$8 sps:$4 sm:$0xff]   ;;  %v7556_v56 = vld [vmem:[%s9087_s27 + $0x1d0] ss:$8 sps:$4 sm:$0xff]   ;;  %v7559_v59 = vld [vmem:[%s9087_s27 + $0x1c4] ss:$8 sps:$4 sm:$0xff]  }
  0xa0   : > { %5318 = vmatprep.subr.bf16.mxu1 %v7517_v25  ;;  %v337_v60 = vld [vmem:[%s9080_s29] sm:$0xff]  ;;  %v7563_v1 = vld [vmem:[%s9087_s27 + $0xb4] ss:$8 sps:$4 sm:$0xff]   ;;  %v7567_v5 = vld [vmem:[%s9087_s27 + $0xb0] ss:$8 sps:$4 sm:$0xff]  }
  0xa1   : > { %v9147_v57 = vsub.s32 %v364_v50, %v366_v51  ;;  %v7561_v61 = vld [vmem:[%s9087_s27 + $0xc0] ss:$8 sps:$4 sm:$0xff]   ;;  %v361_v63 = vcombine.high %v337_v60, %v337_v60  ;;  %v7565_v2 = vld [vmem:[%s9087_s27 + $0x1b4] ss:$8 sps:$4 sm:$0xff]   ;;  %v7568_v8 = vld [vmem:[%s9087_s27 + $0x1b0] ss:$8 sps:$4 sm:$0xff]  }
  0xa2   : > { %5278 = vmatpush1.bf16.msra.mxu0 %v7519_v26  ;;  %v7562_v0 = vld [vmem:[%s9087_s27 + $0x1c0] ss:$8 sps:$4 sm:$0xff]   ;;  %v7569_v9 = vld [vmem:[%s9087_s27 + $0xa4] ss:$8 sps:$4 sm:$0xff]   ;;  %v7575_v14 = vld [vmem:[%s9087_s27 + $0x94] ss:$8 sps:$4 sm:$0xff]  }
  0xa3   : > { %5319 = vmatpush1.bf16.msra.mxu1 %v7520_v27  ;;  %5279 = vmatprep.subr.bf16.mxu0 %v7521_v28  ;;  %v368_v62 = vrot.slane %v337_v60, %v9147_v57  ;;  %v375_v4 = vrot.slane %v361_v63, %v9147_v57  ;;  %v7571_v10 = vld [vmem:[%s9087_s27 + $0x1a4] ss:$8 sps:$4 sm:$0xff]   ;;  %v7573_v12 = vld [vmem:[%s9087_s27 + $0xa0] ss:$8 sps:$4 sm:$0xff]   ;;  %v7577_v15 = vld [vmem:[%s9087_s27 + $0x194] ss:$8 sps:$4 sm:$0xff]  }
  0xa4   : > { %5320 = vmatprep.subr.bf16.mxu1 %v7523_v29  ;;  %v7574_v13 = vld [vmem:[%s9087_s27 + $0x1a0] ss:$8 sps:$4 sm:$0xff]   ;;  %v7579_v16 = vld [vmem:[%s9087_s27 + $0x90] ss:$8 sps:$4 sm:$0xff]   ;;  %v7581_v18 = vld [vmem:[%s9087_s27 + $0x84] ss:$8 sps:$4 sm:$0xff]  }
  0xa5   : > { %v376_v3 = vcombine.high %v368_v62, %v368_v62  ;;  %v377_v7 = vcombine.high %v375_v4, %v375_v4  ;;  %v7580_v17 = vld [vmem:[%s9087_s27 + $0x190] ss:$8 sps:$4 sm:$0xff]   ;;  %v7583_v19 = vld [vmem:[%s9087_s27 + $0x184] ss:$8 sps:$4 sm:$0xff]   ;;  %v7585_v20 = vld [vmem:[%s9087_s27 + $0x80] ss:$8 sps:$4 sm:$0xff]   ;;  %v613_v24 = vpack.c.bf16 %v368_v62, %v368_v62  ;;  %v615_v25 = vpack.c.bf16 %v375_v4, %v375_v4 }
  0xa6   : > { %5280 = vmatpush1.bf16.msra.mxu0 %v7525_v30  ;;  %v7586_v21 = vld [vmem:[%s9087_s27 + $0x180] ss:$8 sps:$4 sm:$0xff]   ;;  %v7590_v22 = vld [vmem:[%s9087_s27 + $0x274] ss:$8 sps:$4 sm:$0xff]   ;;  %v7588_v26 = vld [vmem:[%s9087_s27 + $0x270] ss:$8 sps:$4 sm:$0xff]  }
  0xa7   : > { %5321 = vmatpush1.bf16.msra.mxu1 %v7526_v31  ;;  %5281 = vmatprep.subr.bf16.mxu0 %v7527_v32  ;;  %v614_v6 = vpack.c.bf16 %v376_v3, %v376_v3  ;;  %v616_v11 = vpack.c.bf16 %v377_v7, %v377_v7  ;;  %v7593_v23 = vld [vmem:[%s9087_s27 + $0x374] ss:$8 sps:$4 sm:$0xff]   ;;  %v7591_v27 = vld [vmem:[%s9087_s27 + $0x370] ss:$8 sps:$4 sm:$0xff]   ;;  %v7596_v28 = vld [vmem:[%s9087_s27 + $0x264] ss:$8 sps:$4 sm:$0xff]  }
  0xa8   : > { %5322 = vmatprep.subr.bf16.mxu1 %v7529_v33  ;;  %v7599_v29 = vld [vmem:[%s9087_s27 + $0x364] ss:$8 sps:$4 sm:$0xff]   ;;  %v7594_v30 = vld [vmem:[%s9087_s27 + $0x260] ss:$8 sps:$4 sm:$0xff]   ;;  %v7602_v32 = vld [vmem:[%s9087_s27 + $0x254] ss:$8 sps:$4 sm:$0xff]  }
  0xa9   : > { %5301 = vmatprep.mubr.bf16.mxu0 %v614_v6  ;;  %5342 = vmatprep.mubr.bf16.mxu1 %v616_v11  ;;  %v7597_v31 = vld [vmem:[%s9087_s27 + $0x360] ss:$8 sps:$4 sm:$0xff]   ;;  %v7605_v33 = vld [vmem:[%s9087_s27 + $0x354] ss:$8 sps:$4 sm:$0xff]   ;;  %v7620_v44 = vld [vmem:[%s9087_s27 + $0x224] ss:$8 sps:$4 sm:$0xff]  }
  0xaa   : > { %5282 = vmatpush1.bf16.msra.mxu0 %v7531_v34  ;;  %v7600_v34 = vld [vmem:[%s9087_s27 + $0x250] ss:$8 sps:$4 sm:$0xff]   ;;  %v7623_v45 = vld [vmem:[%s9087_s27 + $0x324] ss:$8 sps:$4 sm:$0xff]   ;;  %v7618_v46 = vld [vmem:[%s9087_s27 + $0x220] ss:$8 sps:$4 sm:$0xff]  }
  0xab   : > { %5323 = vmatpush1.bf16.msra.mxu1 %v7532_v35  ;;  %5283 = vmatprep.subr.bf16.mxu0 %v7533_v36  ;;  %v7603_v35 = vld [vmem:[%s9087_s27 + $0x350] ss:$8 sps:$4 sm:$0xff]   ;;  %v7608_v36 = vld [vmem:[%s9087_s27 + $0x244] ss:$8 sps:$4 sm:$0xff]   ;;  %v7630_v62 = vld [vmem:[%s9087_s27 + $0x200] ss:$8 sps:$4 sm:$0xff]  }
  0xac   : > { %5324 = vmatprep.subr.bf16.mxu1 %v7535_v37  ;;  %v7611_v37 = vld [vmem:[%s9087_s27 + $0x344] ss:$8 sps:$4 sm:$0xff]   ;;  %v7633_v63 = vld [vmem:[%s9087_s27 + $0x300] ss:$8 sps:$4 sm:$0xff]   ;;  %v7636_v3 = vld [vmem:[%s9087_s27 + $0x2f0] ss:$8 sps:$4 sm:$0xff]  }
  0xad   : > { %v338_v50 = vld [vmem:[%s9080_s29 + $0x8] sm:$0xff]  ;;  %v7639_v4 = vld [vmem:[%s9087_s27 + $0x3f0] ss:$8 sps:$4 sm:$0xff]  }
  0xae   : > { %5284 = vmatpush1.bf16.msra.mxu0 %v7537_v38  ;;  %v7606_v38 = vld [vmem:[%s9087_s27 + $0x240] ss:$8 sps:$4 sm:$0xff]   ;;  %v9200_v51 = vrot.slane %v338_v50, %v9147_v57  ;;  %v7647_v6 = vld [vmem:[%s9087_s27 + $0x3e4] ss:$8 sps:$4 sm:$0xff]   ;;  %v7648_v11 = vld [vmem:[%s9087_s27 + $0x2d0] ss:$8 sps:$4 sm:$0xff]  }
  0xaf   : > { %5325 = vmatpush1.bf16.msra.mxu1 %v7538_v39  ;;  %5285 = vmatprep.subr.bf16.mxu0 %v7539_v40  ;;  %v7609_v39 = vld [vmem:[%s9087_s27 + $0x340] ss:$8 sps:$4 sm:$0xff]   ;;  %v7614_v40 = vld [vmem:[%s9087_s27 + $0x234] ss:$8 sps:$4 sm:$0xff]  }
  0xb0   : > { %5326 = vmatprep.subr.bf16.mxu1 %v7541_v41  ;;  %v7617_v41 = vld [vmem:[%s9087_s27 + $0x334] ss:$8 sps:$4 sm:$0xff]   ;;  %v7642_v7 = vld [vmem:[%s9087_s27 + $0x2e0] ss:$8 sps:$4 sm:$0xff]  }
  0xb2   : > { %5286 = vmatpush2.bf16.msra.mxu0 %v7543_v42  ;;  %v7612_v42 = vld [vmem:[%s9087_s27 + $0x230] ss:$8 sps:$4 sm:$0xff]  }
  0xb3   : > { %5327 = vmatpush2.bf16.msra.mxu1 %v7544_v43  ;;  %5287 = vmatprep.subr.bf16.mxu0 %v7545_v47  ;;  %v7615_v43 = vld [vmem:[%s9087_s27 + $0x330] ss:$8 sps:$4 sm:$0xff]   ;;  %v7621_v47 = vld [vmem:[%s9087_s27 + $0x320] ss:$8 sps:$4 sm:$0xff]  }
  0xb4   : > { %5328 = vmatprep.subr.bf16.mxu1 %v7547_v48  ;;  %v7626_v48 = vld [vmem:[%s9087_s27 + $0x214] ss:$8 sps:$4 sm:$0xff]  }
  0xb6   : > { %5288 = vmatpush2.bf16.msra.mxu0 %v7549_v49  ;;  %v7629_v49 = vld [vmem:[%s9087_s27 + $0x314] ss:$8 sps:$4 sm:$0xff]  }
  0xb7   : > { %5329 = vmatpush2.bf16.msra.mxu1 %v7550_v52  ;;  %5289 = vmatprep.subr.bf16.mxu0 %v7551_v53  ;;  %v378_v52 = vcombine.high %v338_v50, %v338_v50  ;;  %v7624_v53 = vld [vmem:[%s9087_s27 + $0x210] ss:$8 sps:$4 sm:$0xff]  }
  0xb8   : > { %5330 = vmatprep.subr.bf16.mxu1 %v7553_v54  ;;  %v7627_v54 = vld [vmem:[%s9087_s27 + $0x310] ss:$8 sps:$4 sm:$0xff]  }
  0xba   : > { %5290 = vmatpush2.bf16.msra.mxu0 %v7555_v55  ;;  %v393_v55 = vcombine.high %v9200_v51, %v9200_v51 }
  0xbb   : > { %5331 = vmatpush2.bf16.msra.mxu1 %v7556_v56  ;;  %5291 = vmatprep.subr.bf16.mxu0 %v7557_v58  ;;  %v9207_v56 = vrot.slane %v378_v52, %v9147_v57  ;;  %v7632_v58 = vld [vmem:[%s9087_s27 + $0x204] ss:$8 sps:$4 sm:$0xff]   ;;  %v7697_v52 = vld [vmem:[%s9087_s27 + $0x450] ss:$8 sps:$4 sm:$0xff]  }
  0xbc   : > { %5332 = vmatprep.subr.bf16.mxu1 %v7559_v59  ;;  %v7635_v59 = vld [vmem:[%s9087_s27 + $0x304] ss:$8 sps:$4 sm:$0xff]   ;;  %v618_v60 = vpack.c.bf16 %v393_v55, %v393_v55 }
  0xbd   : > { %v7705_v55 = vld [vmem:[%s9087_s27 + $0x444] ss:$8 sps:$4 sm:$0xff]  }
  0xbe   : > { %5292 = vmatpush2.bf16.msra.mxu0 %v7561_v61  ;;  %v394_v61 = vcombine.high %v9207_v56, %v9207_v56 }
  0xbf   : > { %5333 = vmatpush2.bf16.msra.mxu1 %v7562_v0  ;;  %5293 = vmatprep.subr.bf16.mxu0 %v7563_v1  ;;  %v7638_v1 = vld [vmem:[%s9087_s27 + $0x2f4] ss:$8 sps:$4 sm:$0xff]  }
  0xc0   : > { %5334 = vmatprep.subr.bf16.mxu1 %v7565_v2  ;;  %v620_v0 = vpack.c.bf16 %v394_v61, %v394_v61  ;;  %v7641_v2 = vld [vmem:[%s9087_s27 + $0x3f4] ss:$8 sps:$4 sm:$0xff]  }
  0xc1   : > { %v7714_v61 = vld [vmem:[%s9087_s27 + $0x534] ss:$8 sps:$4 sm:$0xff]  }
  0xc2   : > { %5294 = vmatpush2.bf16.msra.mxu0 %v7567_v5  ;;  %v7644_v5 = vld [vmem:[%s9087_s27 + $0x2e4] ss:$8 sps:$4 sm:$0xff]  }
  0xc3   : > { %5335 = vmatpush2.bf16.msra.mxu1 %v7568_v8  ;;  %5295 = vmatprep.subr.bf16.mxu0 %v7569_v9  ;;  %v7645_v8 = vld [vmem:[%s9087_s27 + $0x3e0] ss:$8 sps:$4 sm:$0xff]   ;;  %v7650_v9 = vld [vmem:[%s9087_s27 + $0x2d4] ss:$8 sps:$4 sm:$0xff]  }
  0xc4   : > { %5336 = vmatprep.subr.bf16.mxu1 %v7571_v10  ;;  %v7653_v10 = vld [vmem:[%s9087_s27 + $0x3d4] ss:$8 sps:$4 sm:$0xff]  }
  0xc6   : > { %5296 = vmatpush2.bf16.msra.mxu0 %v7573_v12  ;;  %v7651_v12 = vld [vmem:[%s9087_s27 + $0x3d0] ss:$8 sps:$4 sm:$0xff]  }
  0xc7   : > { %5337 = vmatpush2.bf16.msra.mxu1 %v7574_v13  ;;  %5297 = vmatprep.subr.bf16.mxu0 %v7575_v14  ;;  %v7656_v13 = vld [vmem:[%s9087_s27 + $0x2c4] ss:$8 sps:$4 sm:$0xff]  }
  0xc8   : > { %5338 = vmatprep.subr.bf16.mxu1 %v7577_v15  ;;  %v7659_v14 = vld [vmem:[%s9087_s27 + $0x3c4] ss:$8 sps:$4 sm:$0xff]   ;;  %v7654_v15 = vld [vmem:[%s9087_s27 + $0x2c0] ss:$8 sps:$4 sm:$0xff]  }
  0xca   : > { %5298 = vmatpush2.bf16.msra.mxu0 %v7579_v16  ;;  %v7657_v16 = vld [vmem:[%s9087_s27 + $0x3c0] ss:$8 sps:$4 sm:$0xff]  }
  0xcb   : > { %5339 = vmatpush2.bf16.msra.mxu1 %v7580_v17  ;;  %5299 = vmatprep.subr.bf16.mxu0 %v7581_v18  ;;  %v7662_v17 = vld [vmem:[%s9087_s27 + $0x2b4] ss:$8 sps:$4 sm:$0xff]  }
  0xcc   : > { %5340 = vmatprep.subr.bf16.mxu1 %v7583_v19  ;;  %v7665_v18 = vld [vmem:[%s9087_s27 + $0x3b4] ss:$8 sps:$4 sm:$0xff]   ;;  %v7660_v19 = vld [vmem:[%s9087_s27 + $0x2b0] ss:$8 sps:$4 sm:$0xff]  }
  0xce   : > { %5300 = vmatpush2.bf16.msra.mxu0 %v7585_v20  ;;  %v7663_v20 = vld [vmem:[%s9087_s27 + $0x3b0] ss:$8 sps:$4 sm:$0xff]  }
  0xcf   : > { %5341 = vmatpush2.bf16.msra.mxu1 %v7586_v21  ;;  %5351 = vmatprep.subr.bf16.mxu0 %v7590_v22  ;;  %v7668_v21 = vld [vmem:[%s9087_s27 + $0x2a4] ss:$8 sps:$4 sm:$0xff]  }
  0xd0   : > { %5392 = vmatprep.subr.bf16.mxu1 %v7593_v23  ;;  %v7671_v22 = vld [vmem:[%s9087_s27 + $0x3a4] ss:$8 sps:$4 sm:$0xff]   ;;  %v7666_v23 = vld [vmem:[%s9087_s27 + $0x2a0] ss:$8 sps:$4 sm:$0xff]  }
  0xd1   : > { %5302 = vmatmul.mubr.bf16.vlgmr.msra.gmra.mxu0 %v613_v24  ;;  %v7669_v24 = vld [vmem:[%s9087_s27 + $0x3a0] ss:$8 sps:$4 sm:$0xff]  }
  0xd2   : > { %5343 = vmatmul.mubr.bf16.vlgmr.msra.gmra.mxu1 %v615_v25  ;;  %5352 = vmatpush1.bf16.msra.mxu0 %v7588_v26  ;;  %v7674_v25 = vld [vmem:[%s9087_s27 + $0x294] ss:$8 sps:$4 sm:$0xff]  }
  0xd3   : > { %5393 = vmatpush1.bf16.msra.mxu1 %v7591_v27  ;;  %5353 = vmatprep.subr.bf16.mxu0 %v7596_v28  ;;  %v7677_v26 = vld [vmem:[%s9087_s27 + $0x394] ss:$8 sps:$4 sm:$0xff]   ;;  %v7672_v27 = vld [vmem:[%s9087_s27 + $0x290] ss:$8 sps:$4 sm:$0xff]  }
  0xd4   : > { %5394 = vmatprep.subr.bf16.mxu1 %v7599_v29  ;;  %5383 = vmatprep.mubr.bf16.mxu0 %v618_v60  ;;  %v7675_v28 = vld [vmem:[%s9087_s27 + $0x390] ss:$8 sps:$4 sm:$0xff]   ;;  %v7680_v29 = vld [vmem:[%s9087_s27 + $0x284] ss:$8 sps:$4 sm:$0xff]   ;;  %v7711_v60 = vld [vmem:[%s9087_s27 + $0x434] ss:$8 sps:$4 sm:$0xff]  }
  0xd5   : > { %5424 = vmatprep.mubr.bf16.mxu1 %v620_v0  ;;  %v7717_v0 = vld [vmem:[%s9087_s27 + $0x424] ss:$8 sps:$4 sm:$0xff]  }
  0xd6   : > { %5354 = vmatpush1.bf16.msra.mxu0 %v7594_v30  ;;  %v7683_v30 = vld [vmem:[%s9087_s27 + $0x384] ss:$8 sps:$4 sm:$0xff]  }
  0xd7   : > { %5395 = vmatpush1.bf16.msra.mxu1 %v7597_v31  ;;  %5355 = vmatprep.subr.bf16.mxu0 %v7602_v32  ;;  %v7678_v31 = vld [vmem:[%s9087_s27 + $0x280] ss:$8 sps:$4 sm:$0xff]  }
  0xd8   : > { %5396 = vmatprep.subr.bf16.mxu1 %v7605_v33  ;;  %v7681_v32 = vld [vmem:[%s9087_s27 + $0x380] ss:$8 sps:$4 sm:$0xff]   ;;  %v7687_v33 = vld [vmem:[%s9087_s27 + $0x474] ss:$8 sps:$4 sm:$0xff]  }
  0xda   : > { %5356 = vmatpush1.bf16.msra.mxu0 %v7600_v34  ;;  %v7690_v34 = vld [vmem:[%s9087_s27 + $0x574] ss:$8 sps:$4 sm:$0xff]  }
  0xdb   : > { %5397 = vmatpush1.bf16.msra.mxu1 %v7603_v35  ;;  %5357 = vmatprep.subr.bf16.mxu0 %v7608_v36  ;;  %v617_v35 = vpack.c.bf16 %v9200_v51, %v9200_v51  ;;  %v619_v36 = vpack.c.bf16 %v9207_v56, %v9207_v56  ;;  %v7708_v56 = vld [vmem:[%s9087_s27 + $0x544] ss:$8 sps:$4 sm:$0xff]  }
  0xdc   : > { %5398 = vmatprep.subr.bf16.mxu1 %v7611_v37  ;;  %v7685_v37 = vld [vmem:[%s9087_s27 + $0x470] ss:$8 sps:$4 sm:$0xff]  }
  0xde   : > { %5358 = vmatpush1.bf16.msra.mxu0 %v7606_v38  ;;  %v7688_v38 = vld [vmem:[%s9087_s27 + $0x570] ss:$8 sps:$4 sm:$0xff]  }
  0xdf   : > { %5399 = vmatpush1.bf16.msra.mxu1 %v7609_v39  ;;  %5359 = vmatprep.subr.bf16.mxu0 %v7614_v40  ;;  %v7693_v39 = vld [vmem:[%s9087_s27 + $0x464] ss:$8 sps:$4 sm:$0xff]   ;;  %v339_v40 = vld [vmem:[%s9080_s29 + $0x10] sm:$0xff] }
  0xe0   : > { %5400 = vmatprep.subr.bf16.mxu1 %v7617_v41  ;;  %v7696_v41 = vld [vmem:[%s9087_s27 + $0x564] ss:$8 sps:$4 sm:$0xff]  }
  0xe2   : > { %5360 = vmatpush1.bf16.msra.mxu0 %v7612_v42  ;;  %v9259_v42 = vrot.slane %v339_v40, %v9147_v57 }
  0xe3   : > { %5401 = vmatpush1.bf16.msra.mxu1 %v7615_v43  ;;  %5361 = vmatprep.subr.bf16.mxu0 %v7620_v44  ;;  %v395_v43 = vcombine.high %v339_v40, %v339_v40  ;;  %v7691_v44 = vld [vmem:[%s9087_s27 + $0x460] ss:$8 sps:$4 sm:$0xff]   ;;  %v7769_v40 = vld [vmem:[%s9087_s27 + $0x490] ss:$8 sps:$4 sm:$0xff]  }
  0xe4   : > { %5402 = vmatprep.subr.bf16.mxu1 %v7623_v45  ;;  %v410_v45 = vcombine.high %v9259_v42, %v9259_v42 }
  0xe6   : > { %5362 = vmatpush1.bf16.msra.mxu0 %v7618_v46  ;;  %v9265_v46 = vrot.slane %v395_v43, %v9147_v57  ;;  %v622_v50 = vpack.c.bf16 %v410_v45, %v410_v45  ;;  %v7777_v43 = vld [vmem:[%s9087_s27 + $0x484] ss:$8 sps:$4 sm:$0xff]  }
  0xe7   : > { %5403 = vmatpush1.bf16.msra.mxu1 %v7621_v47  ;;  %5363 = vmatprep.subr.bf16.mxu0 %v7626_v48  ;;  %v7694_v47 = vld [vmem:[%s9087_s27 + $0x560] ss:$8 sps:$4 sm:$0xff]   ;;  %v7699_v48 = vld [vmem:[%s9087_s27 + $0x454] ss:$8 sps:$4 sm:$0xff]  }
  0xe8   : > { %5404 = vmatprep.subr.bf16.mxu1 %v7629_v49  ;;  %v7702_v49 = vld [vmem:[%s9087_s27 + $0x554] ss:$8 sps:$4 sm:$0xff]   ;;  %v411_v51 = vcombine.high %v9265_v46, %v9265_v46 }
  0xea   : > { %5364 = vmatpush1.bf16.msra.mxu0 %v7624_v53  ;;  %v624_v53 = vpack.c.bf16 %v411_v51, %v411_v51  ;;  %v7787_v51 = vld [vmem:[%s9087_s27 + $0x774] ss:$8 sps:$4 sm:$0xff]  }
  0xeb   : > { %5405 = vmatpush1.bf16.msra.mxu1 %v7627_v54  ;;  %5365 = vmatprep.subr.bf16.mxu0 %v7632_v58  ;;  %v7700_v54 = vld [vmem:[%s9087_s27 + $0x550] ss:$8 sps:$4 sm:$0xff]   ;;  %v7703_v58 = vld [vmem:[%s9087_s27 + $0x440] ss:$8 sps:$4 sm:$0xff]  }
  0xec   : > { %5406 = vmatprep.subr.bf16.mxu1 %v7635_v59  ;;  %v7706_v59 = vld [vmem:[%s9087_s27 + $0x540] ss:$8 sps:$4 sm:$0xff]  }
  0xee   : > { %5366 = vmatpush1.bf16.msra.mxu0 %v7630_v62  ;;  %v7709_v62 = vld [vmem:[%s9087_s27 + $0x430] ss:$8 sps:$4 sm:$0xff]  }
  0xef   : > { %5407 = vmatpush1.bf16.msra.mxu1 %v7633_v63  ;;  %5367 = vmatprep.subr.bf16.mxu0 %v7638_v1  ;;  %v7712_v63 = vld [vmem:[%s9087_s27 + $0x530] ss:$8 sps:$4 sm:$0xff]   ;;  %v7720_v1 = vld [vmem:[%s9087_s27 + $0x524] ss:$8 sps:$4 sm:$0xff]  }
  0xf0   : > { %5408 = vmatprep.subr.bf16.mxu1 %v7641_v2  ;;  %v7715_v2 = vld [vmem:[%s9087_s27 + $0x420] ss:$8 sps:$4 sm:$0xff]  }
  0xf2   : > { %5368 = vmatpush2.bf16.msra.mxu0 %v7636_v3  ;;  %v7718_v3 = vld [vmem:[%s9087_s27 + $0x520] ss:$8 sps:$4 sm:$0xff]  }
  0xf3   : > { %5409 = vmatpush2.bf16.msra.mxu1 %v7639_v4  ;;  %5369 = vmatprep.subr.bf16.mxu0 %v7644_v5  ;;  %v7723_v4 = vld [vmem:[%s9087_s27 + $0x414] ss:$8 sps:$4 sm:$0xff]  }
  0xf4   : > { %5410 = vmatprep.subr.bf16.mxu1 %v7647_v6  ;;  %v7726_v5 = vld [vmem:[%s9087_s27 + $0x514] ss:$8 sps:$4 sm:$0xff]   ;;  %v7721_v6 = vld [vmem:[%s9087_s27 + $0x410] ss:$8 sps:$4 sm:$0xff]  }
  0xf6   : > { %5370 = vmatpush2.bf16.msra.mxu0 %v7642_v7  ;;  %v7724_v7 = vld [vmem:[%s9087_s27 + $0x510] ss:$8 sps:$4 sm:$0xff]  }
  0xf7   : > { %5411 = vmatpush2.bf16.msra.mxu1 %v7645_v8  ;;  %5371 = vmatprep.subr.bf16.mxu0 %v7650_v9  ;;  %v7729_v8 = vld [vmem:[%s9087_s27 + $0x404] ss:$8 sps:$4 sm:$0xff]  }
  0xf8   : > { %5412 = vmatprep.subr.bf16.mxu1 %v7653_v10  ;;  %v7732_v9 = vld [vmem:[%s9087_s27 + $0x504] ss:$8 sps:$4 sm:$0xff]   ;;  %v7727_v10 = vld [vmem:[%s9087_s27 + $0x400] ss:$8 sps:$4 sm:$0xff]  }
  0xfa   : > { %5372 = vmatpush2.bf16.msra.mxu0 %v7648_v11  ;;  %v7730_v11 = vld [vmem:[%s9087_s27 + $0x500] ss:$8 sps:$4 sm:$0xff]  }
  0xfb   : > { %5413 = vmatpush2.bf16.msra.mxu1 %v7651_v12  ;;  %5373 = vmatprep.subr.bf16.mxu0 %v7656_v13  ;;  %v7735_v12 = vld [vmem:[%s9087_s27 + $0x4f4] ss:$8 sps:$4 sm:$0xff]  }
  0xfc   : > { %5414 = vmatprep.subr.bf16.mxu1 %v7659_v14  ;;  %v7738_v13 = vld [vmem:[%s9087_s27 + $0x5f4] ss:$8 sps:$4 sm:$0xff]   ;;  %v7733_v14 = vld [vmem:[%s9087_s27 + $0x4f0] ss:$8 sps:$4 sm:$0xff]  }
  0xfe   : > { %5374 = vmatpush2.bf16.msra.mxu0 %v7654_v15  ;;  %v7736_v15 = vld [vmem:[%s9087_s27 + $0x5f0] ss:$8 sps:$4 sm:$0xff]  }
  0xff   : > { %5415 = vmatpush2.bf16.msra.mxu1 %v7657_v16  ;;  %5375 = vmatprep.subr.bf16.mxu0 %v7662_v17  ;;  %v7741_v16 = vld [vmem:[%s9087_s27 + $0x4e4] ss:$8 sps:$4 sm:$0xff]  }
 0x100   : > { %5416 = vmatprep.subr.bf16.mxu1 %v7665_v18  ;;  %v7744_v17 = vld [vmem:[%s9087_s27 + $0x5e4] ss:$8 sps:$4 sm:$0xff]   ;;  %v7739_v18 = vld [vmem:[%s9087_s27 + $0x4e0] ss:$8 sps:$4 sm:$0xff]  }
 0x102   : > { %5376 = vmatpush2.bf16.msra.mxu0 %v7660_v19  ;;  %v7742_v19 = vld [vmem:[%s9087_s27 + $0x5e0] ss:$8 sps:$4 sm:$0xff]  }
 0x103   : > { %5417 = vmatpush2.bf16.msra.mxu1 %v7663_v20  ;;  %5377 = vmatprep.subr.bf16.mxu0 %v7668_v21  ;;  %v7747_v20 = vld [vmem:[%s9087_s27 + $0x4d4] ss:$8 sps:$4 sm:$0xff]  }
 0x104   : > { %5418 = vmatprep.subr.bf16.mxu1 %v7671_v22  ;;  %v7750_v21 = vld [vmem:[%s9087_s27 + $0x5d4] ss:$8 sps:$4 sm:$0xff]   ;;  %v7745_v22 = vld [vmem:[%s9087_s27 + $0x4d0] ss:$8 sps:$4 sm:$0xff]  }
 0x106   : > { %5378 = vmatpush2.bf16.msra.mxu0 %v7666_v23  ;;  %v7748_v23 = vld [vmem:[%s9087_s27 + $0x5d0] ss:$8 sps:$4 sm:$0xff]  }
 0x107   : > { %5419 = vmatpush2.bf16.msra.mxu1 %v7669_v24  ;;  %5379 = vmatprep.subr.bf16.mxu0 %v7674_v25  ;;  %v7753_v24 = vld [vmem:[%s9087_s27 + $0x4c4] ss:$8 sps:$4 sm:$0xff]  }
 0x108   : > { %5420 = vmatprep.subr.bf16.mxu1 %v7677_v26  ;;  %v7756_v25 = vld [vmem:[%s9087_s27 + $0x5c4] ss:$8 sps:$4 sm:$0xff]   ;;  %v7751_v26 = vld [vmem:[%s9087_s27 + $0x4c0] ss:$8 sps:$4 sm:$0xff]  }
 0x10a   : > { %5380 = vmatpush2.bf16.msra.mxu0 %v7672_v27  ;;  %v7754_v27 = vld [vmem:[%s9087_s27 + $0x5c0] ss:$8 sps:$4 sm:$0xff]  }
 0x10b   : > { %5421 = vmatpush2.bf16.msra.mxu1 %v7675_v28  ;;  %5381 = vmatprep.subr.bf16.mxu0 %v7680_v29  ;;  %v7759_v28 = vld [vmem:[%s9087_s27 + $0x4b4] ss:$8 sps:$4 sm:$0xff]  }
 0x10c   : > { %5422 = vmatprep.subr.bf16.mxu1 %v7683_v30  ;;  %v7762_v29 = vld [vmem:[%s9087_s27 + $0x5b4] ss:$8 sps:$4 sm:$0xff]   ;;  %v7757_v30 = vld [vmem:[%s9087_s27 + $0x4b0] ss:$8 sps:$4 sm:$0xff]  }
 0x10e   : > { %5382 = vmatpush2.bf16.msra.mxu0 %v7678_v31  ;;  %v7760_v31 = vld [vmem:[%s9087_s27 + $0x5b0] ss:$8 sps:$4 sm:$0xff]  }
 0x10f   : > { %5423 = vmatpush2.bf16.msra.mxu1 %v7681_v32  ;;  %5433 = vmatprep.subr.bf16.mxu0 %v7687_v33  ;;  %v7765_v32 = vld [vmem:[%s9087_s27 + $0x4a4] ss:$8 sps:$4 sm:$0xff]  }
 0x110   : > { %5474 = vmatprep.subr.bf16.mxu1 %v7690_v34  ;;  %v7768_v33 = vld [vmem:[%s9087_s27 + $0x5a4] ss:$8 sps:$4 sm:$0xff]   ;;  %v7763_v34 = vld [vmem:[%s9087_s27 + $0x4a0] ss:$8 sps:$4 sm:$0xff]  }
 0x111   : > { %5384 = vmatmul.mubr.bf16.vlgmr.msra.gmra.mxu0 %v617_v35  ;;  %v7766_v35 = vld [vmem:[%s9087_s27 + $0x5a0] ss:$8 sps:$4 sm:$0xff]  }
 0x112   : > { %5425 = vmatmul.mubr.bf16.vlgmr.msra.gmra.mxu1 %v619_v36  ;;  %5434 = vmatpush1.bf16.msra.mxu0 %v7685_v37  ;;  %v340_v36 = vld [vmem:[%s9080_s29 + $0x18] sm:$0xff] }
 0x113   : > { %5475 = vmatpush1.bf16.msra.mxu1 %v7688_v38  ;;  %5435 = vmatprep.subr.bf16.mxu0 %v7693_v39  ;;  %v7771_v37 = vld [vmem:[%s9087_s27 + $0x494] ss:$8 sps:$4 sm:$0xff]   ;;  %v412_v39 = vcombine.high %v340_v36, %v340_v36  ;;  %v9326_v45 = vrot.slane %v340_v36, %v9147_v57  ;;  %v7853_v36 = vld [vmem:[%s9087_s27 + $0x7c4] ss:$8 sps:$4 sm:$0xff]  }
 0x114   : > { %5476 = vmatprep.subr.bf16.mxu1 %v7696_v41  ;;  %5465 = vmatprep.mubr.bf16.mxu0 %v622_v50  ;;  %v7774_v38 = vld [vmem:[%s9087_s27 + $0x594] ss:$8 sps:$4 sm:$0xff]   ;;  %v7772_v41 = vld [vmem:[%s9087_s27 + $0x590] ss:$8 sps:$4 sm:$0xff]  }
 0x115   : > { %5506 = vmatprep.mubr.bf16.mxu1 %v624_v53  ;;  %v7784_v50 = vld [vmem:[%s9087_s27 + $0x674] ss:$8 sps:$4 sm:$0xff]  }
 0x116   : > { %5436 = vmatpush1.bf16.msra.mxu0 %v7691_v44  ;;  %v7780_v44 = vld [vmem:[%s9087_s27 + $0x584] ss:$8 sps:$4 sm:$0xff]  }
 0x117   : > { %5477 = vmatpush1.bf16.msra.mxu1 %v7694_v47  ;;  %5437 = vmatprep.subr.bf16.mxu0 %v7699_v48  ;;  %v9329_v47 = vrot.slane %v412_v39, %v9147_v57  ;;  %v7775_v48 = vld [vmem:[%s9087_s27 + $0x480] ss:$8 sps:$4 sm:$0xff]   ;;  %v7856_v39 = vld [vmem:[%s9087_s27 + $0x6b4] ss:$8 sps:$4 sm:$0xff]  }
 0x118   : > { %5478 = vmatprep.subr.bf16.mxu1 %v7702_v49  ;;  %v7778_v49 = vld [vmem:[%s9087_s27 + $0x580] ss:$8 sps:$4 sm:$0xff]  }
 0x119   : > { %v428_v53 = vcombine.high %v9329_v47, %v9329_v47 }
 0x11a   : > { %5438 = vmatpush1.bf16.msra.mxu0 %v7697_v52  ;;  %v427_v52 = vcombine.high %v9326_v45, %v9326_v45 }
 0x11b   : > { %5479 = vmatpush1.bf16.msra.mxu1 %v7700_v54  ;;  %5439 = vmatprep.subr.bf16.mxu0 %v7705_v55  ;;  %v621_v54 = vpack.c.bf16 %v9259_v42, %v9259_v42  ;;  %v623_v55 = vpack.c.bf16 %v9265_v46, %v9265_v46  ;;  %v7788_v42 = vld [vmem:[%s9087_s27 + $0x660] ss:$8 sps:$4 sm:$0xff]   ;;  %v7796_v46 = vld [vmem:[%s9087_s27 + $0x654] ss:$8 sps:$4 sm:$0xff]  }
 0x11c   : > { %5480 = vmatprep.subr.bf16.mxu1 %v7708_v56  ;;  %v7782_v56 = vld [vmem:[%s9087_s27 + $0x670] ss:$8 sps:$4 sm:$0xff]  }
 0x11e   : > { %5440 = vmatpush1.bf16.msra.mxu0 %v7703_v58  ;;  %v7785_v58 = vld [vmem:[%s9087_s27 + $0x770] ss:$8 sps:$4 sm:$0xff]  }
 0x11f   : > { %5481 = vmatpush1.bf16.msra.mxu1 %v7706_v59  ;;  %5441 = vmatprep.subr.bf16.mxu0 %v7711_v60  ;;  %v7790_v59 = vld [vmem:[%s9087_s27 + $0x664] ss:$8 sps:$4 sm:$0xff]  }
 0x120   : > { %5482 = vmatprep.subr.bf16.mxu1 %v7714_v61  ;;  %v7793_v60 = vld [vmem:[%s9087_s27 + $0x764] ss:$8 sps:$4 sm:$0xff]   ;;  %v626_v61 = vpack.c.bf16 %v427_v52, %v427_v52  ;;  %v7868_v52 = vld [vmem:[%s9087_s27 + $0x694] ss:$8 sps:$4 sm:$0xff]  }
 0x122   : > { %5442 = vmatpush1.bf16.msra.mxu0 %v7709_v62  ;;  %v628_v62 = vpack.c.bf16 %v428_v53, %v428_v53  ;;  %v7871_v53 = vld [vmem:[%s9087_s27 + $0x794] ss:$8 sps:$4 sm:$0xff]  }
 0x123   : > { %5483 = vmatpush1.bf16.msra.mxu1 %v7712_v63  ;;  %5443 = vmatprep.subr.bf16.mxu0 %v7717_v0  ;;  %v7791_v63 = vld [vmem:[%s9087_s27 + $0x760] ss:$8 sps:$4 sm:$0xff]   ;;  %v7799_v0 = vld [vmem:[%s9087_s27 + $0x754] ss:$8 sps:$4 sm:$0xff]  }
 0x124   : > { %5484 = vmatprep.subr.bf16.mxu1 %v7720_v1  ;;  %v7794_v1 = vld [vmem:[%s9087_s27 + $0x650] ss:$8 sps:$4 sm:$0xff]  }
 0x126   : > { %5444 = vmatpush1.bf16.msra.mxu0 %v7715_v2  ;;  %v7797_v2 = vld [vmem:[%s9087_s27 + $0x750] ss:$8 sps:$4 sm:$0xff]  }
 0x127   : > { %5485 = vmatpush1.bf16.msra.mxu1 %v7718_v3  ;;  %5445 = vmatprep.subr.bf16.mxu0 %v7723_v4  ;;  %v7802_v3 = vld [vmem:[%s9087_s27 + $0x644] ss:$8 sps:$4 sm:$0xff]  }
 0x128   : > { %5486 = vmatprep.subr.bf16.mxu1 %v7726_v5  ;;  %v7805_v4 = vld [vmem:[%s9087_s27 + $0x744] ss:$8 sps:$4 sm:$0xff]   ;;  %v7800_v5 = vld [vmem:[%s9087_s27 + $0x640] ss:$8 sps:$4 sm:$0xff]  }
 0x12a   : > { %5446 = vmatpush1.bf16.msra.mxu0 %v7721_v6  ;;  %v7803_v6 = vld [vmem:[%s9087_s27 + $0x740] ss:$8 sps:$4 sm:$0xff]  }
 0x12b   : > { %5487 = vmatpush1.bf16.msra.mxu1 %v7724_v7  ;;  %5447 = vmatprep.subr.bf16.mxu0 %v7729_v8  ;;  %v7808_v7 = vld [vmem:[%s9087_s27 + $0x634] ss:$8 sps:$4 sm:$0xff]  }
 0x12c   : > { %5488 = vmatprep.subr.bf16.mxu1 %v7732_v9  ;;  %v7811_v8 = vld [vmem:[%s9087_s27 + $0x734] ss:$8 sps:$4 sm:$0xff]   ;;  %v7806_v9 = vld [vmem:[%s9087_s27 + $0x630] ss:$8 sps:$4 sm:$0xff]  }
 0x12e   : > { %5448 = vmatpush1.bf16.msra.mxu0 %v7727_v10  ;;  %v7809_v10 = vld [vmem:[%s9087_s27 + $0x730] ss:$8 sps:$4 sm:$0xff]  }
 0x12f   : > { %5489 = vmatpush1.bf16.msra.mxu1 %v7730_v11  ;;  %5449 = vmatprep.subr.bf16.mxu0 %v7735_v12  ;;  %v7814_v11 = vld [vmem:[%s9087_s27 + $0x624] ss:$8 sps:$4 sm:$0xff]  }
 0x130   : > { %5490 = vmatprep.subr.bf16.mxu1 %v7738_v13  ;;  %v7817_v12 = vld [vmem:[%s9087_s27 + $0x724] ss:$8 sps:$4 sm:$0xff]   ;;  %v7812_v13 = vld [vmem:[%s9087_s27 + $0x620] ss:$8 sps:$4 sm:$0xff]  }
 0x132   : > { %5450 = vmatpush2.bf16.msra.mxu0 %v7733_v14  ;;  %v7815_v14 = vld [vmem:[%s9087_s27 + $0x720] ss:$8 sps:$4 sm:$0xff]  }
 0x133   : > { %5491 = vmatpush2.bf16.msra.mxu1 %v7736_v15  ;;  %5451 = vmatprep.subr.bf16.mxu0 %v7741_v16  ;;  %v7820_v15 = vld [vmem:[%s9087_s27 + $0x614] ss:$8 sps:$4 sm:$0xff]  }
 0x134   : > { %5492 = vmatprep.subr.bf16.mxu1 %v7744_v17  ;;  %v7823_v16 = vld [vmem:[%s9087_s27 + $0x714] ss:$8 sps:$4 sm:$0xff]   ;;  %v7818_v17 = vld [vmem:[%s9087_s27 + $0x610] ss:$8 sps:$4 sm:$0xff]  }
 0x136   : > { %5452 = vmatpush2.bf16.msra.mxu0 %v7739_v18  ;;  %v7821_v18 = vld [vmem:[%s9087_s27 + $0x710] ss:$8 sps:$4 sm:$0xff]  }
 0x137   : > { %5493 = vmatpush2.bf16.msra.mxu1 %v7742_v19  ;;  %5453 = vmatprep.subr.bf16.mxu0 %v7747_v20  ;;  %v7826_v19 = vld [vmem:[%s9087_s27 + $0x604] ss:$8 sps:$4 sm:$0xff]  }
 0x138   : > { %5494 = vmatprep.subr.bf16.mxu1 %v7750_v21  ;;  %v7829_v20 = vld [vmem:[%s9087_s27 + $0x704] ss:$8 sps:$4 sm:$0xff]   ;;  %v7824_v21 = vld [vmem:[%s9087_s27 + $0x600] ss:$8 sps:$4 sm:$0xff]  }
 0x13a   : > { %5454 = vmatpush2.bf16.msra.mxu0 %v7745_v22  ;;  %v7827_v22 = vld [vmem:[%s9087_s27 + $0x700] ss:$8 sps:$4 sm:$0xff]  }
 0x13b   : > { %5495 = vmatpush2.bf16.msra.mxu1 %v7748_v23  ;;  %5455 = vmatprep.subr.bf16.mxu0 %v7753_v24  ;;  %v7832_v23 = vld [vmem:[%s9087_s27 + $0x6f4] ss:$8 sps:$4 sm:$0xff]  }
 0x13c   : > { %5496 = vmatprep.subr.bf16.mxu1 %v7756_v25  ;;  %v7835_v24 = vld [vmem:[%s9087_s27 + $0x7f4] ss:$8 sps:$4 sm:$0xff]   ;;  %v7830_v25 = vld [vmem:[%s9087_s27 + $0x6f0] ss:$8 sps:$4 sm:$0xff]  }
 0x13e   : > { %5456 = vmatpush2.bf16.msra.mxu0 %v7751_v26  ;;  %v7833_v26 = vld [vmem:[%s9087_s27 + $0x7f0] ss:$8 sps:$4 sm:$0xff]  }
 0x13f   : > { %5497 = vmatpush2.bf16.msra.mxu1 %v7754_v27  ;;  %5457 = vmatprep.subr.bf16.mxu0 %v7759_v28  ;;  %v7838_v27 = vld [vmem:[%s9087_s27 + $0x6e4] ss:$8 sps:$4 sm:$0xff]  }
 0x140   : > { %5498 = vmatprep.subr.bf16.mxu1 %v7762_v29  ;;  %v7841_v28 = vld [vmem:[%s9087_s27 + $0x7e4] ss:$8 sps:$4 sm:$0xff]   ;;  %v7836_v29 = vld [vmem:[%s9087_s27 + $0x6e0] ss:$8 sps:$4 sm:$0xff]  }
 0x142   : > { %5458 = vmatpush2.bf16.msra.mxu0 %v7757_v30  ;;  %v7839_v30 = vld [vmem:[%s9087_s27 + $0x7e0] ss:$8 sps:$4 sm:$0xff]  }
 0x143   : > { %5499 = vmatpush2.bf16.msra.mxu1 %v7760_v31  ;;  %5459 = vmatprep.subr.bf16.mxu0 %v7765_v32  ;;  %v7844_v31 = vld [vmem:[%s9087_s27 + $0x6d4] ss:$8 sps:$4 sm:$0xff]  }
 0x144   : > { %5500 = vmatprep.subr.bf16.mxu1 %v7768_v33  ;;  %v7847_v32 = vld [vmem:[%s9087_s27 + $0x7d4] ss:$8 sps:$4 sm:$0xff]   ;;  %v7842_v33 = vld [vmem:[%s9087_s27 + $0x6d0] ss:$8 sps:$4 sm:$0xff]  }
 0x146   : > { %5460 = vmatpush2.bf16.msra.mxu0 %v7763_v34  ;;  %v7845_v34 = vld [vmem:[%s9087_s27 + $0x7d0] ss:$8 sps:$4 sm:$0xff]  }
 0x147   : > { %5501 = vmatpush2.bf16.msra.mxu1 %v7766_v35  ;;  %5461 = vmatprep.subr.bf16.mxu0 %v7771_v37  ;;  %v7850_v35 = vld [vmem:[%s9087_s27 + $0x6c4] ss:$8 sps:$4 sm:$0xff]   ;;  %v7848_v37 = vld [vmem:[%s9087_s27 + $0x6c0] ss:$8 sps:$4 sm:$0xff]  }
 0x148   : > { %5502 = vmatprep.subr.bf16.mxu1 %v7774_v38  ;;  %v7851_v38 = vld [vmem:[%s9087_s27 + $0x7c0] ss:$8 sps:$4 sm:$0xff]  }
 0x14a   : > { %5462 = vmatpush2.bf16.msra.mxu0 %v7769_v40  ;;  %v7859_v40 = vld [vmem:[%s9087_s27 + $0x7b4] ss:$8 sps:$4 sm:$0xff]  }
 0x14b   : > { %5503 = vmatpush2.bf16.msra.mxu1 %v7772_v41  ;;  %5463 = vmatprep.subr.bf16.mxu0 %v7777_v43  ;;  %v7854_v41 = vld [vmem:[%s9087_s27 + $0x6b0] ss:$8 sps:$4 sm:$0xff]  }
 0x14c   : > { %5504 = vmatprep.subr.bf16.mxu1 %v7780_v44  ;;  %v7857_v43 = vld [vmem:[%s9087_s27 + $0x7b0] ss:$8 sps:$4 sm:$0xff]   ;;  %v7862_v44 = vld [vmem:[%s9087_s27 + $0x6a4] ss:$8 sps:$4 sm:$0xff]  }
 0x14e   : > { %5464 = vmatpush2.bf16.msra.mxu0 %v7775_v48  ;;  %v7865_v48 = vld [vmem:[%s9087_s27 + $0x7a4] ss:$8 sps:$4 sm:$0xff]  }
 0x14f   : > { %5505 = vmatpush2.bf16.msra.mxu1 %v7778_v49  ;;  %5515 = vmatprep.subr.bf16.mxu0 %v7784_v50  ;;  %v7860_v49 = vld [vmem:[%s9087_s27 + $0x6a0] ss:$8 sps:$4 sm:$0xff]  }
 0x150   : > { %5556 = vmatprep.subr.bf16.mxu1 %v7787_v51  ;;  %v341_v50 = vld [vmem:[%s9080_s29 + $0x20] sm:$0xff] }
 0x151   : > { %5466 = vmatmul.mubr.bf16.vlgmr.msra.gmra.mxu0 %v621_v54  ;;  %v7863_v51 = vld [vmem:[%s9087_s27 + $0x7a0] ss:$8 sps:$4 sm:$0xff]   ;;  %v429_v54 = vcombine.high %v341_v50, %v341_v50 }
 0x152   : > { %5507 = vmatmul.mubr.bf16.vlgmr.msra.gmra.mxu1 %v623_v55  ;;  %5516 = vmatpush1.bf16.msra.mxu0 %v7782_v56  ;;  %v7866_v55 = vld [vmem:[%s9087_s27 + $0x690] ss:$8 sps:$4 sm:$0xff]  }
 0x153   : > { %5557 = vmatpush1.bf16.msra.mxu1 %v7785_v58  ;;  %5517 = vmatprep.subr.bf16.mxu0 %v7790_v59  ;;  %v7869_v56 = vld [vmem:[%s9087_s27 + $0x790] ss:$8 sps:$4 sm:$0xff]   ;;  %v7874_v58 = vld [vmem:[%s9087_s27 + $0x684] ss:$8 sps:$4 sm:$0xff]  }
 0x154   : > { %5558 = vmatprep.subr.bf16.mxu1 %v7793_v60  ;;  %5547 = vmatprep.mubr.bf16.mxu0 %v626_v61  ;;  %v7877_v59 = vld [vmem:[%s9087_s27 + $0x784] ss:$8 sps:$4 sm:$0xff]   ;;  %v9405_v60 = vrot.slane %v341_v50, %v9147_v57  ;;  %v9408_v61 = vrot.slane %v429_v54, %v9147_v57  ;;  %v7927_v50 = vld [vmem:[%s9087_s27 + $0x8f0] ss:$8 sps:$4 sm:$0xff]   ;;  %v7933_v54 = vld [vmem:[%s9087_s27 + $0x8e0] ss:$8 sps:$4 sm:$0xff]  }
 0x155   : > { %5588 = vmatprep.mubr.bf16.mxu1 %v628_v62  ;;  %v7872_v62 = vld [vmem:[%s9087_s27 + $0x680] ss:$8 sps:$4 sm:$0xff]  }
 0x156   : > { %5518 = vmatpush1.bf16.msra.mxu0 %v7788_v42  ;;  %v7875_v42 = vld [vmem:[%s9087_s27 + $0x780] ss:$8 sps:$4 sm:$0xff]  }
 0x157   : > { %5559 = vmatpush1.bf16.msra.mxu1 %v7791_v63  ;;  %5519 = vmatprep.subr.bf16.mxu0 %v7796_v46  ;;  %v7881_v63 = vld [vmem:[%s9087_s27 + $0x874] ss:$8 sps:$4 sm:$0xff]  }
 0x158   : > { %5560 = vmatprep.subr.bf16.mxu1 %v7799_v0  ;;  %v7884_v46 = vld [vmem:[%s9087_s27 + $0x974] ss:$8 sps:$4 sm:$0xff]   ;;  %v444_v0 = vcombine.high %v9405_v60, %v9405_v60 }
 0x15a   : > { %5520 = vmatpush1.bf16.msra.mxu0 %v7794_v1  ;;  %v445_v1 = vcombine.high %v9408_v61, %v9408_v61 }
 0x15b   : > { %5561 = vmatpush1.bf16.msra.mxu1 %v7797_v2  ;;  %5521 = vmatprep.subr.bf16.mxu0 %v7802_v3  ;;  %v625_v2 = vpack.c.bf16 %v9326_v45, %v9326_v45  ;;  %v627_v3 = vpack.c.bf16 %v9329_v47, %v9329_v47 }
 0x15c   : > { %5562 = vmatprep.subr.bf16.mxu1 %v7805_v4  ;;  %v7879_v4 = vld [vmem:[%s9087_s27 + $0x870] ss:$8 sps:$4 sm:$0xff]  }
 0x15e   : > { %5522 = vmatpush1.bf16.msra.mxu0 %v7800_v5  ;;  %v7882_v5 = vld [vmem:[%s9087_s27 + $0x970] ss:$8 sps:$4 sm:$0xff]  }
 0x15f   : > { %5563 = vmatpush1.bf16.msra.mxu1 %v7803_v6  ;;  %5523 = vmatprep.subr.bf16.mxu0 %v7808_v7  ;;  %v7887_v6 = vld [vmem:[%s9087_s27 + $0x864] ss:$8 sps:$4 sm:$0xff]  }
 0x160   : > { %5564 = vmatprep.subr.bf16.mxu1 %v7811_v8  ;;  %v7890_v7 = vld [vmem:[%s9087_s27 + $0x964] ss:$8 sps:$4 sm:$0xff]   ;;  %v630_v8 = vpack.c.bf16 %v444_v0, %v444_v0  ;;  %v7948_v0 = vld [vmem:[%s9087_s27 + $0x9c0] ss:$8 sps:$4 sm:$0xff]  }
 0x162   : > { %5524 = vmatpush1.bf16.msra.mxu0 %v7806_v9  ;;  %v632_v9 = vpack.c.bf16 %v445_v1, %v445_v1  ;;  %v7953_v1 = vld [vmem:[%s9087_s27 + $0x8b4] ss:$8 sps:$4 sm:$0xff]  }
 0x163   : > { %5565 = vmatpush1.bf16.msra.mxu1 %v7809_v10  ;;  %5525 = vmatprep.subr.bf16.mxu0 %v7814_v11  ;;  %v7885_v11 = vld [vmem:[%s9087_s27 + $0x860] ss:$8 sps:$4 sm:$0xff]  }
 0x164   : > { %5566 = vmatprep.subr.bf16.mxu1 %v7817_v12  ;;  %v7888_v12 = vld [vmem:[%s9087_s27 + $0x960] ss:$8 sps:$4 sm:$0xff]  }
 0x166   : > { %5526 = vmatpush1.bf16.msra.mxu0 %v7812_v13  ;;  %v7893_v13 = vld [vmem:[%s9087_s27 + $0x854] ss:$8 sps:$4 sm:$0xff]  }
 0x167   : > { %5567 = vmatpush1.bf16.msra.mxu1 %v7815_v14  ;;  %5527 = vmatprep.subr.bf16.mxu0 %v7820_v15 }
 0x168   : > { %5568 = vmatprep.subr.bf16.mxu1 %v7823_v16  ;;  %v7896_v16 = vld [vmem:[%s9087_s27 + $0x954] ss:$8 sps:$4 sm:$0xff]  }
 0x16a   : > { %5528 = vmatpush1.bf16.msra.mxu0 %v7818_v17 }
 0x16b   : > { %5569 = vmatpush1.bf16.msra.mxu1 %v7821_v18  ;;  %5529 = vmatprep.subr.bf16.mxu0 %v7826_v19  ;;  %v7891_v18 = vld [vmem:[%s9087_s27 + $0x850] ss:$8 sps:$4 sm:$0xff]  }
 0x16c   : > { %5570 = vmatprep.subr.bf16.mxu1 %v7829_v20 }
 0x16e   : > { %5530 = vmatpush1.bf16.msra.mxu0 %v7824_v21  ;;  %v7894_v21 = vld [vmem:[%s9087_s27 + $0x950] ss:$8 sps:$4 sm:$0xff]  }
 0x16f   : > { %5571 = vmatpush1.bf16.msra.mxu1 %v7827_v22  ;;  %5531 = vmatprep.subr.bf16.mxu0 %v7832_v23 }
 0x170   : > { %5572 = vmatprep.subr.bf16.mxu1 %v7835_v24  ;;  %v7899_v24 = vld [vmem:[%s9087_s27 + $0x844] ss:$8 sps:$4 sm:$0xff]  }
 0x172   : > { %5532 = vmatpush2.bf16.msra.mxu0 %v7830_v25  ;;  %v7902_v25 = vld [vmem:[%s9087_s27 + $0x944] ss:$8 sps:$4 sm:$0xff]  }
 0x173   : > { %5573 = vmatpush2.bf16.msra.mxu1 %v7833_v26  ;;  %5533 = vmatprep.subr.bf16.mxu0 %v7838_v27  ;;  %v7897_v26 = vld [vmem:[%s9087_s27 + $0x840] ss:$8 sps:$4 sm:$0xff]  }
 0x174   : > { %5574 = vmatprep.subr.bf16.mxu1 %v7841_v28  ;;  %v7900_v27 = vld [vmem:[%s9087_s27 + $0x940] ss:$8 sps:$4 sm:$0xff]   ;;  %v7905_v28 = vld [vmem:[%s9087_s27 + $0x834] ss:$8 sps:$4 sm:$0xff]  }
 0x176   : > { %5534 = vmatpush2.bf16.msra.mxu0 %v7836_v29  ;;  %v7908_v29 = vld [vmem:[%s9087_s27 + $0x934] ss:$8 sps:$4 sm:$0xff]  }
 0x177   : > { %5575 = vmatpush2.bf16.msra.mxu1 %v7839_v30  ;;  %5535 = vmatprep.subr.bf16.mxu0 %v7844_v31  ;;  %v7903_v30 = vld [vmem:[%s9087_s27 + $0x830] ss:$8 sps:$4 sm:$0xff]  }
 0x178   : > { %5576 = vmatprep.subr.bf16.mxu1 %v7847_v32  ;;  %v7906_v31 = vld [vmem:[%s9087_s27 + $0x930] ss:$8 sps:$4 sm:$0xff]   ;;  %v7911_v32 = vld [vmem:[%s9087_s27 + $0x824] ss:$8 sps:$4 sm:$0xff]  }
 0x17a   : > { %5536 = vmatpush2.bf16.msra.mxu0 %v7842_v33  ;;  %v7914_v33 = vld [vmem:[%s9087_s27 + $0x924] ss:$8 sps:$4 sm:$0xff]  }
 0x17b   : > { %5577 = vmatpush2.bf16.msra.mxu1 %v7845_v34  ;;  %5537 = vmatprep.subr.bf16.mxu0 %v7850_v35  ;;  %v7909_v34 = vld [vmem:[%s9087_s27 + $0x820] ss:$8 sps:$4 sm:$0xff]  }
 0x17c   : > { %5578 = vmatprep.subr.bf16.mxu1 %v7853_v36  ;;  %v7912_v35 = vld [vmem:[%s9087_s27 + $0x920] ss:$8 sps:$4 sm:$0xff]   ;;  %v7917_v36 = vld [vmem:[%s9087_s27 + $0x814] ss:$8 sps:$4 sm:$0xff]  }
 0x17e   : > { %5538 = vmatpush2.bf16.msra.mxu0 %v7848_v37  ;;  %v7920_v37 = vld [vmem:[%s9087_s27 + $0x914] ss:$8 sps:$4 sm:$0xff]  }
 0x17f   : > { %5579 = vmatpush2.bf16.msra.mxu1 %v7851_v38  ;;  %5539 = vmatprep.subr.bf16.mxu0 %v7856_v39  ;;  %v7915_v38 = vld [vmem:[%s9087_s27 + $0x810] ss:$8 sps:$4 sm:$0xff]  }
 0x180   : > { %5580 = vmatprep.subr.bf16.mxu1 %v7859_v40  ;;  %v7918_v39 = vld [vmem:[%s9087_s27 + $0x910] ss:$8 sps:$4 sm:$0xff]   ;;  %v7923_v40 = vld [vmem:[%s9087_s27 + $0x804] ss:$8 sps:$4 sm:$0xff]  }
 0x182   : > { %5540 = vmatpush2.bf16.msra.mxu0 %v7854_v41  ;;  %v7926_v41 = vld [vmem:[%s9087_s27 + $0x904] ss:$8 sps:$4 sm:$0xff]  }
 0x183   : > { %5581 = vmatpush2.bf16.msra.mxu1 %v7857_v43  ;;  %5541 = vmatprep.subr.bf16.mxu0 %v7862_v44  ;;  %v7921_v43 = vld [vmem:[%s9087_s27 + $0x800] ss:$8 sps:$4 sm:$0xff]  }
 0x184   : > { %5582 = vmatprep.subr.bf16.mxu1 %v7865_v48  ;;  %v7924_v44 = vld [vmem:[%s9087_s27 + $0x900] ss:$8 sps:$4 sm:$0xff]   ;;  %v7929_v48 = vld [vmem:[%s9087_s27 + $0x8f4] ss:$8 sps:$4 sm:$0xff]  }
 0x186   : > { %5542 = vmatpush2.bf16.msra.mxu0 %v7860_v49  ;;  %v7932_v49 = vld [vmem:[%s9087_s27 + $0x9f4] ss:$8 sps:$4 sm:$0xff]  }
 0x187   : > { %5583 = vmatpush2.bf16.msra.mxu1 %v7863_v51  ;;  %5543 = vmatprep.subr.bf16.mxu0 %v7868_v52  ;;  %v7930_v51 = vld [vmem:[%s9087_s27 + $0x9f0] ss:$8 sps:$4 sm:$0xff]   ;;  %v7935_v52 = vld [vmem:[%s9087_s27 + $0x8e4] ss:$8 sps:$4 sm:$0xff]  }
 0x188   : > { %5584 = vmatprep.subr.bf16.mxu1 %v7871_v53  ;;  %v7938_v53 = vld [vmem:[%s9087_s27 + $0x9e4] ss:$8 sps:$4 sm:$0xff]  }
 0x18a   : > { %5544 = vmatpush2.bf16.msra.mxu0 %v7866_v55  ;;  %v7936_v55 = vld [vmem:[%s9087_s27 + $0x9e0] ss:$8 sps:$4 sm:$0xff]  }
 0x18b   : > { %5585 = vmatpush2.bf16.msra.mxu1 %v7869_v56  ;;  %5545 = vmatprep.subr.bf16.mxu0 %v7874_v58  ;;  %v7941_v56 = vld [vmem:[%s9087_s27 + $0x8d4] ss:$8 sps:$4 sm:$0xff]  }
 0x18c   : > { %5586 = vmatprep.subr.bf16.mxu1 %v7877_v59  ;;  %v7944_v58 = vld [vmem:[%s9087_s27 + $0x9d4] ss:$8 sps:$4 sm:$0xff]   ;;  %v7939_v59 = vld [vmem:[%s9087_s27 + $0x8d0] ss:$8 sps:$4 sm:$0xff]  }
 0x18e   : > { %5546 = vmatpush2.bf16.msra.mxu0 %v7872_v62  ;;  %v7942_v62 = vld [vmem:[%s9087_s27 + $0x9d0] ss:$8 sps:$4 sm:$0xff]  }
 0x18f   : > { %5587 = vmatpush2.bf16.msra.mxu1 %v7875_v42  ;;  %5597 = vmatprep.subr.bf16.mxu0 %v7881_v63  ;;  %v7947_v42 = vld [vmem:[%s9087_s27 + $0x8c4] ss:$8 sps:$4 sm:$0xff]  }
 0x190   : > { %5638 = vmatprep.subr.bf16.mxu1 %v7884_v46  ;;  %v7950_v63 = vld [vmem:[%s9087_s27 + $0x9c4] ss:$8 sps:$4 sm:$0xff]   ;;  %v7945_v46 = vld [vmem:[%s9087_s27 + $0x8c0] ss:$8 sps:$4 sm:$0xff]  }
 0x191   : > { %v5303_v10 = vpop.f32.mrf.mxu0  ;;  %5548 = vmatmul.mubr.bf16.vlgmr.msra.gmra.mxu0 %v625_v2  ;;  %v7956_v2 = vld [vmem:[%s9087_s27 + $0x9b4] ss:$8 sps:$4 sm:$0xff]  }
 0x192   : > { %v5344_v45 = vpop.f32.mrf.mxu1  ;;  %5589 = vmatmul.mubr.bf16.vlgmr.msra.gmra.mxu1 %v627_v3  ;;  %5598 = vmatpush1.bf16.msra.mxu0 %v7879_v4  ;;  %v7951_v3 = vld [vmem:[%s9087_s27 + $0x8b0] ss:$8 sps:$4 sm:$0xff]  }
 0x193   : > { %v9427_v47 = vadd.f32 %v5344_v45, %v5303_v10  ;;  %5639 = vmatpush1.bf16.msra.mxu1 %v7882_v5  ;;  %v5305_v14 = vpop.f32.mrf.mxu0  ;;  %5599 = vmatprep.subr.bf16.mxu0 %v7887_v6  ;;  %v7954_v4 = vld [vmem:[%s9087_s27 + $0x9b0] ss:$8 sps:$4 sm:$0xff]   ;;  %v7959_v5 = vld [vmem:[%s9087_s27 + $0x8a4] ss:$8 sps:$4 sm:$0xff]   ;;  %v7965_v10 = vld [vmem:[%s9087_s27 + $0x894] ss:$8 sps:$4 sm:$0xff]  }
 0x194   : > { %v5346_v15 = vpop.f32.mrf.mxu1  ;;  %5640 = vmatprep.subr.bf16.mxu1 %v7890_v7  ;;  %5629 = vmatprep.mubr.bf16.mxu0 %v630_v8  ;;  %v7962_v6 = vld [vmem:[%s9087_s27 + $0x9a4] ss:$8 sps:$4 sm:$0xff]   ;;  %v7957_v8 = vld [vmem:[%s9087_s27 + $0x8a0] ss:$8 sps:$4 sm:$0xff]   ;;  %v7968_v45 = vld [vmem:[%s9087_s27 + $0x994] ss:$8 sps:$4 sm:$0xff]  }
 0x195   : > { %v9432_v17 = vadd.f32 %v5346_v15, %v5305_v14  ;;  %5670 = vmatprep.mubr.bf16.mxu1 %v632_v9  ;;  %v5307_v19 = vpop.f32.mrf.mxu0  ;;  %v342_v7 = vld [vmem:[%s9080_s29 + $0x28] sm:$0xff] }
 0x196   : > { %v5348_v20 = vpop.f32.mrf.mxu1  ;;  %5600 = vmatpush1.bf16.msra.mxu0 %v7885_v11  ;;  %v7960_v9 = vld [vmem:[%s9087_s27 + $0x9a0] ss:$8 sps:$4 sm:$0xff]   ;;  %v446_v11 = vcombine.high %v342_v7, %v342_v7  ;;  %v7971_v14 = vld [vmem:[%s9087_s27 + $0x884] ss:$8 sps:$4 sm:$0xff]  }
 0x197   : > { %5641 = vmatpush1.bf16.msra.mxu1 %v7888_v12  ;;  %v5308_v22 = vpop.f32.mrf.mxu0  ;;  %5601 = vmatprep.subr.bf16.mxu0 %v7893_v13  ;;  %v7963_v12 = vld [vmem:[%s9087_s27 + $0x890] ss:$8 sps:$4 sm:$0xff]   ;;  %v7974_v15 = vld [vmem:[%s9087_s27 + $0x984] ss:$8 sps:$4 sm:$0xff]   ;;  %v7969_v19 = vld [vmem:[%s9087_s27 + $0x880] ss:$8 sps:$4 sm:$0xff]  }
 0x198   : > { %v5349_v23 = vpop.f32.mrf.mxu1  ;;  %5642 = vmatprep.subr.bf16.mxu1 %v7896_v16  ;;  %v7966_v13 = vld [vmem:[%s9087_s27 + $0x990] ss:$8 sps:$4 sm:$0xff]   ;;  %v9488_v16 = vrot.slane %v342_v7, %v9147_v57  ;;  %v7972_v20 = vld [vmem:[%s9087_s27 + $0x980] ss:$8 sps:$4 sm:$0xff]   ;;  %v7981_v22 = vld [vmem:[%s9087_s27 + $0xb74] ss:$8 sps:$4 sm:$0xff]  }
 0x199   : > { %v7976_v23 = vld [vmem:[%s9087_s27 + $0xa70] ss:$8 sps:$4 sm:$0xff]   ;;  %v8021_v7 = vld [vmem:[%s9087_s27 + $0xb00] ss:$8 sps:$4 sm:$0xff]  }
 0x19a   : > { %5602 = vmatpush1.bf16.msra.mxu0 %v7891_v18  ;;  %v9491_v18 = vrot.slane %v446_v11, %v9147_v57  ;;  %v8032_v11 = vld [vmem:[%s9087_s27 + $0xae4] ss:$8 sps:$4 sm:$0xff]  }
 0x19b   : > { %5643 = vmatpush1.bf16.msra.mxu1 %v7894_v21  ;;  %5603 = vmatprep.subr.bf16.mxu0 %v7899_v24  ;;  %v7978_v21 = vld [vmem:[%s9087_s27 + $0xa74] ss:$8 sps:$4 sm:$0xff]   ;;  %v7979_v24 = vld [vmem:[%s9087_s27 + $0xb70] ss:$8 sps:$4 sm:$0xff]  }
 0x19c   : > { %5644 = vmatprep.subr.bf16.mxu1 %v7902_v25  ;;  %v461_v25 = vcombine.high %v9488_v16, %v9488_v16 }
 0x19e   : > { %5604 = vmatpush1.bf16.msra.mxu0 %v7897_v26  ;;  %v462_v26 = vcombine.high %v9491_v18, %v9491_v18 }
 0x19f   : > { %5645 = vmatpush1.bf16.msra.mxu1 %v7900_v27  ;;  %5605 = vmatprep.subr.bf16.mxu0 %v7905_v28  ;;  %v629_v27 = vpack.c.bf16 %v9405_v60, %v9405_v60  ;;  %v631_v28 = vpack.c.bf16 %v9408_v61, %v9408_v61 }
 0x1a0   : > { %5646 = vmatprep.subr.bf16.mxu1 %v7908_v29  ;;  %v7984_v29 = vld [vmem:[%s9087_s27 + $0xa64] ss:$8 sps:$4 sm:$0xff]  }
 0x1a2   : > { %5606 = vmatpush1.bf16.msra.mxu0 %v7903_v30  ;;  %v7987_v30 = vld [vmem:[%s9087_s27 + $0xb64] ss:$8 sps:$4 sm:$0xff]  }
 0x1a3   : > { %5647 = vmatpush1.bf16.msra.mxu1 %v7906_v31  ;;  %5607 = vmatprep.subr.bf16.mxu0 %v7911_v32  ;;  %v7982_v31 = vld [vmem:[%s9087_s27 + $0xa60] ss:$8 sps:$4 sm:$0xff]  }
 0x1a4   : > { %5648 = vmatprep.subr.bf16.mxu1 %v7914_v33  ;;  %v7985_v32 = vld [vmem:[%s9087_s27 + $0xb60] ss:$8 sps:$4 sm:$0xff]   ;;  %v634_v33 = vpack.c.bf16 %v461_v25, %v461_v25 }
 0x1a5   : > { %v8045_v25 = vld [vmem:[%s9087_s27 + $0xbc0] ss:$8 sps:$4 sm:$0xff]  }
 0x1a6   : > { %5608 = vmatpush1.bf16.msra.mxu0 %v7909_v34  ;;  %v636_v34 = vpack.c.bf16 %v462_v26, %v462_v26  ;;  %v8050_v26 = vld [vmem:[%s9087_s27 + $0xab4] ss:$8 sps:$4 sm:$0xff]  }
 0x1a7   : > { %5649 = vmatpush1.bf16.msra.mxu1 %v7912_v35  ;;  %5609 = vmatprep.subr.bf16.mxu0 %v7917_v36 }
 0x1a8   : > { %5650 = vmatprep.subr.bf16.mxu1 %v7920_v37 }
 0x1aa   : > { %5610 = vmatpush1.bf16.msra.mxu0 %v7915_v38  ;;  %v7990_v38 = vld [vmem:[%s9087_s27 + $0xa54] ss:$8 sps:$4 sm:$0xff]  }
 0x1ab   : > { %5651 = vmatpush1.bf16.msra.mxu1 %v7918_v39  ;;  %5611 = vmatprep.subr.bf16.mxu0 %v7923_v40  ;;  %v7993_v39 = vld [vmem:[%s9087_s27 + $0xb54] ss:$8 sps:$4 sm:$0xff]  }
 0x1ac   : > { %5652 = vmatprep.subr.bf16.mxu1 %v7926_v41 }
 0x1ae   : > { %5612 = vmatpush1.bf16.msra.mxu0 %v7921_v43  ;;  %v7988_v43 = vld [vmem:[%s9087_s27 + $0xa50] ss:$8 sps:$4 sm:$0xff]  }
 0x1af   : > { %5653 = vmatpush1.bf16.msra.mxu1 %v7924_v44  ;;  %5613 = vmatprep.subr.bf16.mxu0 %v7929_v48  ;;  %v7991_v44 = vld [vmem:[%s9087_s27 + $0xb50] ss:$8 sps:$4 sm:$0xff]  }
 0x1b0   : > { %5654 = vmatprep.subr.bf16.mxu1 %v7932_v49 }
 0x1b2   : > { %5614 = vmatpush2.bf16.msra.mxu0 %v7927_v50 }
 0x1b3   : > { %5655 = vmatpush2.bf16.msra.mxu1 %v7930_v51  ;;  %5615 = vmatprep.subr.bf16.mxu0 %v7935_v52  ;;  %v7999_v52 = vld [vmem:[%s9087_s27 + $0xb44] ss:$8 sps:$4 sm:$0xff]  }
 0x1b4   : > { %5656 = vmatprep.subr.bf16.mxu1 %v7938_v53  ;;  %v7994_v53 = vld [vmem:[%s9087_s27 + $0xa40] ss:$8 sps:$4 sm:$0xff]  }
 0x1b6   : > { %5616 = vmatpush2.bf16.msra.mxu0 %v7933_v54  ;;  %v7997_v54 = vld [vmem:[%s9087_s27 + $0xb40] ss:$8 sps:$4 sm:$0xff]  }
 0x1b7   : > { %5657 = vmatpush2.bf16.msra.mxu1 %v7936_v55  ;;  %5617 = vmatprep.subr.bf16.mxu0 %v7941_v56  ;;  %v8002_v55 = vld [vmem:[%s9087_s27 + $0xa34] ss:$8 sps:$4 sm:$0xff]  }
 0x1b8   : > { %5658 = vmatprep.subr.bf16.mxu1 %v7944_v58  ;;  %v8005_v56 = vld [vmem:[%s9087_s27 + $0xb34] ss:$8 sps:$4 sm:$0xff]   ;;  %v8000_v58 = vld [vmem:[%s9087_s27 + $0xa30] ss:$8 sps:$4 sm:$0xff]  }
 0x1ba   : > { %5618 = vmatpush2.bf16.msra.mxu0 %v7939_v59  ;;  %v8003_v59 = vld [vmem:[%s9087_s27 + $0xb30] ss:$8 sps:$4 sm:$0xff]  }
 0x1bb   : > { %5659 = vmatpush2.bf16.msra.mxu1 %v7942_v62  ;;  %5619 = vmatprep.subr.bf16.mxu0 %v7947_v42  ;;  %v8008_v62 = vld [vmem:[%s9087_s27 + $0xa24] ss:$8 sps:$4 sm:$0xff]  }
 0x1bc   : > { %5660 = vmatprep.subr.bf16.mxu1 %v7950_v63  ;;  %v8011_v42 = vld [vmem:[%s9087_s27 + $0xb24] ss:$8 sps:$4 sm:$0xff]   ;;  %v8006_v63 = vld [vmem:[%s9087_s27 + $0xa20] ss:$8 sps:$4 sm:$0xff]  }
 0x1be   : > { %5620 = vmatpush2.bf16.msra.mxu0 %v7945_v46  ;;  %v8009_v46 = vld [vmem:[%s9087_s27 + $0xb20] ss:$8 sps:$4 sm:$0xff]  }
 0x1bf   : > { %5661 = vmatpush2.bf16.msra.mxu1 %v7948_v0  ;;  %5621 = vmatprep.subr.bf16.mxu0 %v7953_v1  ;;  %v8014_v0 = vld [vmem:[%s9087_s27 + $0xa14] ss:$8 sps:$4 sm:$0xff]  }
 0x1c0   : > { %5662 = vmatprep.subr.bf16.mxu1 %v7956_v2  ;;  %v8017_v1 = vld [vmem:[%s9087_s27 + $0xb14] ss:$8 sps:$4 sm:$0xff]   ;;  %v8012_v2 = vld [vmem:[%s9087_s27 + $0xa10] ss:$8 sps:$4 sm:$0xff]  }
 0x1c2   : > { %5622 = vmatpush2.bf16.msra.mxu0 %v7951_v3  ;;  %v8015_v3 = vld [vmem:[%s9087_s27 + $0xb10] ss:$8 sps:$4 sm:$0xff]  }
 0x1c3   : > { %5663 = vmatpush2.bf16.msra.mxu1 %v7954_v4  ;;  %5623 = vmatprep.subr.bf16.mxu0 %v7959_v5  ;;  %v8020_v4 = vld [vmem:[%s9087_s27 + $0xa04] ss:$8 sps:$4 sm:$0xff]  }
 0x1c4   : > { %5664 = vmatprep.subr.bf16.mxu1 %v7962_v6  ;;  %v8023_v5 = vld [vmem:[%s9087_s27 + $0xb04] ss:$8 sps:$4 sm:$0xff]   ;;  %v8018_v6 = vld [vmem:[%s9087_s27 + $0xa00] ss:$8 sps:$4 sm:$0xff]  }
 0x1c6   : > { %5624 = vmatpush2.bf16.msra.mxu0 %v7957_v8  ;;  %v8026_v8 = vld [vmem:[%s9087_s27 + $0xaf4] ss:$8 sps:$4 sm:$0xff]  }
 0x1c7   : > { %5665 = vmatpush2.bf16.msra.mxu1 %v7960_v9  ;;  %5625 = vmatprep.subr.bf16.mxu0 %v7965_v10  ;;  %v8029_v9 = vld [vmem:[%s9087_s27 + $0xbf4] ss:$8 sps:$4 sm:$0xff]   ;;  %v8024_v10 = vld [vmem:[%s9087_s27 + $0xaf0] ss:$8 sps:$4 sm:$0xff]  }
 0x1c8   : > { %5666 = vmatprep.subr.bf16.mxu1 %v7968_v45  ;;  %v8027_v45 = vld [vmem:[%s9087_s27 + $0xbf0] ss:$8 sps:$4 sm:$0xff]  }
 0x1ca   : > { %5626 = vmatpush2.bf16.msra.mxu0 %v7963_v12  ;;  %v8035_v12 = vld [vmem:[%s9087_s27 + $0xbe4] ss:$8 sps:$4 sm:$0xff]  }
 0x1cb   : > { %5667 = vmatpush2.bf16.msra.mxu1 %v7966_v13  ;;  %5627 = vmatprep.subr.bf16.mxu0 %v7971_v14  ;;  %v8030_v13 = vld [vmem:[%s9087_s27 + $0xae0] ss:$8 sps:$4 sm:$0xff]  }
 0x1cc   : > { %5668 = vmatprep.subr.bf16.mxu1 %v7974_v15  ;;  %v8033_v14 = vld [vmem:[%s9087_s27 + $0xbe0] ss:$8 sps:$4 sm:$0xff]   ;;  %v8038_v15 = vld [vmem:[%s9087_s27 + $0xad4] ss:$8 sps:$4 sm:$0xff]  }
 0x1ce   : > { %5628 = vmatpush2.bf16.msra.mxu0 %v7969_v19  ;;  %v8041_v19 = vld [vmem:[%s9087_s27 + $0xbd4] ss:$8 sps:$4 sm:$0xff]  }
 0x1cf   : > { %5669 = vmatpush2.bf16.msra.mxu1 %v7972_v20  ;;  %5679 = vmatprep.subr.bf16.mxu0 %v7978_v21  ;;  %v8036_v20 = vld [vmem:[%s9087_s27 + $0xad0] ss:$8 sps:$4 sm:$0xff]  }
 0x1d0   : > { %5720 = vmatprep.subr.bf16.mxu1 %v7981_v22  ;;  %v8039_v21 = vld [vmem:[%s9087_s27 + $0xbd0] ss:$8 sps:$4 sm:$0xff]   ;;  %v8044_v22 = vld [vmem:[%s9087_s27 + $0xac4] ss:$8 sps:$4 sm:$0xff]  }
 0x1d1   : > { %v5385_v35 = vpop.f32.mrf.mxu0  ;;  %5630 = vmatmul.mubr.bf16.vlgmr.msra.gmra.mxu0 %v629_v27  ;;  %v8053_v27 = vld [vmem:[%s9087_s27 + $0xbb4] ss:$8 sps:$4 sm:$0xff]  }
 0x1d2   : > { %v5426_v36 = vpop.f32.mrf.mxu1  ;;  %5671 = vmatmul.mubr.bf16.vlgmr.msra.gmra.mxu1 %v631_v28  ;;  %v5386_v60 = vadd.f32 %v5385_v35, %v9427_v47  ;;  %5680 = vmatpush1.bf16.msra.mxu0 %v7976_v23  ;;  %v8047_v23 = vld [vmem:[%s9087_s27 + $0xbc4] ss:$8 sps:$4 sm:$0xff]   ;;  %v8048_v28 = vld [vmem:[%s9087_s27 + $0xab0] ss:$8 sps:$4 sm:$0xff]   ;;  %v8062_v35 = vld [vmem:[%s9087_s27 + $0xa94] ss:$8 sps:$4 sm:$0xff]  }
 0x1d3   : > { %5721 = vmatpush1.bf16.msra.mxu1 %v7979_v24  ;;  %v5387_v61 = vpop.f32.mrf.mxu0  ;;  %5681 = vmatprep.subr.bf16.mxu0 %v7984_v29  ;;  %v8042_v24 = vld [vmem:[%s9087_s27 + $0xac0] ss:$8 sps:$4 sm:$0xff]   ;;  %v8051_v29 = vld [vmem:[%s9087_s27 + $0xbb0] ss:$8 sps:$4 sm:$0xff]  }
 0x1d4   : > { %v5428_v37 = vpop.f32.mrf.mxu1  ;;  %5722 = vmatprep.subr.bf16.mxu1 %v7987_v30  ;;  %v9514_v40 = vadd.f32 %v5426_v36, %v5386_v60  ;;  %v5388_v41 = vadd.f32 %v5387_v61, %v9432_v17  ;;  %5711 = vmatprep.mubr.bf16.mxu0 %v634_v33  ;;  %v7996_v17 = vld [vmem:[%s9087_s27 + $0xa44] ss:$8 sps:$4 sm:$0xff]   ;;  %v8054_v33 = vld [vmem:[%s9087_s27 + $0xaa0] ss:$8 sps:$4 sm:$0xff]   ;;  %v8065_v36 = vld [vmem:[%s9087_s27 + $0xb94] ss:$8 sps:$4 sm:$0xff]  }
 0x1d5   : > { %5752 = vmatprep.mubr.bf16.mxu1 %v636_v34  ;;  %v5389_v47 = vpop.f32.mrf.mxu0  ;;  %v8056_v30 = vld [vmem:[%s9087_s27 + $0xaa4] ss:$8 sps:$4 sm:$0xff]   ;;  %v8057_v34 = vld [vmem:[%s9087_s27 + $0xba0] ss:$8 sps:$4 sm:$0xff]   ;;  %v8060_v61 = vld [vmem:[%s9087_s27 + $0xa90] ss:$8 sps:$4 sm:$0xff]  }
 0x1d6   : > { %v5430_v48 = vpop.f32.mrf.mxu1  ;;  %v9519_v49 = vadd.f32 %v5428_v37, %v5388_v41  ;;  %5682 = vmatpush1.bf16.msra.mxu0 %v7982_v31  ;;  %v8059_v31 = vld [vmem:[%s9087_s27 + $0xba4] ss:$8 sps:$4 sm:$0xff]   ;;  %v8063_v37 = vld [vmem:[%s9087_s27 + $0xb90] ss:$8 sps:$4 sm:$0xff]   ;;  %v8069_v47 = vld [vmem:[%s9087_s27 + $0xb80] ss:$8 sps:$4 sm:$0xff]  }
 0x1d7   : > { %5723 = vmatpush1.bf16.msra.mxu1 %v7985_v32  ;;  %v5390_v50 = vpop.f32.mrf.mxu0  ;;  %5683 = vmatprep.subr.bf16.mxu0 %v7990_v38  ;;  %v343_v32 = vld [vmem:[%s9080_s29 + $0x30] sm:$0xff]  ;;  %v8068_v38 = vld [vmem:[%s9087_s27 + $0xa84] ss:$8 sps:$4 sm:$0xff]  }
 0x1d8   : > { %v5431_v51 = vpop.f32.mrf.mxu1  ;;  %5724 = vmatprep.subr.bf16.mxu1 %v7993_v39  ;;  %v463_v60 = vcombine.high %v343_v32, %v343_v32  ;;  %v8071_v39 = vld [vmem:[%s9087_s27 + $0xb84] ss:$8 sps:$4 sm:$0xff]   ;;  %v9573_v41 = vrot.slane %v343_v32, %v9147_v57  ;;  %v8075_v48 = vld [vmem:[%s9087_s27 + $0xc74] ss:$8 sps:$4 sm:$0xff]   ;;  %v8118_v32 = vld [vmem:[%s9087_s27 + $0xd00] ss:$8 sps:$4 sm:$0xff]  }
 0x1d9   : > { %v8078_v50 = vld [vmem:[%s9087_s27 + $0xd74] ss:$8 sps:$4 sm:$0xff]   ;;  %v8073_v51 = vld [vmem:[%s9087_s27 + $0xc70] ss:$8 sps:$4 sm:$0xff]  }
 0x1da   : > { %5684 = vmatpush1.bf16.msra.mxu0 %v7988_v43  ;;  %v9576_v43 = vrot.slane %v463_v60, %v9147_v57  ;;  %v8129_v60 = vld [vmem:[%s9087_s27 + $0xce4] ss:$8 sps:$4 sm:$0xff]  }
 0x1db   : > { %5725 = vmatpush1.bf16.msra.mxu1 %v7991_v44  ;;  %5685 = vmatprep.subr.bf16.mxu0 %v7996_v17  ;;  %v8066_v44 = vld [vmem:[%s9087_s27 + $0xa80] ss:$8 sps:$4 sm:$0xff]   ;;  %v8076_v17 = vld [vmem:[%s9087_s27 + $0xd70] ss:$8 sps:$4 sm:$0xff]  }
 0x1dc   : > { %5726 = vmatprep.subr.bf16.mxu1 %v7999_v52  ;;  %v478_v52 = vcombine.high %v9573_v41, %v9573_v41 }
 0x1de   : > { %5686 = vmatpush1.bf16.msra.mxu0 %v7994_v53  ;;  %v479_v53 = vcombine.high %v9576_v43, %v9576_v43 }
 0x1df   : > { %5727 = vmatpush1.bf16.msra.mxu1 %v7997_v54  ;;  %5687 = vmatprep.subr.bf16.mxu0 %v8002_v55  ;;  %v633_v54 = vpack.c.bf16 %v9488_v16, %v9488_v16  ;;  %v635_v55 = vpack.c.bf16 %v9491_v18, %v9491_v18 }
 0x1e0   : > { %5728 = vmatprep.subr.bf16.mxu1 %v8005_v56  ;;  %v8081_v56 = vld [vmem:[%s9087_s27 + $0xc64] ss:$8 sps:$4 sm:$0xff]  }
 0x1e2   : > { %5688 = vmatpush1.bf16.msra.mxu0 %v8000_v58  ;;  %v8084_v58 = vld [vmem:[%s9087_s27 + $0xd64] ss:$8 sps:$4 sm:$0xff]  }
 0x1e3   : > { %5729 = vmatpush1.bf16.msra.mxu1 %v8003_v59  ;;  %5689 = vmatprep.subr.bf16.mxu0 %v8008_v62  ;;  %v8079_v59 = vld [vmem:[%s9087_s27 + $0xc60] ss:$8 sps:$4 sm:$0xff]  }
 0x1e4   : > { %5730 = vmatprep.subr.bf16.mxu1 %v8011_v42  ;;  %v8082_v62 = vld [vmem:[%s9087_s27 + $0xd60] ss:$8 sps:$4 sm:$0xff]   ;;  %v638_v42 = vpack.c.bf16 %v478_v52, %v478_v52 }
 0x1e5   : > { %v8142_v52 = vld [vmem:[%s9087_s27 + $0xdc0] ss:$8 sps:$4 sm:$0xff]  }
 0x1e6   : > { %5690 = vmatpush1.bf16.msra.mxu0 %v8006_v63  ;;  %v640_v63 = vpack.c.bf16 %v479_v53, %v479_v53  ;;  %v8147_v53 = vld [vmem:[%s9087_s27 + $0xcb4] ss:$8 sps:$4 sm:$0xff]  }
 0x1e7   : > { %5731 = vmatpush1.bf16.msra.mxu1 %v8009_v46  ;;  %5691 = vmatprep.subr.bf16.mxu0 %v8014_v0 }
 0x1e8   : > { %5732 = vmatprep.subr.bf16.mxu1 %v8017_v1 }
 0x1ea   : > { %5692 = vmatpush1.bf16.msra.mxu0 %v8012_v2  ;;  %v8087_v2 = vld [vmem:[%s9087_s27 + $0xc54] ss:$8 sps:$4 sm:$0xff]  }
 0x1eb   : > { %5733 = vmatpush1.bf16.msra.mxu1 %v8015_v3  ;;  %5693 = vmatprep.subr.bf16.mxu0 %v8020_v4  ;;  %v8090_v3 = vld [vmem:[%s9087_s27 + $0xd54] ss:$8 sps:$4 sm:$0xff]  }
 0x1ec   : > { %5734 = vmatprep.subr.bf16.mxu1 %v8023_v5 }
 0x1ee   : > { %5694 = vmatpush1.bf16.msra.mxu0 %v8018_v6  ;;  %v8085_v6 = vld [vmem:[%s9087_s27 + $0xc50] ss:$8 sps:$4 sm:$0xff]  }
 0x1ef   : > { %5735 = vmatpush1.bf16.msra.mxu1 %v8021_v7  ;;  %5695 = vmatprep.subr.bf16.mxu0 %v8026_v8  ;;  %v8088_v7 = vld [vmem:[%s9087_s27 + $0xd50] ss:$8 sps:$4 sm:$0xff]  }
 0x1f0   : > { %5736 = vmatprep.subr.bf16.mxu1 %v8029_v9 }
 0x1f2   : > { %5696 = vmatpush2.bf16.msra.mxu0 %v8024_v10 }
 0x1f3   : > { %5737 = vmatpush2.bf16.msra.mxu1 %v8027_v45  ;;  %5697 = vmatprep.subr.bf16.mxu0 %v8032_v11  ;;  %v8096_v11 = vld [vmem:[%s9087_s27 + $0xd44] ss:$8 sps:$4 sm:$0xff]  }
 0x1f4   : > { %5738 = vmatprep.subr.bf16.mxu1 %v8035_v12  ;;  %v8091_v12 = vld [vmem:[%s9087_s27 + $0xc40] ss:$8 sps:$4 sm:$0xff]  }
 0x1f6   : > { %5698 = vmatpush2.bf16.msra.mxu0 %v8030_v13  ;;  %v8094_v13 = vld [vmem:[%s9087_s27 + $0xd40] ss:$8 sps:$4 sm:$0xff]  }
 0x1f7   : > { %5739 = vmatpush2.bf16.msra.mxu1 %v8033_v14  ;;  %5699 = vmatprep.subr.bf16.mxu0 %v8038_v15  ;;  %v8099_v14 = vld [vmem:[%s9087_s27 + $0xc34] ss:$8 sps:$4 sm:$0xff]  }
 0x1f8   : > { %5740 = vmatprep.subr.bf16.mxu1 %v8041_v19  ;;  %v8102_v15 = vld [vmem:[%s9087_s27 + $0xd34] ss:$8 sps:$4 sm:$0xff]   ;;  %v8097_v19 = vld [vmem:[%s9087_s27 + $0xc30] ss:$8 sps:$4 sm:$0xff]  }
 0x1fa   : > { %5700 = vmatpush2.bf16.msra.mxu0 %v8036_v20  ;;  %v8100_v20 = vld [vmem:[%s9087_s27 + $0xd30] ss:$8 sps:$4 sm:$0xff]  }
 0x1fb   : > { %5741 = vmatpush2.bf16.msra.mxu1 %v8039_v21  ;;  %5701 = vmatprep.subr.bf16.mxu0 %v8044_v22  ;;  %v8105_v21 = vld [vmem:[%s9087_s27 + $0xc24] ss:$8 sps:$4 sm:$0xff]  }
 0x1fc   : > { %5742 = vmatprep.subr.bf16.mxu1 %v8047_v23  ;;  %v8108_v22 = vld [vmem:[%s9087_s27 + $0xd24] ss:$8 sps:$4 sm:$0xff]   ;;  %v8103_v23 = vld [vmem:[%s9087_s27 + $0xc20] ss:$8 sps:$4 sm:$0xff]  }
 0x1fe   : > { %5702 = vmatpush2.bf16.msra.mxu0 %v8042_v24  ;;  %v8106_v24 = vld [vmem:[%s9087_s27 + $0xd20] ss:$8 sps:$4 sm:$0xff]  }
 0x1ff   : > { %5743 = vmatpush2.bf16.msra.mxu1 %v8045_v25  ;;  %5703 = vmatprep.subr.bf16.mxu0 %v8050_v26  ;;  %v8111_v25 = vld [vmem:[%s9087_s27 + $0xc14] ss:$8 sps:$4 sm:$0xff]  }
 0x200   : > { %5744 = vmatprep.subr.bf16.mxu1 %v8053_v27  ;;  %v8114_v26 = vld [vmem:[%s9087_s27 + $0xd14] ss:$8 sps:$4 sm:$0xff]   ;;  %v8109_v27 = vld [vmem:[%s9087_s27 + $0xc10] ss:$8 sps:$4 sm:$0xff]  }
 0x202   : > { %5704 = vmatpush2.bf16.msra.mxu0 %v8048_v28  ;;  %v8112_v28 = vld [vmem:[%s9087_s27 + $0xd10] ss:$8 sps:$4 sm:$0xff]  }
 0x203   : > { %5745 = vmatpush2.bf16.msra.mxu1 %v8051_v29  ;;  %5705 = vmatprep.subr.bf16.mxu0 %v8056_v30  ;;  %v8117_v29 = vld [vmem:[%s9087_s27 + $0xc04] ss:$8 sps:$4 sm:$0xff]  }
 0x204   : > { %5746 = vmatprep.subr.bf16.mxu1 %v8059_v31  ;;  %v8120_v30 = vld [vmem:[%s9087_s27 + $0xd04] ss:$8 sps:$4 sm:$0xff]   ;;  %v8115_v31 = vld [vmem:[%s9087_s27 + $0xc00] ss:$8 sps:$4 sm:$0xff]  }
 0x206   : > { %5706 = vmatpush2.bf16.msra.mxu0 %v8054_v33  ;;  %v8123_v33 = vld [vmem:[%s9087_s27 + $0xcf4] ss:$8 sps:$4 sm:$0xff]  }
 0x207   : > { %5747 = vmatpush2.bf16.msra.mxu1 %v8057_v34  ;;  %5707 = vmatprep.subr.bf16.mxu0 %v8062_v35  ;;  %v8126_v34 = vld [vmem:[%s9087_s27 + $0xdf4] ss:$8 sps:$4 sm:$0xff]   ;;  %v8121_v35 = vld [vmem:[%s9087_s27 + $0xcf0] ss:$8 sps:$4 sm:$0xff]  }
 0x208   : > { %5748 = vmatprep.subr.bf16.mxu1 %v8065_v36  ;;  %v8124_v36 = vld [vmem:[%s9087_s27 + $0xdf0] ss:$8 sps:$4 sm:$0xff]  }
 0x20a   : > { %5708 = vmatpush2.bf16.msra.mxu0 %v8060_v61  ;;  %v8132_v61 = vld [vmem:[%s9087_s27 + $0xde4] ss:$8 sps:$4 sm:$0xff]  }
 0x20b   : > { %5749 = vmatpush2.bf16.msra.mxu1 %v8063_v37  ;;  %5709 = vmatprep.subr.bf16.mxu0 %v8068_v38  ;;  %v8127_v37 = vld [vmem:[%s9087_s27 + $0xce0] ss:$8 sps:$4 sm:$0xff]  }
 0x20c   : > { %5750 = vmatprep.subr.bf16.mxu1 %v8071_v39  ;;  %v8130_v38 = vld [vmem:[%s9087_s27 + $0xde0] ss:$8 sps:$4 sm:$0xff]   ;;  %v8135_v39 = vld [vmem:[%s9087_s27 + $0xcd4] ss:$8 sps:$4 sm:$0xff]  }
 0x20e   : > { %5710 = vmatpush2.bf16.msra.mxu0 %v8066_v44  ;;  %v8138_v44 = vld [vmem:[%s9087_s27 + $0xdd4] ss:$8 sps:$4 sm:$0xff]  }
 0x20f   : > { %5751 = vmatpush2.bf16.msra.mxu1 %v8069_v47  ;;  %5761 = vmatprep.subr.bf16.mxu0 %v8075_v48  ;;  %v8133_v47 = vld [vmem:[%s9087_s27 + $0xcd0] ss:$8 sps:$4 sm:$0xff]  }
 0x210   : > { %5802 = vmatprep.subr.bf16.mxu1 %v8078_v50  ;;  %v8136_v48 = vld [vmem:[%s9087_s27 + $0xdd0] ss:$8 sps:$4 sm:$0xff]   ;;  %v8141_v50 = vld [vmem:[%s9087_s27 + $0xcc4] ss:$8 sps:$4 sm:$0xff]  }
 0x211   : > { %v5467_v46 = vpop.f32.mrf.mxu0  ;;  %5712 = vmatmul.mubr.bf16.vlgmr.msra.gmra.mxu0 %v633_v54  ;;  %v8150_v54 = vld [vmem:[%s9087_s27 + $0xdb4] ss:$8 sps:$4 sm:$0xff]  }
 0x212   : > { %v5508_v0 = vpop.f32.mrf.mxu1  ;;  %5753 = vmatmul.mubr.bf16.vlgmr.msra.gmra.mxu1 %v635_v55  ;;  %v5468_v16 = vadd.f32 %v5467_v46, %v9514_v40  ;;  %5762 = vmatpush1.bf16.msra.mxu0 %v8073_v51  ;;  %v8144_v51 = vld [vmem:[%s9087_s27 + $0xdc4] ss:$8 sps:$4 sm:$0xff]   ;;  %v8145_v55 = vld [vmem:[%s9087_s27 + $0xcb0] ss:$8 sps:$4 sm:$0xff]   ;;  %v8159_v46 = vld [vmem:[%s9087_s27 + $0xc94] ss:$8 sps:$4 sm:$0xff]  }
 0x213   : > { %5803 = vmatpush1.bf16.msra.mxu1 %v8076_v17  ;;  %v5469_v18 = vpop.f32.mrf.mxu0  ;;  %5763 = vmatprep.subr.bf16.mxu0 %v8081_v56  ;;  %v8139_v17 = vld [vmem:[%s9087_s27 + $0xcc0] ss:$8 sps:$4 sm:$0xff]   ;;  %v8148_v56 = vld [vmem:[%s9087_s27 + $0xdb0] ss:$8 sps:$4 sm:$0xff]  }
 0x214   : > { %v5510_v1 = vpop.f32.mrf.mxu1  ;;  %5804 = vmatprep.subr.bf16.mxu1 %v8084_v58  ;;  %v9599_v4 = vadd.f32 %v5508_v0, %v5468_v16  ;;  %v5470_v5 = vadd.f32 %v5469_v18, %v9519_v49  ;;  %5793 = vmatprep.mubr.bf16.mxu0 %v638_v42  ;;  %v8093_v49 = vld [vmem:[%s9087_s27 + $0xc44] ss:$8 sps:$4 sm:$0xff]   ;;  %v8151_v42 = vld [vmem:[%s9087_s27 + $0xca0] ss:$8 sps:$4 sm:$0xff]   ;;  %v8162_v0 = vld [vmem:[%s9087_s27 + $0xd94] ss:$8 sps:$4 sm:$0xff]  }
 0x215   : > { %5834 = vmatprep.mubr.bf16.mxu1 %v640_v63  ;;  %v5471_v40 = vpop.f32.mrf.mxu0  ;;  %v8153_v58 = vld [vmem:[%s9087_s27 + $0xca4] ss:$8 sps:$4 sm:$0xff]   ;;  %v8154_v63 = vld [vmem:[%s9087_s27 + $0xda0] ss:$8 sps:$4 sm:$0xff]   ;;  %v8157_v18 = vld [vmem:[%s9087_s27 + $0xc90] ss:$8 sps:$4 sm:$0xff]  }
 0x216   : > { %v5512_v8 = vpop.f32.mrf.mxu1  ;;  %v9604_v9 = vadd.f32 %v5510_v1, %v5470_v5  ;;  %5764 = vmatpush1.bf16.msra.mxu0 %v8079_v59  ;;  %v8156_v59 = vld [vmem:[%s9087_s27 + $0xda4] ss:$8 sps:$4 sm:$0xff]   ;;  %v8160_v1 = vld [vmem:[%s9087_s27 + $0xd90] ss:$8 sps:$4 sm:$0xff]   ;;  %v8166_v40 = vld [vmem:[%s9087_s27 + $0xd80] ss:$8 sps:$4 sm:$0xff]  }
 0x217   : > { %5805 = vmatpush1.bf16.msra.mxu1 %v8082_v62  ;;  %v5472_v10 = vpop.f32.mrf.mxu0  ;;  %5765 = vmatprep.subr.bf16.mxu0 %v8087_v2  ;;  %v344_v62 = vld [vmem:[%s9080_s29 + $0x38] sm:$0xff]  ;;  %v8165_v2 = vld [vmem:[%s9087_s27 + $0xc84] ss:$8 sps:$4 sm:$0xff]  }
 0x218   : > { %v5513_v45 = vpop.f32.mrf.mxu1  ;;  %5806 = vmatprep.subr.bf16.mxu1 %v8090_v3  ;;  %v480_v16 = vcombine.high %v344_v62, %v344_v62  ;;  %v8168_v3 = vld [vmem:[%s9087_s27 + $0xd84] ss:$8 sps:$4 sm:$0xff]   ;;  %v9658_v5 = vrot.slane %v344_v62, %v9147_v57  ;;  %v8172_v8 = vld [vmem:[%s9087_s27 + $0xe74] ss:$8 sps:$4 sm:$0xff]   ;;  %v8215_v62 = vld [vmem:[%s9087_s27 + $0xf00] ss:$8 sps:$4 sm:$0xff]  }
 0x219   : > { %v8175_v10 = vld [vmem:[%s9087_s27 + $0xf74] ss:$8 sps:$4 sm:$0xff]   ;;  %v8170_v45 = vld [vmem:[%s9087_s27 + $0xe70] ss:$8 sps:$4 sm:$0xff]  }
 0x21a   : > { %5766 = vmatpush1.bf16.msra.mxu0 %v8085_v6  ;;  %v9661_v6 = vrot.slane %v480_v16, %v9147_v57  ;;  %v8226_v16 = vld [vmem:[%s9087_s27 + $0xee4] ss:$8 sps:$4 sm:$0xff]  }
 0x21b   : > { %5807 = vmatpush1.bf16.msra.mxu1 %v8088_v7  ;;  %5767 = vmatprep.subr.bf16.mxu0 %v8093_v49  ;;  %v8163_v7 = vld [vmem:[%s9087_s27 + $0xc80] ss:$8 sps:$4 sm:$0xff]   ;;  %v8173_v49 = vld [vmem:[%s9087_s27 + $0xf70] ss:$8 sps:$4 sm:$0xff]  }
 0x21c   : > { %5808 = vmatprep.subr.bf16.mxu1 %v8096_v11  ;;  %v495_v11 = vcombine.high %v9658_v5, %v9658_v5 }
 0x21e   : > { %5768 = vmatpush1.bf16.msra.mxu0 %v8091_v12  ;;  %v496_v12 = vcombine.high %v9661_v6, %v9661_v6 }
 0x21f   : > { %5809 = vmatpush1.bf16.msra.mxu1 %v8094_v13  ;;  %5769 = vmatprep.subr.bf16.mxu0 %v8099_v14  ;;  %v637_v13 = vpack.c.bf16 %v9573_v41, %v9573_v41  ;;  %v639_v14 = vpack.c.bf16 %v9576_v43, %v9576_v43  ;;  %v8176_v43 = vld [vmem:[%s9087_s27 + $0xe60] ss:$8 sps:$4 sm:$0xff]  }
 0x220   : > { %5810 = vmatprep.subr.bf16.mxu1 %v8102_v15  ;;  %v8178_v15 = vld [vmem:[%s9087_s27 + $0xe64] ss:$8 sps:$4 sm:$0xff]  }
 0x222   : > { %5770 = vmatpush1.bf16.msra.mxu0 %v8097_v19  ;;  %v8181_v19 = vld [vmem:[%s9087_s27 + $0xf64] ss:$8 sps:$4 sm:$0xff]  }
 0x223   : > { %5811 = vmatpush1.bf16.msra.mxu1 %v8100_v20  ;;  %5771 = vmatprep.subr.bf16.mxu0 %v8105_v21  ;;  %v642_v20 = vpack.c.bf16 %v495_v11, %v495_v11  ;;  %v644_v21 = vpack.c.bf16 %v496_v12, %v496_v12  ;;  %v8239_v11 = vld [vmem:[%s9087_s27 + $0xfc0] ss:$8 sps:$4 sm:$0xff]   ;;  %v8244_v12 = vld [vmem:[%s9087_s27 + $0xeb4] ss:$8 sps:$4 sm:$0xff]  }
 0x224   : > { %5812 = vmatprep.subr.bf16.mxu1 %v8108_v22 }
 0x226   : > { %5772 = vmatpush1.bf16.msra.mxu0 %v8103_v23 }
 0x227   : > { %5813 = vmatpush1.bf16.msra.mxu1 %v8106_v24  ;;  %5773 = vmatprep.subr.bf16.mxu0 %v8111_v25  ;;  %v8179_v24 = vld [vmem:[%s9087_s27 + $0xf60] ss:$8 sps:$4 sm:$0xff]  }
 0x228   : > { %5814 = vmatprep.subr.bf16.mxu1 %v8114_v26 }
 0x22a   : > { %5774 = vmatpush1.bf16.msra.mxu0 %v8109_v27  ;;  %v8184_v27 = vld [vmem:[%s9087_s27 + $0xe54] ss:$8 sps:$4 sm:$0xff]  }
 0x22b   : > { %5815 = vmatpush1.bf16.msra.mxu1 %v8112_v28  ;;  %5775 = vmatprep.subr.bf16.mxu0 %v8117_v29  ;;  %v8187_v28 = vld [vmem:[%s9087_s27 + $0xf54] ss:$8 sps:$4 sm:$0xff]  }
 0x22c   : > { %5816 = vmatprep.subr.bf16.mxu1 %v8120_v30 }
 0x22e   : > { %5776 = vmatpush1.bf16.msra.mxu0 %v8115_v31 }
 0x22f   : > { %5817 = vmatpush1.bf16.msra.mxu1 %v8118_v32  ;;  %5777 = vmatprep.subr.bf16.mxu0 %v8123_v33  ;;  %v8182_v33 = vld [vmem:[%s9087_s27 + $0xe50] ss:$8 sps:$4 sm:$0xff]  }
 0x230   : > { %5818 = vmatprep.subr.bf16.mxu1 %v8126_v34  ;;  %v8185_v34 = vld [vmem:[%s9087_s27 + $0xf50] ss:$8 sps:$4 sm:$0xff]  }
 0x232   : > { %5778 = vmatpush2.bf16.msra.mxu0 %v8121_v35 }
 0x233   : > { %5819 = vmatpush2.bf16.msra.mxu1 %v8124_v36  ;;  %5779 = vmatprep.subr.bf16.mxu0 %v8129_v60  ;;  %v8193_v60 = vld [vmem:[%s9087_s27 + $0xf44] ss:$8 sps:$4 sm:$0xff]  }
 0x234   : > { %5820 = vmatprep.subr.bf16.mxu1 %v8132_v61  ;;  %v8188_v61 = vld [vmem:[%s9087_s27 + $0xe40] ss:$8 sps:$4 sm:$0xff]  }
 0x236   : > { %5780 = vmatpush2.bf16.msra.mxu0 %v8127_v37  ;;  %v8191_v37 = vld [vmem:[%s9087_s27 + $0xf40] ss:$8 sps:$4 sm:$0xff]  }
 0x237   : > { %5821 = vmatpush2.bf16.msra.mxu1 %v8130_v38  ;;  %5781 = vmatprep.subr.bf16.mxu0 %v8135_v39  ;;  %v8196_v38 = vld [vmem:[%s9087_s27 + $0xe34] ss:$8 sps:$4 sm:$0xff]  }
 0x238   : > { %5822 = vmatprep.subr.bf16.mxu1 %v8138_v44  ;;  %v8199_v39 = vld [vmem:[%s9087_s27 + $0xf34] ss:$8 sps:$4 sm:$0xff]   ;;  %v8194_v44 = vld [vmem:[%s9087_s27 + $0xe30] ss:$8 sps:$4 sm:$0xff]  }
 0x23a   : > { %5782 = vmatpush2.bf16.msra.mxu0 %v8133_v47  ;;  %v8197_v47 = vld [vmem:[%s9087_s27 + $0xf30] ss:$8 sps:$4 sm:$0xff]  }
 0x23b   : > { %5823 = vmatpush2.bf16.msra.mxu1 %v8136_v48  ;;  %5783 = vmatprep.subr.bf16.mxu0 %v8141_v50  ;;  %v8202_v48 = vld [vmem:[%s9087_s27 + $0xe24] ss:$8 sps:$4 sm:$0xff]  }
 0x23c   : > { %5824 = vmatprep.subr.bf16.mxu1 %v8144_v51  ;;  %v8205_v50 = vld [vmem:[%s9087_s27 + $0xf24] ss:$8 sps:$4 sm:$0xff]   ;;  %v8200_v51 = vld [vmem:[%s9087_s27 + $0xe20] ss:$8 sps:$4 sm:$0xff]  }
 0x23e   : > { %5784 = vmatpush2.bf16.msra.mxu0 %v8139_v17  ;;  %v8203_v17 = vld [vmem:[%s9087_s27 + $0xf20] ss:$8 sps:$4 sm:$0xff]  }
 0x23f   : > { %5825 = vmatpush2.bf16.msra.mxu1 %v8142_v52  ;;  %5785 = vmatprep.subr.bf16.mxu0 %v8147_v53  ;;  %v8208_v52 = vld [vmem:[%s9087_s27 + $0xe14] ss:$8 sps:$4 sm:$0xff]  }
 0x240   : > { %5826 = vmatprep.subr.bf16.mxu1 %v8150_v54  ;;  %v8211_v53 = vld [vmem:[%s9087_s27 + $0xf14] ss:$8 sps:$4 sm:$0xff]   ;;  %v8206_v54 = vld [vmem:[%s9087_s27 + $0xe10] ss:$8 sps:$4 sm:$0xff]  }
 0x242   : > { %5786 = vmatpush2.bf16.msra.mxu0 %v8145_v55  ;;  %v8209_v55 = vld [vmem:[%s9087_s27 + $0xf10] ss:$8 sps:$4 sm:$0xff]  }
 0x243   : > { %5827 = vmatpush2.bf16.msra.mxu1 %v8148_v56  ;;  %5787 = vmatprep.subr.bf16.mxu0 %v8153_v58  ;;  %v8214_v56 = vld [vmem:[%s9087_s27 + $0xe04] ss:$8 sps:$4 sm:$0xff]  }
 0x244   : > { %5828 = vmatprep.subr.bf16.mxu1 %v8156_v59  ;;  %v8217_v58 = vld [vmem:[%s9087_s27 + $0xf04] ss:$8 sps:$4 sm:$0xff]   ;;  %v8212_v59 = vld [vmem:[%s9087_s27 + $0xe00] ss:$8 sps:$4 sm:$0xff]  }
 0x246   : > { %5788 = vmatpush2.bf16.msra.mxu0 %v8151_v42  ;;  %v8220_v42 = vld [vmem:[%s9087_s27 + $0xef4] ss:$8 sps:$4 sm:$0xff]  }
 0x247   : > { %5829 = vmatpush2.bf16.msra.mxu1 %v8154_v63  ;;  %5789 = vmatprep.subr.bf16.mxu0 %v8159_v46  ;;  %v8223_v63 = vld [vmem:[%s9087_s27 + $0xff4] ss:$8 sps:$4 sm:$0xff]   ;;  %v8218_v46 = vld [vmem:[%s9087_s27 + $0xef0] ss:$8 sps:$4 sm:$0xff]  }
 0x248   : > { %5830 = vmatprep.subr.bf16.mxu1 %v8162_v0  ;;  %v8221_v0 = vld [vmem:[%s9087_s27 + $0xff0] ss:$8 sps:$4 sm:$0xff]  }
 0x24a   : > { %5790 = vmatpush2.bf16.msra.mxu0 %v8157_v18  ;;  %v8229_v18 = vld [vmem:[%s9087_s27 + $0xfe4] ss:$8 sps:$4 sm:$0xff]  }
 0x24b   : > { %5831 = vmatpush2.bf16.msra.mxu1 %v8160_v1  ;;  %5791 = vmatprep.subr.bf16.mxu0 %v8165_v2  ;;  %v8224_v1 = vld [vmem:[%s9087_s27 + $0xee0] ss:$8 sps:$4 sm:$0xff]  }
 0x24c   : > { %5832 = vmatprep.subr.bf16.mxu1 %v8168_v3  ;;  %v8227_v2 = vld [vmem:[%s9087_s27 + $0xfe0] ss:$8 sps:$4 sm:$0xff]   ;;  %v8232_v3 = vld [vmem:[%s9087_s27 + $0xed4] ss:$8 sps:$4 sm:$0xff]  }
 0x24e   : > { %5792 = vmatpush2.bf16.msra.mxu0 %v8163_v7  ;;  %v8235_v7 = vld [vmem:[%s9087_s27 + $0xfd4] ss:$8 sps:$4 sm:$0xff]  }
 0x24f   : > { %5833 = vmatpush2.bf16.msra.mxu1 %v8166_v40  ;;  %5843 = vmatprep.subr.bf16.mxu0 %v8172_v8  ;;  %v8230_v40 = vld [vmem:[%s9087_s27 + $0xed0] ss:$8 sps:$4 sm:$0xff]  }
 0x250   : > { %5884 = vmatprep.subr.bf16.mxu1 %v8175_v10  ;;  %v8233_v8 = vld [vmem:[%s9087_s27 + $0xfd0] ss:$8 sps:$4 sm:$0xff]   ;;  %v8238_v10 = vld [vmem:[%s9087_s27 + $0xec4] ss:$8 sps:$4 sm:$0xff]  }
 0x251   : > { %v5549_v22 = vpop.f32.mrf.mxu0  ;;  %5794 = vmatmul.mubr.bf16.vlgmr.msra.gmra.mxu0 %v637_v13  ;;  %v8247_v13 = vld [vmem:[%s9087_s27 + $0xfb4] ss:$8 sps:$4 sm:$0xff]  }
 0x252   : > { %v5590_v23 = vpop.f32.mrf.mxu1  ;;  %5835 = vmatmul.mubr.bf16.vlgmr.msra.gmra.mxu1 %v639_v14  ;;  %v5550_v41 = vadd.f32 %v5549_v22, %v9599_v4  ;;  %5844 = vmatpush1.bf16.msra.mxu0 %v8170_v45  ;;  %v8241_v45 = vld [vmem:[%s9087_s27 + $0xfc4] ss:$8 sps:$4 sm:$0xff]   ;;  %v8242_v14 = vld [vmem:[%s9087_s27 + $0xeb0] ss:$8 sps:$4 sm:$0xff]   ;;  %v8248_v22 = vld [vmem:[%s9087_s27 + $0xea0] ss:$8 sps:$4 sm:$0xff]  }
 0x253   : > { %5885 = vmatpush1.bf16.msra.mxu1 %v8173_v49  ;;  %v5551_v25 = vpop.f32.mrf.mxu0  ;;  %5845 = vmatprep.subr.bf16.mxu0 %v8178_v15  ;;  %v8236_v49 = vld [vmem:[%s9087_s27 + $0xec0] ss:$8 sps:$4 sm:$0xff]   ;;  %v8245_v15 = vld [vmem:[%s9087_s27 + $0xfb0] ss:$8 sps:$4 sm:$0xff]  }
 0x254   : > { %v5592_v26 = vpop.f32.mrf.mxu1  ;;  %5886 = vmatprep.subr.bf16.mxu1 %v8181_v19  ;;  %v9684_v29 = vadd.f32 %v5590_v23, %v5550_v41  ;;  %v5552_v30 = vadd.f32 %v5551_v25, %v9604_v9  ;;  %5875 = vmatprep.mubr.bf16.mxu0 %v642_v20  ;;  %v8190_v9 = vld [vmem:[%s9087_s27 + $0xe44] ss:$8 sps:$4 sm:$0xff]   ;;  %v8251_v23 = vld [vmem:[%s9087_s27 + $0xfa0] ss:$8 sps:$4 sm:$0xff]   ;;  %v8256_v41 = vld [vmem:[%s9087_s27 + $0xe94] ss:$8 sps:$4 sm:$0xff]  }
 0x255   : > { %5916 = vmatprep.mubr.bf16.mxu1 %v644_v21  ;;  %v5553_v4 = vpop.f32.mrf.mxu0  ;;  %v8250_v19 = vld [vmem:[%s9087_s27 + $0xea4] ss:$8 sps:$4 sm:$0xff]   ;;  %v8254_v25 = vld [vmem:[%s9087_s27 + $0xe90] ss:$8 sps:$4 sm:$0xff]  }
 0x256   : > { %v5594_v31 = vpop.f32.mrf.mxu1  ;;  %v9687_v32 = vadd.f32 %v5592_v26, %v5552_v30  ;;  %5846 = vmatpush1.bf16.msra.mxu0 %v8176_v43  ;;  %v8253_v20 = vld [vmem:[%s9087_s27 + $0xfa4] ss:$8 sps:$4 sm:$0xff]   ;;  %v8259_v43 = vld [vmem:[%s9087_s27 + $0xf94] ss:$8 sps:$4 sm:$0xff]   ;;  %v8257_v26 = vld [vmem:[%s9087_s27 + $0xf90] ss:$8 sps:$4 sm:$0xff]  }
 0x257   : > { %5887 = vmatpush1.bf16.msra.mxu1 %v8179_v24  ;;  %v5554_v35 = vpop.f32.mrf.mxu0  ;;  %5847 = vmatprep.subr.bf16.mxu0 %v8184_v27  ;;  %v345_v21 = vld [vmem:[%s9080_s29 + $0x40] sm:$0xff] }
 0x258   : > { %v5595_v36 = vpop.f32.mrf.mxu1  ;;  %5888 = vmatprep.subr.bf16.mxu1 %v8187_v28  ;;  %v497_v24 = vcombine.high %v345_v21, %v345_v21  ;;  %v8262_v27 = vld [vmem:[%s9087_s27 + $0xe84] ss:$8 sps:$4 sm:$0xff]   ;;  %v9743_v30 = vrot.slane %v345_v21, %v9147_v57  ;;  %v8260_v31 = vld [vmem:[%s9087_s27 + $0xe80] ss:$8 sps:$4 sm:$0xff]   ;;  %v8272_v35 = vld [vmem:[%s9087_s27 + $0x1174] ss:$8 sps:$4 sm:$0xff]  }
 0x259   : > { %v8265_v28 = vld [vmem:[%s9087_s27 + $0xf84] ss:$8 sps:$4 sm:$0xff]   ;;  %v8312_v21 = vld [vmem:[%s9087_s27 + $0x1100] ss:$8 sps:$4 sm:$0xff]  }
 0x25a   : > { %5848 = vmatpush1.bf16.msra.mxu0 %v8182_v33  ;;  %v9746_v4 = vrot.slane %v497_v24, %v9147_v57  ;;  %v8263_v33 = vld [vmem:[%s9087_s27 + $0xf80] ss:$8 sps:$4 sm:$0xff]   ;;  %v512_v36 = vcombine.high %v9743_v30, %v9743_v30  ;;  %v8323_v24 = vld [vmem:[%s9087_s27 + $0x10e4] ss:$8 sps:$4 sm:$0xff]  }
 0x25b   : > { %5889 = vmatpush1.bf16.msra.mxu1 %v8185_v34  ;;  %5849 = vmatprep.subr.bf16.mxu0 %v8190_v9  ;;  %v8269_v34 = vld [vmem:[%s9087_s27 + $0x1074] ss:$8 sps:$4 sm:$0xff]  }
 0x25c   : > { %5890 = vmatprep.subr.bf16.mxu1 %v8193_v60  ;;  %v513_v9 = vcombine.high %v9746_v4, %v9746_v4  ;;  %v641_v60 = vpack.c.bf16 %v9658_v5, %v9658_v5 }
 0x25e   : > { %5850 = vmatpush1.bf16.msra.mxu0 %v8188_v61  ;;  %v643_v61 = vpack.c.bf16 %v9661_v6, %v9661_v6  ;;  %v8273_v6 = vld [vmem:[%s9087_s27 + $0x1060] ss:$8 sps:$4 sm:$0xff]  }
 0x25f   : > { %5891 = vmatpush1.bf16.msra.mxu1 %v8191_v37  ;;  %5851 = vmatprep.subr.bf16.mxu0 %v8196_v38  ;;  %v8267_v37 = vld [vmem:[%s9087_s27 + $0x1070] ss:$8 sps:$4 sm:$0xff]  }
 0x260   : > { %5892 = vmatprep.subr.bf16.mxu1 %v8199_v39  ;;  %v8270_v38 = vld [vmem:[%s9087_s27 + $0x1170] ss:$8 sps:$4 sm:$0xff]   ;;  %v8275_v39 = vld [vmem:[%s9087_s27 + $0x1064] ss:$8 sps:$4 sm:$0xff]  }
 0x262   : > { %5852 = vmatpush1.bf16.msra.mxu0 %v8194_v44  ;;  %v8278_v44 = vld [vmem:[%s9087_s27 + $0x1164] ss:$8 sps:$4 sm:$0xff]  }
 0x263   : > { %5893 = vmatpush1.bf16.msra.mxu1 %v8197_v47  ;;  %5853 = vmatprep.subr.bf16.mxu0 %v8202_v48  ;;  %v646_v47 = vpack.c.bf16 %v512_v36, %v512_v36  ;;  %v648_v48 = vpack.c.bf16 %v513_v9, %v513_v9  ;;  %v8338_v36 = vld [vmem:[%s9087_s27 + $0x11c4] ss:$8 sps:$4 sm:$0xff]   ;;  %v8333_v9 = vld [vmem:[%s9087_s27 + $0x10c0] ss:$8 sps:$4 sm:$0xff]  }
 0x264   : > { %5894 = vmatprep.subr.bf16.mxu1 %v8205_v50 }
 0x266   : > { %5854 = vmatpush1.bf16.msra.mxu0 %v8200_v51 }
 0x267   : > { %5895 = vmatpush1.bf16.msra.mxu1 %v8203_v17  ;;  %5855 = vmatprep.subr.bf16.mxu0 %v8208_v52  ;;  %v8276_v17 = vld [vmem:[%s9087_s27 + $0x1160] ss:$8 sps:$4 sm:$0xff]  }
 0x268   : > { %5896 = vmatprep.subr.bf16.mxu1 %v8211_v53 }
 0x26a   : > { %5856 = vmatpush1.bf16.msra.mxu0 %v8206_v54  ;;  %v8281_v54 = vld [vmem:[%s9087_s27 + $0x1054] ss:$8 sps:$4 sm:$0xff]  }
 0x26b   : > { %5897 = vmatpush1.bf16.msra.mxu1 %v8209_v55  ;;  %5857 = vmatprep.subr.bf16.mxu0 %v8214_v56  ;;  %v8284_v55 = vld [vmem:[%s9087_s27 + $0x1154] ss:$8 sps:$4 sm:$0xff]  }
 0x26c   : > { %5898 = vmatprep.subr.bf16.mxu1 %v8217_v58 }
 0x26e   : > { %5858 = vmatpush1.bf16.msra.mxu0 %v8212_v59 }
 0x26f   : > { %5899 = vmatpush1.bf16.msra.mxu1 %v8215_v62  ;;  %5859 = vmatprep.subr.bf16.mxu0 %v8220_v42  ;;  %v8279_v42 = vld [vmem:[%s9087_s27 + $0x1050] ss:$8 sps:$4 sm:$0xff]  }
 0x270   : > { %5900 = vmatprep.subr.bf16.mxu1 %v8223_v63  ;;  %v8282_v63 = vld [vmem:[%s9087_s27 + $0x1150] ss:$8 sps:$4 sm:$0xff]  }
 0x272   : > { %5860 = vmatpush2.bf16.msra.mxu0 %v8218_v46 }
 0x273   : > { %5901 = vmatpush2.bf16.msra.mxu1 %v8221_v0  ;;  %5861 = vmatprep.subr.bf16.mxu0 %v8226_v16  ;;  %v8290_v16 = vld [vmem:[%s9087_s27 + $0x1144] ss:$8 sps:$4 sm:$0xff]  }
 0x274   : > { %5902 = vmatprep.subr.bf16.mxu1 %v8229_v18  ;;  %v8285_v18 = vld [vmem:[%s9087_s27 + $0x1040] ss:$8 sps:$4 sm:$0xff]  }
 0x276   : > { %5862 = vmatpush2.bf16.msra.mxu0 %v8224_v1  ;;  %v8288_v1 = vld [vmem:[%s9087_s27 + $0x1140] ss:$8 sps:$4 sm:$0xff]  }
 0x277   : > { %5903 = vmatpush2.bf16.msra.mxu1 %v8227_v2  ;;  %5863 = vmatprep.subr.bf16.mxu0 %v8232_v3  ;;  %v8293_v2 = vld [vmem:[%s9087_s27 + $0x1034] ss:$8 sps:$4 sm:$0xff]  }
 0x278   : > { %5904 = vmatprep.subr.bf16.mxu1 %v8235_v7  ;;  %v8296_v3 = vld [vmem:[%s9087_s27 + $0x1134] ss:$8 sps:$4 sm:$0xff]   ;;  %v8291_v7 = vld [vmem:[%s9087_s27 + $0x1030] ss:$8 sps:$4 sm:$0xff]  }
 0x27a   : > { %5864 = vmatpush2.bf16.msra.mxu0 %v8230_v40  ;;  %v8294_v40 = vld [vmem:[%s9087_s27 + $0x1130] ss:$8 sps:$4 sm:$0xff]  }
 0x27b   : > { %5905 = vmatpush2.bf16.msra.mxu1 %v8233_v8  ;;  %5865 = vmatprep.subr.bf16.mxu0 %v8238_v10  ;;  %v8299_v8 = vld [vmem:[%s9087_s27 + $0x1024] ss:$8 sps:$4 sm:$0xff]  }
 0x27c   : > { %5906 = vmatprep.subr.bf16.mxu1 %v8241_v45  ;;  %v8302_v10 = vld [vmem:[%s9087_s27 + $0x1124] ss:$8 sps:$4 sm:$0xff]   ;;  %v8297_v45 = vld [vmem:[%s9087_s27 + $0x1020] ss:$8 sps:$4 sm:$0xff]  }
 0x27e   : > { %5866 = vmatpush2.bf16.msra.mxu0 %v8236_v49  ;;  %v8300_v49 = vld [vmem:[%s9087_s27 + $0x1120] ss:$8 sps:$4 sm:$0xff]  }
 0x27f   : > { %5907 = vmatpush2.bf16.msra.mxu1 %v8239_v11  ;;  %5867 = vmatprep.subr.bf16.mxu0 %v8244_v12  ;;  %v8305_v11 = vld [vmem:[%s9087_s27 + $0x1014] ss:$8 sps:$4 sm:$0xff]  }
 0x280   : > { %5908 = vmatprep.subr.bf16.mxu1 %v8247_v13  ;;  %v8308_v12 = vld [vmem:[%s9087_s27 + $0x1114] ss:$8 sps:$4 sm:$0xff]   ;;  %v8303_v13 = vld [vmem:[%s9087_s27 + $0x1010] ss:$8 sps:$4 sm:$0xff]  }
 0x282   : > { %5868 = vmatpush2.bf16.msra.mxu0 %v8242_v14  ;;  %v8306_v14 = vld [vmem:[%s9087_s27 + $0x1110] ss:$8 sps:$4 sm:$0xff]  }
 0x283   : > { %5909 = vmatpush2.bf16.msra.mxu1 %v8245_v15  ;;  %5869 = vmatprep.subr.bf16.mxu0 %v8250_v19  ;;  %v8311_v15 = vld [vmem:[%s9087_s27 + $0x1004] ss:$8 sps:$4 sm:$0xff]  }
 0x284   : > { %5910 = vmatprep.subr.bf16.mxu1 %v8253_v20  ;;  %v8314_v19 = vld [vmem:[%s9087_s27 + $0x1104] ss:$8 sps:$4 sm:$0xff]   ;;  %v8309_v20 = vld [vmem:[%s9087_s27 + $0x1000] ss:$8 sps:$4 sm:$0xff]  }
 0x286   : > { %5870 = vmatpush2.bf16.msra.mxu0 %v8248_v22  ;;  %v8317_v22 = vld [vmem:[%s9087_s27 + $0x10f4] ss:$8 sps:$4 sm:$0xff]  }
 0x287   : > { %5911 = vmatpush2.bf16.msra.mxu1 %v8251_v23  ;;  %5871 = vmatprep.subr.bf16.mxu0 %v8256_v41  ;;  %v8320_v23 = vld [vmem:[%s9087_s27 + $0x11f4] ss:$8 sps:$4 sm:$0xff]   ;;  %v8315_v41 = vld [vmem:[%s9087_s27 + $0x10f0] ss:$8 sps:$4 sm:$0xff]  }
 0x288   : > { %5912 = vmatprep.subr.bf16.mxu1 %v8259_v43  ;;  %v8318_v43 = vld [vmem:[%s9087_s27 + $0x11f0] ss:$8 sps:$4 sm:$0xff]  }
 0x28a   : > { %5872 = vmatpush2.bf16.msra.mxu0 %v8254_v25  ;;  %v8326_v25 = vld [vmem:[%s9087_s27 + $0x11e4] ss:$8 sps:$4 sm:$0xff]  }
 0x28b   : > { %5913 = vmatpush2.bf16.msra.mxu1 %v8257_v26  ;;  %5873 = vmatprep.subr.bf16.mxu0 %v8262_v27  ;;  %v8321_v26 = vld [vmem:[%s9087_s27 + $0x10e0] ss:$8 sps:$4 sm:$0xff]  }
 0x28c   : > { %5914 = vmatprep.subr.bf16.mxu1 %v8265_v28  ;;  %v8324_v27 = vld [vmem:[%s9087_s27 + $0x11e0] ss:$8 sps:$4 sm:$0xff]   ;;  %v8329_v28 = vld [vmem:[%s9087_s27 + $0x10d4] ss:$8 sps:$4 sm:$0xff]  }
 0x28e   : > { %5874 = vmatpush2.bf16.msra.mxu0 %v8260_v31  ;;  %v8332_v31 = vld [vmem:[%s9087_s27 + $0x11d4] ss:$8 sps:$4 sm:$0xff]  }
 0x28f   : > { %5915 = vmatpush2.bf16.msra.mxu1 %v8263_v33  ;;  %5925 = vmatprep.subr.bf16.mxu0 %v8269_v34  ;;  %v8327_v33 = vld [vmem:[%s9087_s27 + $0x10d0] ss:$8 sps:$4 sm:$0xff]  }
 0x290   : > { %5966 = vmatprep.subr.bf16.mxu1 %v8272_v35  ;;  %v8330_v34 = vld [vmem:[%s9087_s27 + $0x11d0] ss:$8 sps:$4 sm:$0xff]   ;;  %v8335_v35 = vld [vmem:[%s9087_s27 + $0x10c4] ss:$8 sps:$4 sm:$0xff]  }
 0x291   : > { %v5631_v50 = vpop.f32.mrf.mxu0  ;;  %5876 = vmatmul.mubr.bf16.vlgmr.msra.gmra.mxu0 %v641_v60  ;;  %v8336_v60 = vld [vmem:[%s9087_s27 + $0x11c0] ss:$8 sps:$4 sm:$0xff]  }
 0x292   : > { %v5672_v51 = vpop.f32.mrf.mxu1  ;;  %5917 = vmatmul.mubr.bf16.vlgmr.msra.gmra.mxu1 %v643_v61  ;;  %v5632_v5 = vadd.f32 %v5631_v50, %v9684_v29  ;;  %5926 = vmatpush1.bf16.msra.mxu0 %v8267_v37  ;;  %v8341_v61 = vld [vmem:[%s9087_s27 + $0x10b4] ss:$8 sps:$4 sm:$0xff]   ;;  %v8345_v50 = vld [vmem:[%s9087_s27 + $0x10a0] ss:$8 sps:$4 sm:$0xff]  }
 0x293   : > { %5967 = vmatpush1.bf16.msra.mxu1 %v8270_v38  ;;  %v5633_v52 = vpop.f32.mrf.mxu0  ;;  %5927 = vmatprep.subr.bf16.mxu0 %v8275_v39  ;;  %v8344_v37 = vld [vmem:[%s9087_s27 + $0x11b4] ss:$8 sps:$4 sm:$0xff]   ;;  %v8339_v38 = vld [vmem:[%s9087_s27 + $0x10b0] ss:$8 sps:$4 sm:$0xff]  }
 0x294   : > { %v5674_v53 = vpop.f32.mrf.mxu1  ;;  %5968 = vmatprep.subr.bf16.mxu1 %v8278_v44  ;;  %v9769_v56 = vadd.f32 %v5672_v51, %v5632_v5  ;;  %v5634_v58 = vadd.f32 %v5633_v52, %v9687_v32  ;;  %5957 = vmatprep.mubr.bf16.mxu0 %v646_v47  ;;  %v8287_v32 = vld [vmem:[%s9087_s27 + $0x1044] ss:$8 sps:$4 sm:$0xff]   ;;  %v8342_v39 = vld [vmem:[%s9087_s27 + $0x11b0] ss:$8 sps:$4 sm:$0xff]   ;;  %v8348_v51 = vld [vmem:[%s9087_s27 + $0x11a0] ss:$8 sps:$4 sm:$0xff]  }
 0x295   : > { %5998 = vmatprep.mubr.bf16.mxu1 %v648_v48  ;;  %v5635_v29 = vpop.f32.mrf.mxu0  ;;  %v8347_v44 = vld [vmem:[%s9087_s27 + $0x10a4] ss:$8 sps:$4 sm:$0xff]   ;;  %v8353_v5 = vld [vmem:[%s9087_s27 + $0x1094] ss:$8 sps:$4 sm:$0xff]   ;;  %v8351_v52 = vld [vmem:[%s9087_s27 + $0x1090] ss:$8 sps:$4 sm:$0xff]  }
 0x296   : > { %v5676_v59 = vpop.f32.mrf.mxu1  ;;  %v9772_v62 = vadd.f32 %v5674_v53, %v5634_v58  ;;  %5928 = vmatpush1.bf16.msra.mxu0 %v8273_v6  ;;  %v8350_v47 = vld [vmem:[%s9087_s27 + $0x11a4] ss:$8 sps:$4 sm:$0xff]   ;;  %v8356_v6 = vld [vmem:[%s9087_s27 + $0x1194] ss:$8 sps:$4 sm:$0xff]   ;;  %v8354_v53 = vld [vmem:[%s9087_s27 + $0x1190] ss:$8 sps:$4 sm:$0xff]  }
 0x297   : > { %5969 = vmatpush1.bf16.msra.mxu1 %v8276_v17  ;;  %v5636_v46 = vpop.f32.mrf.mxu0  ;;  %5929 = vmatprep.subr.bf16.mxu0 %v8281_v54  ;;  %v346_v48 = vld [vmem:[%s9080_s29 + $0x48] sm:$0xff] }
 0x298   : > { %v5677_v0 = vpop.f32.mrf.mxu1  ;;  %5970 = vmatprep.subr.bf16.mxu1 %v8284_v55  ;;  %v514_v17 = vcombine.high %v346_v48, %v346_v48  ;;  %v8359_v54 = vld [vmem:[%s9087_s27 + $0x1084] ss:$8 sps:$4 sm:$0xff]   ;;  %v9828_v58 = vrot.slane %v346_v48, %v9147_v57  ;;  %v8357_v59 = vld [vmem:[%s9087_s27 + $0x1080] ss:$8 sps:$4 sm:$0xff]   ;;  %v8369_v46 = vld [vmem:[%s9087_s27 + $0x1374] ss:$8 sps:$4 sm:$0xff]  }
 0x299   : > { %v8362_v55 = vld [vmem:[%s9087_s27 + $0x1184] ss:$8 sps:$4 sm:$0xff]   ;;  %v8409_v48 = vld [vmem:[%s9087_s27 + $0x1300] ss:$8 sps:$4 sm:$0xff]  }
 0x29a   : > { %5930 = vmatpush1.bf16.msra.mxu0 %v8279_v42  ;;  %v9831_v29 = vrot.slane %v514_v17, %v9147_v57  ;;  %v8360_v42 = vld [vmem:[%s9087_s27 + $0x1180] ss:$8 sps:$4 sm:$0xff]   ;;  %v529_v0 = vcombine.high %v9828_v58, %v9828_v58  ;;  %v8420_v17 = vld [vmem:[%s9087_s27 + $0x12e4] ss:$8 sps:$4 sm:$0xff]  }
 0x29b   : > { %5971 = vmatpush1.bf16.msra.mxu1 %v8282_v63  ;;  %5931 = vmatprep.subr.bf16.mxu0 %v8287_v32  ;;  %v8366_v63 = vld [vmem:[%s9087_s27 + $0x1274] ss:$8 sps:$4 sm:$0xff]  }
 0x29c   : > { %5972 = vmatprep.subr.bf16.mxu1 %v8290_v16  ;;  %v530_v32 = vcombine.high %v9831_v29, %v9831_v29  ;;  %v645_v16 = vpack.c.bf16 %v9743_v30, %v9743_v30 }
 0x29e   : > { %5932 = vmatpush1.bf16.msra.mxu0 %v8285_v18  ;;  %v647_v18 = vpack.c.bf16 %v9746_v4, %v9746_v4  ;;  %v8370_v4 = vld [vmem:[%s9087_s27 + $0x1260] ss:$8 sps:$4 sm:$0xff]  }
 0x29f   : > { %5973 = vmatpush1.bf16.msra.mxu1 %v8288_v1  ;;  %5933 = vmatprep.subr.bf16.mxu0 %v8293_v2  ;;  %v8364_v1 = vld [vmem:[%s9087_s27 + $0x1270] ss:$8 sps:$4 sm:$0xff]  }
 0x2a0   : > { %5974 = vmatprep.subr.bf16.mxu1 %v8296_v3  ;;  %v8367_v2 = vld [vmem:[%s9087_s27 + $0x1370] ss:$8 sps:$4 sm:$0xff]   ;;  %v8372_v3 = vld [vmem:[%s9087_s27 + $0x1264] ss:$8 sps:$4 sm:$0xff]  }
 0x2a2   : > { %5934 = vmatpush1.bf16.msra.mxu0 %v8291_v7  ;;  %v8375_v7 = vld [vmem:[%s9087_s27 + $0x1364] ss:$8 sps:$4 sm:$0xff]  }
 0x2a3   : > { %5975 = vmatpush1.bf16.msra.mxu1 %v8294_v40  ;;  %5935 = vmatprep.subr.bf16.mxu0 %v8299_v8  ;;  %v650_v40 = vpack.c.bf16 %v529_v0, %v529_v0  ;;  %v652_v8 = vpack.c.bf16 %v530_v32, %v530_v32  ;;  %v8435_v0 = vld [vmem:[%s9087_s27 + $0x13c4] ss:$8 sps:$4 sm:$0xff]   ;;  %v8430_v32 = vld [vmem:[%s9087_s27 + $0x12c0] ss:$8 sps:$4 sm:$0xff]  }
 0x2a4   : > { %5976 = vmatprep.subr.bf16.mxu1 %v8302_v10 }
 0x2a6   : > { %5936 = vmatpush1.bf16.msra.mxu0 %v8297_v45 }
 0x2a7   : > { %5977 = vmatpush1.bf16.msra.mxu1 %v8300_v49  ;;  %5937 = vmatprep.subr.bf16.mxu0 %v8305_v11  ;;  %v8373_v49 = vld [vmem:[%s9087_s27 + $0x1360] ss:$8 sps:$4 sm:$0xff]  }
 0x2a8   : > { %5978 = vmatprep.subr.bf16.mxu1 %v8308_v12 }
 0x2aa   : > { %5938 = vmatpush1.bf16.msra.mxu0 %v8303_v13  ;;  %v8378_v13 = vld [vmem:[%s9087_s27 + $0x1254] ss:$8 sps:$4 sm:$0xff]  }
 0x2ab   : > { %5979 = vmatpush1.bf16.msra.mxu1 %v8306_v14  ;;  %5939 = vmatprep.subr.bf16.mxu0 %v8311_v15  ;;  %v8381_v14 = vld [vmem:[%s9087_s27 + $0x1354] ss:$8 sps:$4 sm:$0xff]  }
 0x2ac   : > { %5980 = vmatprep.subr.bf16.mxu1 %v8314_v19 }
 0x2ae   : > { %5940 = vmatpush1.bf16.msra.mxu0 %v8309_v20 }
 0x2af   : > { %5981 = vmatpush1.bf16.msra.mxu1 %v8312_v21  ;;  %5941 = vmatprep.subr.bf16.mxu0 %v8317_v22  ;;  %v8376_v22 = vld [vmem:[%s9087_s27 + $0x1250] ss:$8 sps:$4 sm:$0xff]  }
 0x2b0   : > { %5982 = vmatprep.subr.bf16.mxu1 %v8320_v23  ;;  %v8379_v23 = vld [vmem:[%s9087_s27 + $0x1350] ss:$8 sps:$4 sm:$0xff]  }
 0x2b2   : > { %5942 = vmatpush2.bf16.msra.mxu0 %v8315_v41 }
 0x2b3   : > { %5983 = vmatpush2.bf16.msra.mxu1 %v8318_v43  ;;  %5943 = vmatprep.subr.bf16.mxu0 %v8323_v24  ;;  %v8387_v24 = vld [vmem:[%s9087_s27 + $0x1344] ss:$8 sps:$4 sm:$0xff]  }
 0x2b4   : > { %5984 = vmatprep.subr.bf16.mxu1 %v8326_v25  ;;  %v8382_v25 = vld [vmem:[%s9087_s27 + $0x1240] ss:$8 sps:$4 sm:$0xff]  }
 0x2b6   : > { %5944 = vmatpush2.bf16.msra.mxu0 %v8321_v26  ;;  %v8385_v26 = vld [vmem:[%s9087_s27 + $0x1340] ss:$8 sps:$4 sm:$0xff]  }
 0x2b7   : > { %5985 = vmatpush2.bf16.msra.mxu1 %v8324_v27  ;;  %5945 = vmatprep.subr.bf16.mxu0 %v8329_v28  ;;  %v8390_v27 = vld [vmem:[%s9087_s27 + $0x1234] ss:$8 sps:$4 sm:$0xff]  }
 0x2b8   : > { %5986 = vmatprep.subr.bf16.mxu1 %v8332_v31  ;;  %v8393_v28 = vld [vmem:[%s9087_s27 + $0x1334] ss:$8 sps:$4 sm:$0xff]   ;;  %v8388_v31 = vld [vmem:[%s9087_s27 + $0x1230] ss:$8 sps:$4 sm:$0xff]  }
 0x2ba   : > { %5946 = vmatpush2.bf16.msra.mxu0 %v8327_v33  ;;  %v8391_v33 = vld [vmem:[%s9087_s27 + $0x1330] ss:$8 sps:$4 sm:$0xff]  }
 0x2bb   : > { %5987 = vmatpush2.bf16.msra.mxu1 %v8330_v34  ;;  %5947 = vmatprep.subr.bf16.mxu0 %v8335_v35  ;;  %v8396_v34 = vld [vmem:[%s9087_s27 + $0x1224] ss:$8 sps:$4 sm:$0xff]  }
 0x2bc   : > { %5988 = vmatprep.subr.bf16.mxu1 %v8338_v36  ;;  %v8399_v35 = vld [vmem:[%s9087_s27 + $0x1324] ss:$8 sps:$4 sm:$0xff]   ;;  %v8394_v36 = vld [vmem:[%s9087_s27 + $0x1220] ss:$8 sps:$4 sm:$0xff]  }
 0x2be   : > { %5948 = vmatpush2.bf16.msra.mxu0 %v8333_v9  ;;  %v8397_v9 = vld [vmem:[%s9087_s27 + $0x1320] ss:$8 sps:$4 sm:$0xff]  }
 0x2bf   : > { %5989 = vmatpush2.bf16.msra.mxu1 %v8336_v60  ;;  %5949 = vmatprep.subr.bf16.mxu0 %v8341_v61  ;;  %v8402_v60 = vld [vmem:[%s9087_s27 + $0x1214] ss:$8 sps:$4 sm:$0xff]  }
 0x2c0   : > { %5990 = vmatprep.subr.bf16.mxu1 %v8344_v37  ;;  %v8405_v61 = vld [vmem:[%s9087_s27 + $0x1314] ss:$8 sps:$4 sm:$0xff]   ;;  %v8400_v37 = vld [vmem:[%s9087_s27 + $0x1210] ss:$8 sps:$4 sm:$0xff]  }
 0x2c2   : > { %5950 = vmatpush2.bf16.msra.mxu0 %v8339_v38  ;;  %v8403_v38 = vld [vmem:[%s9087_s27 + $0x1310] ss:$8 sps:$4 sm:$0xff]  }
 0x2c3   : > { %5991 = vmatpush2.bf16.msra.mxu1 %v8342_v39  ;;  %5951 = vmatprep.subr.bf16.mxu0 %v8347_v44  ;;  %v8408_v39 = vld [vmem:[%s9087_s27 + $0x1204] ss:$8 sps:$4 sm:$0xff]  }
 0x2c4   : > { %5992 = vmatprep.subr.bf16.mxu1 %v8350_v47  ;;  %v8411_v44 = vld [vmem:[%s9087_s27 + $0x1304] ss:$8 sps:$4 sm:$0xff]   ;;  %v8406_v47 = vld [vmem:[%s9087_s27 + $0x1200] ss:$8 sps:$4 sm:$0xff]  }
 0x2c6   : > { %5952 = vmatpush2.bf16.msra.mxu0 %v8345_v50  ;;  %v8414_v50 = vld [vmem:[%s9087_s27 + $0x12f4] ss:$8 sps:$4 sm:$0xff]  }
 0x2c7   : > { %5993 = vmatpush2.bf16.msra.mxu1 %v8348_v51  ;;  %5953 = vmatprep.subr.bf16.mxu0 %v8353_v5  ;;  %v8417_v51 = vld [vmem:[%s9087_s27 + $0x13f4] ss:$8 sps:$4 sm:$0xff]   ;;  %v8412_v5 = vld [vmem:[%s9087_s27 + $0x12f0] ss:$8 sps:$4 sm:$0xff]  }
 0x2c8   : > { %5994 = vmatprep.subr.bf16.mxu1 %v8356_v6  ;;  %v8415_v6 = vld [vmem:[%s9087_s27 + $0x13f0] ss:$8 sps:$4 sm:$0xff]  }
 0x2ca   : > { %5954 = vmatpush2.bf16.msra.mxu0 %v8351_v52  ;;  %v8423_v52 = vld [vmem:[%s9087_s27 + $0x13e4] ss:$8 sps:$4 sm:$0xff]  }
 0x2cb   : > { %5995 = vmatpush2.bf16.msra.mxu1 %v8354_v53  ;;  %5955 = vmatprep.subr.bf16.mxu0 %v8359_v54  ;;  %v8418_v53 = vld [vmem:[%s9087_s27 + $0x12e0] ss:$8 sps:$4 sm:$0xff]  }
 0x2cc   : > { %5996 = vmatprep.subr.bf16.mxu1 %v8362_v55  ;;  %v8421_v54 = vld [vmem:[%s9087_s27 + $0x13e0] ss:$8 sps:$4 sm:$0xff]   ;;  %v8426_v55 = vld [vmem:[%s9087_s27 + $0x12d4] ss:$8 sps:$4 sm:$0xff]  }
 0x2ce   : > { %5956 = vmatpush2.bf16.msra.mxu0 %v8357_v59  ;;  %v8429_v59 = vld [vmem:[%s9087_s27 + $0x13d4] ss:$8 sps:$4 sm:$0xff]  }
 0x2cf   : > { %5997 = vmatpush2.bf16.msra.mxu1 %v8360_v42  ;;  %6007 = vmatprep.subr.bf16.mxu0 %v8366_v63  ;;  %v8424_v42 = vld [vmem:[%s9087_s27 + $0x12d0] ss:$8 sps:$4 sm:$0xff]  }
 0x2d0   : > { %6048 = vmatprep.subr.bf16.mxu1 %v8369_v46  ;;  %v8427_v63 = vld [vmem:[%s9087_s27 + $0x13d0] ss:$8 sps:$4 sm:$0xff]   ;;  %v8432_v46 = vld [vmem:[%s9087_s27 + $0x12c4] ss:$8 sps:$4 sm:$0xff]  }
 0x2d1   : > { %v5713_v10 = vpop.f32.mrf.mxu0  ;;  %5958 = vmatmul.mubr.bf16.vlgmr.msra.gmra.mxu0 %v645_v16  ;;  %v8433_v16 = vld [vmem:[%s9087_s27 + $0x13c0] ss:$8 sps:$4 sm:$0xff]  }
 0x2d2   : > { %v5754_v45 = vpop.f32.mrf.mxu1  ;;  %5999 = vmatmul.mubr.bf16.vlgmr.msra.gmra.mxu1 %v647_v18  ;;  %v5714_v30 = vadd.f32 %v5713_v10, %v9769_v56  ;;  %6008 = vmatpush1.bf16.msra.mxu0 %v8364_v1  ;;  %v8438_v18 = vld [vmem:[%s9087_s27 + $0x12b4] ss:$8 sps:$4 sm:$0xff]   ;;  %v8442_v10 = vld [vmem:[%s9087_s27 + $0x12a0] ss:$8 sps:$4 sm:$0xff]  }
 0x2d3   : > { %6049 = vmatpush1.bf16.msra.mxu1 %v8367_v2  ;;  %v5715_v11 = vpop.f32.mrf.mxu0  ;;  %6009 = vmatprep.subr.bf16.mxu0 %v8372_v3  ;;  %v8441_v1 = vld [vmem:[%s9087_s27 + $0x13b4] ss:$8 sps:$4 sm:$0xff]   ;;  %v8436_v2 = vld [vmem:[%s9087_s27 + $0x12b0] ss:$8 sps:$4 sm:$0xff]  }
 0x2d4   : > { %v5756_v12 = vpop.f32.mrf.mxu1  ;;  %6050 = vmatprep.subr.bf16.mxu1 %v8375_v7  ;;  %v9854_v15 = vadd.f32 %v5754_v45, %v5714_v30  ;;  %v5716_v19 = vadd.f32 %v5715_v11, %v9772_v62  ;;  %6039 = vmatprep.mubr.bf16.mxu0 %v650_v40  ;;  %v8384_v62 = vld [vmem:[%s9087_s27 + $0x1244] ss:$8 sps:$4 sm:$0xff]   ;;  %v8439_v3 = vld [vmem:[%s9087_s27 + $0x13b0] ss:$8 sps:$4 sm:$0xff]   ;;  %v8445_v45 = vld [vmem:[%s9087_s27 + $0x13a0] ss:$8 sps:$4 sm:$0xff]  }
 0x2d5   : > { %6080 = vmatprep.mubr.bf16.mxu1 %v652_v8  ;;  %v5717_v56 = vpop.f32.mrf.mxu0  ;;  %v8444_v7 = vld [vmem:[%s9087_s27 + $0x12a4] ss:$8 sps:$4 sm:$0xff]   ;;  %v347_v8 = vld [vmem:[%s9080_s29 + $0x50] sm:$0xff] }
 0x2d6   : > { %v5758_v20 = vpop.f32.mrf.mxu1  ;;  %v9857_v21 = vadd.f32 %v5756_v12, %v5716_v19  ;;  %6010 = vmatpush1.bf16.msra.mxu0 %v8370_v4  ;;  %v8447_v40 = vld [vmem:[%s9087_s27 + $0x13a4] ss:$8 sps:$4 sm:$0xff]   ;;  %v8450_v30 = vld [vmem:[%s9087_s27 + $0x1294] ss:$8 sps:$4 sm:$0xff]   ;;  %v8448_v11 = vld [vmem:[%s9087_s27 + $0x1290] ss:$8 sps:$4 sm:$0xff]   ;;  %v9913_v19 = vrot.slane %v347_v8, %v9147_v57 }
 0x2d7   : > { %6051 = vmatpush1.bf16.msra.mxu1 %v8373_v49  ;;  %v5718_v41 = vpop.f32.mrf.mxu0  ;;  %6011 = vmatprep.subr.bf16.mxu0 %v8378_v13  ;;  %v8453_v4 = vld [vmem:[%s9087_s27 + $0x1394] ss:$8 sps:$4 sm:$0xff]   ;;  %v531_v49 = vcombine.high %v347_v8, %v347_v8  ;;  %v8451_v12 = vld [vmem:[%s9087_s27 + $0x1390] ss:$8 sps:$4 sm:$0xff]   ;;  %v8456_v13 = vld [vmem:[%s9087_s27 + $0x1284] ss:$8 sps:$4 sm:$0xff]  }
 0x2d8   : > { %v5759_v43 = vpop.f32.mrf.mxu1  ;;  %6052 = vmatprep.subr.bf16.mxu1 %v8381_v14  ;;  %v8459_v14 = vld [vmem:[%s9087_s27 + $0x1384] ss:$8 sps:$4 sm:$0xff]   ;;  %v8454_v20 = vld [vmem:[%s9087_s27 + $0x1280] ss:$8 sps:$4 sm:$0xff]   ;;  %v8466_v41 = vld [vmem:[%s9087_s27 + $0x1574] ss:$8 sps:$4 sm:$0xff]  }
 0x2d9   : > { %v9916_v56 = vrot.slane %v531_v49, %v9147_v57  ;;  %v546_v43 = vcombine.high %v9913_v19, %v9913_v19  ;;  %v8506_v8 = vld [vmem:[%s9087_s27 + $0x1500] ss:$8 sps:$4 sm:$0xff]   ;;  %v8517_v49 = vld [vmem:[%s9087_s27 + $0x14e4] ss:$8 sps:$4 sm:$0xff]  }
 0x2da   : > { %6012 = vmatpush1.bf16.msra.mxu0 %v8376_v22  ;;  %v8457_v22 = vld [vmem:[%s9087_s27 + $0x1380] ss:$8 sps:$4 sm:$0xff]  }
 0x2db   : > { %6053 = vmatpush1.bf16.msra.mxu1 %v8379_v23  ;;  %6013 = vmatprep.subr.bf16.mxu0 %v8384_v62  ;;  %v8463_v23 = vld [vmem:[%s9087_s27 + $0x1474] ss:$8 sps:$4 sm:$0xff]   ;;  %v547_v62 = vcombine.high %v9916_v56, %v9916_v56 }
 0x2dc   : > { %6054 = vmatprep.subr.bf16.mxu1 %v8387_v24  ;;  %v649_v24 = vpack.c.bf16 %v9828_v58, %v9828_v58 }
 0x2de   : > { %6014 = vmatpush1.bf16.msra.mxu0 %v8382_v25  ;;  %v651_v25 = vpack.c.bf16 %v9831_v29, %v9831_v29  ;;  %v8467_v29 = vld [vmem:[%s9087_s27 + $0x1460] ss:$8 sps:$4 sm:$0xff]  }
 0x2df   : > { %6055 = vmatpush1.bf16.msra.mxu1 %v8385_v26  ;;  %6015 = vmatprep.subr.bf16.mxu0 %v8390_v27  ;;  %v8461_v26 = vld [vmem:[%s9087_s27 + $0x1470] ss:$8 sps:$4 sm:$0xff]  }
 0x2e0   : > { %6056 = vmatprep.subr.bf16.mxu1 %v8393_v28  ;;  %v8464_v27 = vld [vmem:[%s9087_s27 + $0x1570] ss:$8 sps:$4 sm:$0xff]   ;;  %v8469_v28 = vld [vmem:[%s9087_s27 + $0x1464] ss:$8 sps:$4 sm:$0xff]  }
 0x2e2   : > { %6016 = vmatpush1.bf16.msra.mxu0 %v8388_v31  ;;  %v8472_v31 = vld [vmem:[%s9087_s27 + $0x1564] ss:$8 sps:$4 sm:$0xff]  }
 0x2e3   : > { %6057 = vmatpush1.bf16.msra.mxu1 %v8391_v33  ;;  %6017 = vmatprep.subr.bf16.mxu0 %v8396_v34  ;;  %v654_v33 = vpack.c.bf16 %v546_v43, %v546_v43  ;;  %v656_v34 = vpack.c.bf16 %v547_v62, %v547_v62  ;;  %v8532_v43 = vld [vmem:[%s9087_s27 + $0x15c4] ss:$8 sps:$4 sm:$0xff]   ;;  %v8527_v62 = vld [vmem:[%s9087_s27 + $0x14c0] ss:$8 sps:$4 sm:$0xff]  }
 0x2e4   : > { %6058 = vmatprep.subr.bf16.mxu1 %v8399_v35 }
 0x2e6   : > { %6018 = vmatpush1.bf16.msra.mxu0 %v8394_v36 }
 0x2e7   : > { %6059 = vmatpush1.bf16.msra.mxu1 %v8397_v9  ;;  %6019 = vmatprep.subr.bf16.mxu0 %v8402_v60  ;;  %v8470_v9 = vld [vmem:[%s9087_s27 + $0x1560] ss:$8 sps:$4 sm:$0xff]  }
 0x2e8   : > { %6060 = vmatprep.subr.bf16.mxu1 %v8405_v61 }
 0x2ea   : > { %6020 = vmatpush1.bf16.msra.mxu0 %v8400_v37  ;;  %v8475_v37 = vld [vmem:[%s9087_s27 + $0x1454] ss:$8 sps:$4 sm:$0xff]  }
 0x2eb   : > { %6061 = vmatpush1.bf16.msra.mxu1 %v8403_v38  ;;  %6021 = vmatprep.subr.bf16.mxu0 %v8408_v39  ;;  %v8478_v38 = vld [vmem:[%s9087_s27 + $0x1554] ss:$8 sps:$4 sm:$0xff]  }
 0x2ec   : > { %6062 = vmatprep.subr.bf16.mxu1 %v8411_v44 }
 0x2ee   : > { %6022 = vmatpush1.bf16.msra.mxu0 %v8406_v47 }
 0x2ef   : > { %6063 = vmatpush1.bf16.msra.mxu1 %v8409_v48  ;;  %6023 = vmatprep.subr.bf16.mxu0 %v8414_v50  ;;  %v8473_v50 = vld [vmem:[%s9087_s27 + $0x1450] ss:$8 sps:$4 sm:$0xff]  }
 0x2f0   : > { %6064 = vmatprep.subr.bf16.mxu1 %v8417_v51  ;;  %v8476_v51 = vld [vmem:[%s9087_s27 + $0x1550] ss:$8 sps:$4 sm:$0xff]  }
 0x2f2   : > { %6024 = vmatpush2.bf16.msra.mxu0 %v8412_v5 }
 0x2f3   : > { %6065 = vmatpush2.bf16.msra.mxu1 %v8415_v6  ;;  %6025 = vmatprep.subr.bf16.mxu0 %v8420_v17  ;;  %v8484_v17 = vld [vmem:[%s9087_s27 + $0x1544] ss:$8 sps:$4 sm:$0xff]  }
 0x2f4   : > { %6066 = vmatprep.subr.bf16.mxu1 %v8423_v52  ;;  %v8479_v52 = vld [vmem:[%s9087_s27 + $0x1440] ss:$8 sps:$4 sm:$0xff]  }
 0x2f6   : > { %6026 = vmatpush2.bf16.msra.mxu0 %v8418_v53  ;;  %v8482_v53 = vld [vmem:[%s9087_s27 + $0x1540] ss:$8 sps:$4 sm:$0xff]  }
 0x2f7   : > { %6067 = vmatpush2.bf16.msra.mxu1 %v8421_v54  ;;  %6027 = vmatprep.subr.bf16.mxu0 %v8426_v55  ;;  %v8487_v54 = vld [vmem:[%s9087_s27 + $0x1434] ss:$8 sps:$4 sm:$0xff]  }
 0x2f8   : > { %6068 = vmatprep.subr.bf16.mxu1 %v8429_v59  ;;  %v8490_v55 = vld [vmem:[%s9087_s27 + $0x1534] ss:$8 sps:$4 sm:$0xff]   ;;  %v8485_v59 = vld [vmem:[%s9087_s27 + $0x1430] ss:$8 sps:$4 sm:$0xff]  }
 0x2fa   : > { %6028 = vmatpush2.bf16.msra.mxu0 %v8424_v42  ;;  %v8488_v42 = vld [vmem:[%s9087_s27 + $0x1530] ss:$8 sps:$4 sm:$0xff]  }
 0x2fb   : > { %6069 = vmatpush2.bf16.msra.mxu1 %v8427_v63  ;;  %6029 = vmatprep.subr.bf16.mxu0 %v8432_v46  ;;  %v8493_v63 = vld [vmem:[%s9087_s27 + $0x1424] ss:$8 sps:$4 sm:$0xff]  }
 0x2fc   : > { %6070 = vmatprep.subr.bf16.mxu1 %v8435_v0  ;;  %v8496_v46 = vld [vmem:[%s9087_s27 + $0x1524] ss:$8 sps:$4 sm:$0xff]   ;;  %v8491_v0 = vld [vmem:[%s9087_s27 + $0x1420] ss:$8 sps:$4 sm:$0xff]  }
 0x2fe   : > { %6030 = vmatpush2.bf16.msra.mxu0 %v8430_v32  ;;  %v8494_v32 = vld [vmem:[%s9087_s27 + $0x1520] ss:$8 sps:$4 sm:$0xff]  }
 0x2ff   : > { %6071 = vmatpush2.bf16.msra.mxu1 %v8433_v16  ;;  %6031 = vmatprep.subr.bf16.mxu0 %v8438_v18  ;;  %v8499_v16 = vld [vmem:[%s9087_s27 + $0x1414] ss:$8 sps:$4 sm:$0xff]  }
 0x300   : > { %6072 = vmatprep.subr.bf16.mxu1 %v8441_v1  ;;  %v8502_v18 = vld [vmem:[%s9087_s27 + $0x1514] ss:$8 sps:$4 sm:$0xff]   ;;  %v8497_v1 = vld [vmem:[%s9087_s27 + $0x1410] ss:$8 sps:$4 sm:$0xff]  }
 0x302   : > { %6032 = vmatpush2.bf16.msra.mxu0 %v8436_v2  ;;  %v8500_v2 = vld [vmem:[%s9087_s27 + $0x1510] ss:$8 sps:$4 sm:$0xff]  }
 0x303   : > { %6073 = vmatpush2.bf16.msra.mxu1 %v8439_v3  ;;  %6033 = vmatprep.subr.bf16.mxu0 %v8444_v7  ;;  %v8505_v3 = vld [vmem:[%s9087_s27 + $0x1404] ss:$8 sps:$4 sm:$0xff]  }
 0x304   : > { %6074 = vmatprep.subr.bf16.mxu1 %v8447_v40  ;;  %v8508_v7 = vld [vmem:[%s9087_s27 + $0x1504] ss:$8 sps:$4 sm:$0xff]   ;;  %v8503_v40 = vld [vmem:[%s9087_s27 + $0x1400] ss:$8 sps:$4 sm:$0xff]  }
 0x306   : > { %6034 = vmatpush2.bf16.msra.mxu0 %v8442_v10  ;;  %v8511_v10 = vld [vmem:[%s9087_s27 + $0x14f4] ss:$8 sps:$4 sm:$0xff]  }
 0x307   : > { %6075 = vmatpush2.bf16.msra.mxu1 %v8445_v45  ;;  %6035 = vmatprep.subr.bf16.mxu0 %v8450_v30  ;;  %v8514_v45 = vld [vmem:[%s9087_s27 + $0x15f4] ss:$8 sps:$4 sm:$0xff]   ;;  %v8509_v30 = vld [vmem:[%s9087_s27 + $0x14f0] ss:$8 sps:$4 sm:$0xff]  }
 0x308   : > { %6076 = vmatprep.subr.bf16.mxu1 %v8453_v4  ;;  %v8512_v4 = vld [vmem:[%s9087_s27 + $0x15f0] ss:$8 sps:$4 sm:$0xff]  }
 0x30a   : > { %6036 = vmatpush2.bf16.msra.mxu0 %v8448_v11  ;;  %v8520_v11 = vld [vmem:[%s9087_s27 + $0x15e4] ss:$8 sps:$4 sm:$0xff]  }
 0x30b   : > { %6077 = vmatpush2.bf16.msra.mxu1 %v8451_v12  ;;  %6037 = vmatprep.subr.bf16.mxu0 %v8456_v13  ;;  %v8515_v12 = vld [vmem:[%s9087_s27 + $0x14e0] ss:$8 sps:$4 sm:$0xff]  }
 0x30c   : > { %6078 = vmatprep.subr.bf16.mxu1 %v8459_v14  ;;  %v8518_v13 = vld [vmem:[%s9087_s27 + $0x15e0] ss:$8 sps:$4 sm:$0xff]   ;;  %v8523_v14 = vld [vmem:[%s9087_s27 + $0x14d4] ss:$8 sps:$4 sm:$0xff]  }
 0x30e   : > { %6038 = vmatpush2.bf16.msra.mxu0 %v8454_v20  ;;  %v8526_v20 = vld [vmem:[%s9087_s27 + $0x15d4] ss:$8 sps:$4 sm:$0xff]  }
 0x30f   : > { %6079 = vmatpush2.bf16.msra.mxu1 %v8457_v22  ;;  %6089 = vmatprep.subr.bf16.mxu0 %v8463_v23  ;;  %v8521_v22 = vld [vmem:[%s9087_s27 + $0x14d0] ss:$8 sps:$4 sm:$0xff]  }
 0x310   : > { %6130 = vmatprep.subr.bf16.mxu1 %v8466_v41  ;;  %v8524_v23 = vld [vmem:[%s9087_s27 + $0x15d0] ss:$8 sps:$4 sm:$0xff]   ;;  %v8529_v41 = vld [vmem:[%s9087_s27 + $0x14c4] ss:$8 sps:$4 sm:$0xff]  }
 0x311   : > { %v5795_v35 = vpop.f32.mrf.mxu0  ;;  %6040 = vmatmul.mubr.bf16.vlgmr.msra.gmra.mxu0 %v649_v24  ;;  %v8530_v24 = vld [vmem:[%s9087_s27 + $0x15c0] ss:$8 sps:$4 sm:$0xff]  }
 0x312   : > { %v5836_v36 = vpop.f32.mrf.mxu1  ;;  %6081 = vmatmul.mubr.bf16.vlgmr.msra.gmra.mxu1 %v651_v25  ;;  %v5796_v58 = vadd.f32 %v5795_v35, %v9854_v15  ;;  %6090 = vmatpush1.bf16.msra.mxu0 %v8461_v26  ;;  %v8535_v25 = vld [vmem:[%s9087_s27 + $0x14b4] ss:$8 sps:$4 sm:$0xff]   ;;  %v8539_v35 = vld [vmem:[%s9087_s27 + $0x14a0] ss:$8 sps:$4 sm:$0xff]  }
 0x313   : > { %6131 = vmatpush1.bf16.msra.mxu1 %v8464_v27  ;;  %v5797_v60 = vpop.f32.mrf.mxu0  ;;  %6091 = vmatprep.subr.bf16.mxu0 %v8469_v28  ;;  %v8538_v26 = vld [vmem:[%s9087_s27 + $0x15b4] ss:$8 sps:$4 sm:$0xff]   ;;  %v8533_v27 = vld [vmem:[%s9087_s27 + $0x14b0] ss:$8 sps:$4 sm:$0xff]  }
 0x314   : > { %v5838_v61 = vpop.f32.mrf.mxu1  ;;  %6132 = vmatprep.subr.bf16.mxu1 %v8472_v31  ;;  %v9939_v39 = vadd.f32 %v5836_v36, %v5796_v58  ;;  %v5798_v44 = vadd.f32 %v5797_v60, %v9857_v21  ;;  %6121 = vmatprep.mubr.bf16.mxu0 %v654_v33  ;;  %v8481_v21 = vld [vmem:[%s9087_s27 + $0x1444] ss:$8 sps:$4 sm:$0xff]   ;;  %v8536_v28 = vld [vmem:[%s9087_s27 + $0x15b0] ss:$8 sps:$4 sm:$0xff]   ;;  %v8542_v36 = vld [vmem:[%s9087_s27 + $0x15a0] ss:$8 sps:$4 sm:$0xff]  }
 0x315   : > { %6162 = vmatprep.mubr.bf16.mxu1 %v656_v34  ;;  %v5799_v15 = vpop.f32.mrf.mxu0  ;;  %v8541_v31 = vld [vmem:[%s9087_s27 + $0x14a4] ss:$8 sps:$4 sm:$0xff]   ;;  %v348_v34 = vld [vmem:[%s9080_s29 + $0x58] sm:$0xff] }
 0x316   : > { %v5840_v47 = vpop.f32.mrf.mxu1  ;;  %v9942_v48 = vadd.f32 %v5838_v61, %v5798_v44  ;;  %6092 = vmatpush1.bf16.msra.mxu0 %v8467_v29  ;;  %v8544_v33 = vld [vmem:[%s9087_s27 + $0x15a4] ss:$8 sps:$4 sm:$0xff]   ;;  %v8547_v58 = vld [vmem:[%s9087_s27 + $0x1494] ss:$8 sps:$4 sm:$0xff]   ;;  %v8545_v60 = vld [vmem:[%s9087_s27 + $0x1490] ss:$8 sps:$4 sm:$0xff]   ;;  %v9998_v44 = vrot.slane %v348_v34, %v9147_v57 }
 0x317   : > { %6133 = vmatpush1.bf16.msra.mxu1 %v8470_v9  ;;  %v5800_v5 = vpop.f32.mrf.mxu0  ;;  %6093 = vmatprep.subr.bf16.mxu0 %v8475_v37  ;;  %v8550_v29 = vld [vmem:[%s9087_s27 + $0x1594] ss:$8 sps:$4 sm:$0xff]   ;;  %v548_v9 = vcombine.high %v348_v34, %v348_v34  ;;  %v8548_v61 = vld [vmem:[%s9087_s27 + $0x1590] ss:$8 sps:$4 sm:$0xff]   ;;  %v8553_v37 = vld [vmem:[%s9087_s27 + $0x1484] ss:$8 sps:$4 sm:$0xff]  }
 0x318   : > { %v5841_v6 = vpop.f32.mrf.mxu1  ;;  %6134 = vmatprep.subr.bf16.mxu1 %v8478_v38  ;;  %v8556_v38 = vld [vmem:[%s9087_s27 + $0x1584] ss:$8 sps:$4 sm:$0xff]   ;;  %v8551_v47 = vld [vmem:[%s9087_s27 + $0x1480] ss:$8 sps:$4 sm:$0xff]   ;;  %v8563_v5 = vld [vmem:[%s9087_s27 + $0x1774] ss:$8 sps:$4 sm:$0xff]  }
 0x319   : > { %v10001_v15 = vrot.slane %v548_v9, %v9147_v57  ;;  %v563_v6 = vcombine.high %v9998_v44, %v9998_v44  ;;  %v8603_v34 = vld [vmem:[%s9087_s27 + $0x1700] ss:$8 sps:$4 sm:$0xff]   ;;  %v8614_v9 = vld [vmem:[%s9087_s27 + $0x16e4] ss:$8 sps:$4 sm:$0xff]  }
 0x31a   : > { %6094 = vmatpush1.bf16.msra.mxu0 %v8473_v50  ;;  %v8554_v50 = vld [vmem:[%s9087_s27 + $0x1580] ss:$8 sps:$4 sm:$0xff]  }
 0x31b   : > { %6135 = vmatpush1.bf16.msra.mxu1 %v8476_v51  ;;  %6095 = vmatprep.subr.bf16.mxu0 %v8481_v21  ;;  %v8560_v51 = vld [vmem:[%s9087_s27 + $0x1674] ss:$8 sps:$4 sm:$0xff]   ;;  %v564_v21 = vcombine.high %v10001_v15, %v10001_v15 }
 0x31c   : > { %6136 = vmatprep.subr.bf16.mxu1 %v8484_v17  ;;  %v653_v17 = vpack.c.bf16 %v9913_v19, %v9913_v19 }
 0x31e   : > { %6096 = vmatpush1.bf16.msra.mxu0 %v8479_v52  ;;  %v655_v52 = vpack.c.bf16 %v9916_v56, %v9916_v56  ;;  %v8564_v56 = vld [vmem:[%s9087_s27 + $0x1660] ss:$8 sps:$4 sm:$0xff]  }
 0x31f   : > { %6137 = vmatpush1.bf16.msra.mxu1 %v8482_v53  ;;  %6097 = vmatprep.subr.bf16.mxu0 %v8487_v54  ;;  %v8558_v53 = vld [vmem:[%s9087_s27 + $0x1670] ss:$8 sps:$4 sm:$0xff]  }
 0x320   : > { %6138 = vmatprep.subr.bf16.mxu1 %v8490_v55  ;;  %v8561_v54 = vld [vmem:[%s9087_s27 + $0x1770] ss:$8 sps:$4 sm:$0xff]   ;;  %v8566_v55 = vld [vmem:[%s9087_s27 + $0x1664] ss:$8 sps:$4 sm:$0xff]  }
 0x322   : > { %6098 = vmatpush1.bf16.msra.mxu0 %v8485_v59  ;;  %v8569_v59 = vld [vmem:[%s9087_s27 + $0x1764] ss:$8 sps:$4 sm:$0xff]  }
 0x323   : > { %6139 = vmatpush1.bf16.msra.mxu1 %v8488_v42  ;;  %6099 = vmatprep.subr.bf16.mxu0 %v8493_v63  ;;  %v658_v42 = vpack.c.bf16 %v563_v6, %v563_v6  ;;  %v660_v63 = vpack.c.bf16 %v564_v21, %v564_v21  ;;  %v8629_v6 = vld [vmem:[%s9087_s27 + $0x17c4] ss:$8 sps:$4 sm:$0xff]   ;;  %v8624_v21 = vld [vmem:[%s9087_s27 + $0x16c0] ss:$8 sps:$4 sm:$0xff]  }
 0x324   : > { %6140 = vmatprep.subr.bf16.mxu1 %v8496_v46 }
 0x326   : > { %6100 = vmatpush1.bf16.msra.mxu0 %v8491_v0 }
 0x327   : > { %6141 = vmatpush1.bf16.msra.mxu1 %v8494_v32  ;;  %6101 = vmatprep.subr.bf16.mxu0 %v8499_v16  ;;  %v8567_v32 = vld [vmem:[%s9087_s27 + $0x1760] ss:$8 sps:$4 sm:$0xff]  }
 0x328   : > { %6142 = vmatprep.subr.bf16.mxu1 %v8502_v18 }
 0x32a   : > { %6102 = vmatpush1.bf16.msra.mxu0 %v8497_v1  ;;  %v8572_v1 = vld [vmem:[%s9087_s27 + $0x1654] ss:$8 sps:$4 sm:$0xff]  }
 0x32b   : > { %6143 = vmatpush1.bf16.msra.mxu1 %v8500_v2  ;;  %6103 = vmatprep.subr.bf16.mxu0 %v8505_v3  ;;  %v8575_v2 = vld [vmem:[%s9087_s27 + $0x1754] ss:$8 sps:$4 sm:$0xff]  }
 0x32c   : > { %6144 = vmatprep.subr.bf16.mxu1 %v8508_v7 }
 0x32e   : > { %6104 = vmatpush1.bf16.msra.mxu0 %v8503_v40 }
 0x32f   : > { %6145 = vmatpush1.bf16.msra.mxu1 %v8506_v8  ;;  %6105 = vmatprep.subr.bf16.mxu0 %v8511_v10  ;;  %v8570_v10 = vld [vmem:[%s9087_s27 + $0x1650] ss:$8 sps:$4 sm:$0xff]  }
 0x330   : > { %6146 = vmatprep.subr.bf16.mxu1 %v8514_v45  ;;  %v8573_v45 = vld [vmem:[%s9087_s27 + $0x1750] ss:$8 sps:$4 sm:$0xff]  }
 0x332   : > { %6106 = vmatpush2.bf16.msra.mxu0 %v8509_v30 }
 0x333   : > { %6147 = vmatpush2.bf16.msra.mxu1 %v8512_v4  ;;  %6107 = vmatprep.subr.bf16.mxu0 %v8517_v49  ;;  %v8581_v49 = vld [vmem:[%s9087_s27 + $0x1744] ss:$8 sps:$4 sm:$0xff]  }
 0x334   : > { %6148 = vmatprep.subr.bf16.mxu1 %v8520_v11  ;;  %v8576_v11 = vld [vmem:[%s9087_s27 + $0x1640] ss:$8 sps:$4 sm:$0xff]  }
 0x336   : > { %6108 = vmatpush2.bf16.msra.mxu0 %v8515_v12  ;;  %v8579_v12 = vld [vmem:[%s9087_s27 + $0x1740] ss:$8 sps:$4 sm:$0xff]  }
 0x337   : > { %6149 = vmatpush2.bf16.msra.mxu1 %v8518_v13  ;;  %6109 = vmatprep.subr.bf16.mxu0 %v8523_v14  ;;  %v8584_v13 = vld [vmem:[%s9087_s27 + $0x1634] ss:$8 sps:$4 sm:$0xff]  }
 0x338   : > { %6150 = vmatprep.subr.bf16.mxu1 %v8526_v20  ;;  %v8587_v14 = vld [vmem:[%s9087_s27 + $0x1734] ss:$8 sps:$4 sm:$0xff]   ;;  %v8582_v20 = vld [vmem:[%s9087_s27 + $0x1630] ss:$8 sps:$4 sm:$0xff]  }
 0x33a   : > { %6110 = vmatpush2.bf16.msra.mxu0 %v8521_v22  ;;  %v8585_v22 = vld [vmem:[%s9087_s27 + $0x1730] ss:$8 sps:$4 sm:$0xff]  }
 0x33b   : > { %6151 = vmatpush2.bf16.msra.mxu1 %v8524_v23  ;;  %6111 = vmatprep.subr.bf16.mxu0 %v8529_v41  ;;  %v8590_v23 = vld [vmem:[%s9087_s27 + $0x1624] ss:$8 sps:$4 sm:$0xff]  }
 0x33c   : > { %6152 = vmatprep.subr.bf16.mxu1 %v8532_v43  ;;  %v8593_v41 = vld [vmem:[%s9087_s27 + $0x1724] ss:$8 sps:$4 sm:$0xff]   ;;  %v8588_v43 = vld [vmem:[%s9087_s27 + $0x1620] ss:$8 sps:$4 sm:$0xff]  }
 0x33e   : > { %6112 = vmatpush2.bf16.msra.mxu0 %v8527_v62  ;;  %v8591_v62 = vld [vmem:[%s9087_s27 + $0x1720] ss:$8 sps:$4 sm:$0xff]  }
 0x33f   : > { %6153 = vmatpush2.bf16.msra.mxu1 %v8530_v24  ;;  %6113 = vmatprep.subr.bf16.mxu0 %v8535_v25  ;;  %v8596_v24 = vld [vmem:[%s9087_s27 + $0x1614] ss:$8 sps:$4 sm:$0xff]  }
 0x340   : > { %6154 = vmatprep.subr.bf16.mxu1 %v8538_v26  ;;  %v8599_v25 = vld [vmem:[%s9087_s27 + $0x1714] ss:$8 sps:$4 sm:$0xff]   ;;  %v8594_v26 = vld [vmem:[%s9087_s27 + $0x1610] ss:$8 sps:$4 sm:$0xff]  }
 0x342   : > { %6114 = vmatpush2.bf16.msra.mxu0 %v8533_v27  ;;  %v8597_v27 = vld [vmem:[%s9087_s27 + $0x1710] ss:$8 sps:$4 sm:$0xff]  }
 0x343   : > { %6155 = vmatpush2.bf16.msra.mxu1 %v8536_v28  ;;  %6115 = vmatprep.subr.bf16.mxu0 %v8541_v31  ;;  %v8602_v28 = vld [vmem:[%s9087_s27 + $0x1604] ss:$8 sps:$4 sm:$0xff]  }
 0x344   : > { %6156 = vmatprep.subr.bf16.mxu1 %v8544_v33  ;;  %v8605_v31 = vld [vmem:[%s9087_s27 + $0x1704] ss:$8 sps:$4 sm:$0xff]   ;;  %v8600_v33 = vld [vmem:[%s9087_s27 + $0x1600] ss:$8 sps:$4 sm:$0xff]  }
 0x346   : > { %6116 = vmatpush2.bf16.msra.mxu0 %v8539_v35  ;;  %v8608_v35 = vld [vmem:[%s9087_s27 + $0x16f4] ss:$8 sps:$4 sm:$0xff]  }
 0x347   : > { %6157 = vmatpush2.bf16.msra.mxu1 %v8542_v36  ;;  %6117 = vmatprep.subr.bf16.mxu0 %v8547_v58  ;;  %v8611_v36 = vld [vmem:[%s9087_s27 + $0x17f4] ss:$8 sps:$4 sm:$0xff]   ;;  %v8606_v58 = vld [vmem:[%s9087_s27 + $0x16f0] ss:$8 sps:$4 sm:$0xff]  }
 0x348   : > { %6158 = vmatprep.subr.bf16.mxu1 %v8550_v29  ;;  %v8609_v29 = vld [vmem:[%s9087_s27 + $0x17f0] ss:$8 sps:$4 sm:$0xff]  }
 0x34a   : > { %6118 = vmatpush2.bf16.msra.mxu0 %v8545_v60  ;;  %v8617_v60 = vld [vmem:[%s9087_s27 + $0x17e4] ss:$8 sps:$4 sm:$0xff]  }
 0x34b   : > { %6159 = vmatpush2.bf16.msra.mxu1 %v8548_v61  ;;  %6119 = vmatprep.subr.bf16.mxu0 %v8553_v37  ;;  %v8612_v61 = vld [vmem:[%s9087_s27 + $0x16e0] ss:$8 sps:$4 sm:$0xff]  }
 0x34c   : > { %6160 = vmatprep.subr.bf16.mxu1 %v8556_v38  ;;  %v8615_v37 = vld [vmem:[%s9087_s27 + $0x17e0] ss:$8 sps:$4 sm:$0xff]   ;;  %v8620_v38 = vld [vmem:[%s9087_s27 + $0x16d4] ss:$8 sps:$4 sm:$0xff]  }
 0x34e   : > { %6120 = vmatpush2.bf16.msra.mxu0 %v8551_v47  ;;  %v8623_v47 = vld [vmem:[%s9087_s27 + $0x17d4] ss:$8 sps:$4 sm:$0xff]  }
 0x34f   : > { %6161 = vmatpush2.bf16.msra.mxu1 %v8554_v50  ;;  %6171 = vmatprep.subr.bf16.mxu0 %v8560_v51  ;;  %v8618_v50 = vld [vmem:[%s9087_s27 + $0x16d0] ss:$8 sps:$4 sm:$0xff]  }
 0x350   : > { %6212 = vmatprep.subr.bf16.mxu1 %v8563_v5  ;;  %v8621_v51 = vld [vmem:[%s9087_s27 + $0x17d0] ss:$8 sps:$4 sm:$0xff]   ;;  %v8626_v5 = vld [vmem:[%s9087_s27 + $0x16c4] ss:$8 sps:$4 sm:$0xff]  }
 0x351   : > { %v5877_v46 = vpop.f32.mrf.mxu0  ;;  %6122 = vmatmul.mubr.bf16.vlgmr.msra.gmra.mxu0 %v653_v17  ;;  %v8627_v17 = vld [vmem:[%s9087_s27 + $0x17c0] ss:$8 sps:$4 sm:$0xff]  }
 0x352   : > { %v5918_v0 = vpop.f32.mrf.mxu1  ;;  %6163 = vmatmul.mubr.bf16.vlgmr.msra.gmra.mxu1 %v655_v52  ;;  %v5878_v19 = vadd.f32 %v5877_v46, %v9939_v39  ;;  %6172 = vmatpush1.bf16.msra.mxu0 %v8558_v53  ;;  %v8632_v52 = vld [vmem:[%s9087_s27 + $0x16b4] ss:$8 sps:$4 sm:$0xff]   ;;  %v8639_v46 = vld [vmem:[%s9087_s27 + $0x17a0] ss:$8 sps:$4 sm:$0xff]  }
 0x353   : > { %6213 = vmatpush1.bf16.msra.mxu1 %v8561_v54  ;;  %v5879_v16 = vpop.f32.mrf.mxu0  ;;  %6173 = vmatprep.subr.bf16.mxu0 %v8566_v55  ;;  %v8635_v53 = vld [vmem:[%s9087_s27 + $0x17b4] ss:$8 sps:$4 sm:$0xff]   ;;  %v8630_v54 = vld [vmem:[%s9087_s27 + $0x16b0] ss:$8 sps:$4 sm:$0xff]  }
 0x354   : > { %v5920_v18 = vpop.f32.mrf.mxu1  ;;  %6214 = vmatprep.subr.bf16.mxu1 %v8569_v59  ;;  %v10024_v3 = vadd.f32 %v5918_v0, %v5878_v19  ;;  %v5880_v7 = vadd.f32 %v5879_v16, %v9942_v48  ;;  %6203 = vmatprep.mubr.bf16.mxu0 %v658_v42  ;;  %v8578_v48 = vld [vmem:[%s9087_s27 + $0x1644] ss:$8 sps:$4 sm:$0xff]   ;;  %v8633_v55 = vld [vmem:[%s9087_s27 + $0x17b0] ss:$8 sps:$4 sm:$0xff]   ;;  %v8644_v0 = vld [vmem:[%s9087_s27 + $0x1694] ss:$8 sps:$4 sm:$0xff]  }
 0x355   : > { %6244 = vmatprep.mubr.bf16.mxu1 %v660_v63  ;;  %v5881_v39 = vpop.f32.mrf.mxu0  ;;  %v8638_v59 = vld [vmem:[%s9087_s27 + $0x16a4] ss:$8 sps:$4 sm:$0xff]   ;;  %v8636_v63 = vld [vmem:[%s9087_s27 + $0x16a0] ss:$8 sps:$4 sm:$0xff]   ;;  %v8647_v19 = vld [vmem:[%s9087_s27 + $0x1794] ss:$8 sps:$4 sm:$0xff]  }
 0x356   : > { %v5922_v40 = vpop.f32.mrf.mxu1  ;;  %v10027_v8 = vadd.f32 %v5920_v18, %v5880_v7  ;;  %6174 = vmatpush1.bf16.msra.mxu0 %v8564_v56  ;;  %v8641_v42 = vld [vmem:[%s9087_s27 + $0x17a4] ss:$8 sps:$4 sm:$0xff]   ;;  %v8642_v56 = vld [vmem:[%s9087_s27 + $0x1690] ss:$8 sps:$4 sm:$0xff]   ;;  %v657_v7 = vpack.c.bf16 %v9998_v44, %v9998_v44  ;;  %v659_v39 = vpack.c.bf16 %v10001_v15, %v10001_v15 }
 0x357   : > { %6215 = vmatpush1.bf16.msra.mxu1 %v8567_v32  ;;  %v5882_v30 = vpop.f32.mrf.mxu0  ;;  %6175 = vmatprep.subr.bf16.mxu0 %v8572_v1  ;;  %v8645_v32 = vld [vmem:[%s9087_s27 + $0x1790] ss:$8 sps:$4 sm:$0xff]   ;;  %v8650_v16 = vld [vmem:[%s9087_s27 + $0x1684] ss:$8 sps:$4 sm:$0xff]   ;;  %v8648_v1 = vld [vmem:[%s9087_s27 + $0x1680] ss:$8 sps:$4 sm:$0xff]  }
 0x358   : > { %v5923_v4 = vpop.f32.mrf.mxu1  ;;  %6216 = vmatprep.subr.bf16.mxu1 %v8575_v2  ;;  %v8653_v18 = vld [vmem:[%s9087_s27 + $0x1784] ss:$8 sps:$4 sm:$0xff]   ;;  %v8651_v2 = vld [vmem:[%s9087_s27 + $0x1780] ss:$8 sps:$4 sm:$0xff]  }
 0x35a   : > { %6176 = vmatpush1.bf16.msra.mxu0 %v8570_v10 }
 0x35b   : > { %6217 = vmatpush1.bf16.msra.mxu1 %v8573_v45  ;;  %6177 = vmatprep.subr.bf16.mxu0 %v8578_v48 }
 0x35c   : > { %6218 = vmatprep.subr.bf16.mxu1 %v8581_v49 }
 0x35e   : > { %6178 = vmatpush1.bf16.msra.mxu0 %v8576_v11 }
 0x35f   : > { %6219 = vmatpush1.bf16.msra.mxu1 %v8579_v12  ;;  %6179 = vmatprep.subr.bf16.mxu0 %v8584_v13 }
 0x360   : > { %6220 = vmatprep.subr.bf16.mxu1 %v8587_v14 }
 0x362   : > { %6180 = vmatpush1.bf16.msra.mxu0 %v8582_v20 }
 0x363   : > { %6221 = vmatpush1.bf16.msra.mxu1 %v8585_v22  ;;  %6181 = vmatprep.subr.bf16.mxu0 %v8590_v23 }
 0x364   : > { %6222 = vmatprep.subr.bf16.mxu1 %v8593_v41 }
 0x366   : > { %6182 = vmatpush1.bf16.msra.mxu0 %v8588_v43 }
 0x367   : > { %6223 = vmatpush1.bf16.msra.mxu1 %v8591_v62  ;;  %6183 = vmatprep.subr.bf16.mxu0 %v8596_v24 }
 0x368   : > { %6224 = vmatprep.subr.bf16.mxu1 %v8599_v25 }
 0x36a   : > { %6184 = vmatpush1.bf16.msra.mxu0 %v8594_v26 }
 0x36b   : > { %6225 = vmatpush1.bf16.msra.mxu1 %v8597_v27  ;;  %6185 = vmatprep.subr.bf16.mxu0 %v8602_v28 }
 0x36c   : > { %6226 = vmatprep.subr.bf16.mxu1 %v8605_v31 }
 0x36e   : > { %6186 = vmatpush1.bf16.msra.mxu0 %v8600_v33 }
 0x36f   : > { %6227 = vmatpush1.bf16.msra.mxu1 %v8603_v34  ;;  %6187 = vmatprep.subr.bf16.mxu0 %v8608_v35 }
 0x370   : > { %6228 = vmatprep.subr.bf16.mxu1 %v8611_v36 }
 0x372   : > { %6188 = vmatpush2.bf16.msra.mxu0 %v8606_v58 }
 0x373   : > { %6229 = vmatpush2.bf16.msra.mxu1 %v8609_v29  ;;  %6189 = vmatprep.subr.bf16.mxu0 %v8614_v9 }
 0x374   : > { %6230 = vmatprep.subr.bf16.mxu1 %v8617_v60 }
 0x376   : > { %6190 = vmatpush2.bf16.msra.mxu0 %v8612_v61 }
 0x377   : > { %6231 = vmatpush2.bf16.msra.mxu1 %v8615_v37  ;;  %6191 = vmatprep.subr.bf16.mxu0 %v8620_v38 }
 0x378   : > { %6232 = vmatprep.subr.bf16.mxu1 %v8623_v47 }
 0x37a   : > { %6192 = vmatpush2.bf16.msra.mxu0 %v8618_v50 }
 0x37b   : > { %6233 = vmatpush2.bf16.msra.mxu1 %v8621_v51  ;;  %6193 = vmatprep.subr.bf16.mxu0 %v8626_v5 }
 0x37c   : > { %6234 = vmatprep.subr.bf16.mxu1 %v8629_v6 }
 0x37e   : > { %6194 = vmatpush2.bf16.msra.mxu0 %v8624_v21 }
 0x37f   : > { %6235 = vmatpush2.bf16.msra.mxu1 %v8627_v17  ;;  %6195 = vmatprep.subr.bf16.mxu0 %v8632_v52 }
 0x380   : > { %6236 = vmatprep.subr.bf16.mxu1 %v8635_v53 }
 0x382   : > { %6196 = vmatpush2.bf16.msra.mxu0 %v8630_v54 }
 0x383   : > { %6237 = vmatpush2.bf16.msra.mxu1 %v8633_v55  ;;  %6197 = vmatprep.subr.bf16.mxu0 %v8638_v59  ;;  %v336_v59 = vld [vmem:[#allocation2] sm:$0xf] }
 0x384   : > { %6238 = vmatprep.subr.bf16.mxu1 %v8641_v42 }
 0x386   : > { %6198 = vmatpush2.bf16.msra.mxu0 %v8636_v63 }
 0x387   : > { %6239 = vmatpush2.bf16.msra.mxu1 %v8639_v46  ;;  %6199 = vmatprep.subr.bf16.mxu0 %v8644_v0 }
 0x388   : > { %6240 = vmatprep.subr.bf16.mxu1 %v8647_v19 }
 0x38a   : > { %6200 = vmatpush2.bf16.msra.mxu0 %v8642_v56 }
 0x38b   : > { %6241 = vmatpush2.bf16.msra.mxu1 %v8645_v32  ;;  %6201 = vmatprep.subr.bf16.mxu0 %v8650_v16 }
 0x38c   : > { %6242 = vmatprep.subr.bf16.mxu1 %v8653_v18 }
 0x38e   : > { %6202 = vmatpush2.bf16.msra.mxu0 %v8648_v1 }
 0x38f   : > { %6243 = vmatpush2.bf16.msra.mxu1 %v8651_v2 }
 0x391   : > { %v5959_v40 = vpop.f32.mrf.mxu0  ;;  %6204 = vmatmul.mubr.bf16.vlgmr.msra.gmra.mxu0 %v657_v7 }
 0x392   : > { %v6000_v10 = vpop.f32.mrf.mxu1  ;;  %6245 = vmatmul.mubr.bf16.vlgmr.msra.gmra.mxu1 %v659_v39  ;;  %v5960_v45 = vadd.f32 %v5959_v40, %v10024_v3 }
 0x393   : > { %v5961_v30 = vpop.f32.mrf.mxu0 }
 0x394   : > { %v6002_v4 = vpop.f32.mrf.mxu1  ;;  %v6001_v48 = vadd.f32 %v6000_v10, %v5960_v45  ;;  %v5962_v49 = vadd.f32 %v5961_v30, %v10027_v8 }
 0x395   : > { %v5963_v11 = vpop.f32.mrf.mxu0 }
 0x396   : > { %v6004_v12 = vpop.f32.mrf.mxu1  ;;  %v6003_v13 = vadd.f32 %v6002_v4, %v5962_v49 }
 0x397   : > { %v5964_v44 = vpop.f32.mrf.mxu0 }
 0x398   : > { %v6005_v14 = vpop.f32.mrf.mxu1 }
 0x3d1   : > { %v6041_v20 = vpop.f32.mrf.mxu0 }
 0x3d2   : > { %v6082_v15 = vpop.f32.mrf.mxu1  ;;  %v6042_v22 = vadd.f32 %v6041_v20, %v6001_v48 }
 0x3d3   : > { %v6043_v23 = vpop.f32.mrf.mxu0 }
 0x3d4   : > { %v6084_v41 = vpop.f32.mrf.mxu1  ;;  %v6083_v43 = vadd.f32 %v6082_v15, %v6042_v22  ;;  %v6044_v62 = vadd.f32 %v6043_v23, %v6003_v13 }
 0x3d5   : > { %v6045_v24 = vpop.f32.mrf.mxu0 }
 0x3d6   : > { %v6086_v25 = vpop.f32.mrf.mxu1  ;;  %v6085_v3 = vadd.f32 %v6084_v41, %v6044_v62 }
 0x3d7   : > { %v6046_v26 = vpop.f32.mrf.mxu0 }
 0x3d8   : > { %v6087_v27 = vpop.f32.mrf.mxu1 }
 0x411   : > { %v6123_v28 = vpop.f32.mrf.mxu0 }
 0x412   : > { %v6164_v31 = vpop.f32.mrf.mxu1  ;;  %v6124_v8 = vadd.f32 %v6123_v28, %v6083_v43 }
 0x413   : > { %v6125_v33 = vpop.f32.mrf.mxu0 }
 0x414   : > { %v6166_v34 = vpop.f32.mrf.mxu1  ;;  %v6165_v35 = vadd.f32 %v6164_v31, %v6124_v8  ;;  %v6126_v60 = vadd.f32 %v6125_v33, %v6085_v3 }
 0x415   : > { %v6127_v36 = vpop.f32.mrf.mxu0 }
 0x416   : > { %v6168_v58 = vpop.f32.mrf.mxu1  ;;  %v6167_v38 = vadd.f32 %v6166_v34, %v6126_v60 }
 0x417   : > { %v6128_v29 = vpop.f32.mrf.mxu0 }
 0x418   : > { %v6169_v9 = vpop.f32.mrf.mxu1 }
 0x451   : > { %v6205_v61 = vpop.f32.mrf.mxu0 }
 0x452   : > { %v6246_v37 = vpop.f32.mrf.mxu1  ;;  %v6206_v47 = vadd.f32 %v6205_v61, %v6165_v35 }
 0x453   : > { %v6207_v50 = vpop.f32.mrf.mxu0 }
 0x454   : > { %v6248_v51 = vpop.f32.mrf.mxu1  ;;  %v6208_v5 = vadd.f32 %v6207_v50, %v6167_v38  ;;  %v6247_v17 = vadd.f32 %v6246_v37, %v6206_v47 }
 0x455   : > { %v6209_v6 = vpop.f32.mrf.mxu0 }
 0x456   : > { %v6250_v21 = vpop.f32.mrf.mxu1  ;;  %v6249_v52 = vadd.f32 %v6248_v51, %v6208_v5 }
 0x457   : > { %v6210_v53 = vpop.f32.mrf.mxu0 }
 0x458   : > { %v6251_v54 = vpop.f32.mrf.mxu1  ;;  %v6255_v55 = vcombine.low %v6247_v17, %v6249_v52 }
 0x45a   : > { %v6262_v42 = vrot.slane %v6255_v55, %v9147_v57  ;;  %6269 = sbr.rel (%p7352_p3) target bundleno = 1352 (0x548), region = 68 }
 0x45c   : > { %v6264_v63 = vadd.f32 %v6262_v42, %v336_v59 }
 0x45e   : > { %6265 = vst [vmem:[#allocation2] sm:$0xf] %v6264_v63 }
 0x45f   : > { %v8655_v46 = vld [vmem:[#allocation9 + $0x78] sm:$0xff]   ;;  %v8657_v19 = vld [vmem:[#allocation9 + $0x70] sm:$0xff]   ;;  %v8659_v32 = vld [vmem:[#allocation9 + $0x68] sm:$0xff]  }
 0x460   : > { %v8656_v0 = vld [vmem:[#allocation9 + $0x38] sm:$0xff]   ;;  %7378 = vmatprep.subr.bf16.mxu0 %v8655_v46  ;;  %v8658_v56 = vld [vmem:[#allocation9 + $0x30] sm:$0xff]   ;;  %v8660_v16 = vld [vmem:[#allocation9 + $0x28] sm:$0xff]  }
 0x461   : > { %7379 = vmatpush3.bf16.msra.mxu0 %v8656_v0  ;;  %v8661_v18 = vld [vmem:[#allocation9 + $0x60] sm:$0xff]   ;;  %v8663_v2 = vld [vmem:[#allocation9 + $0x58] sm:$0xff]   ;;  %v8665_v39 = vld [vmem:[#allocation9 + $0x50] sm:$0xff]  }
 0x462   : > { %7380 = vmatprep.subr.bf16.mxu0 %v8657_v19  ;;  %v8662_v1 = vld [vmem:[#allocation9 + $0x20] sm:$0xff]   ;;  %v8664_v7 = vld [vmem:[#allocation9 + $0x18] sm:$0xff]   ;;  %v8666_v45 = vld [vmem:[#allocation9 + $0x10] sm:$0xff]  }
 0x463   : > { %v8667_v4 = vld [vmem:[#allocation9 + $0x48] sm:$0xff]   ;;  %v8669_v12 = vld [vmem:[#allocation9 + $0x40] sm:$0xff]  }
 0x464   : > { %v8668_v49 = vld [vmem:[#allocation9 + $0x8] sm:$0xff]   ;;  %v8670_v13 = vld [vmem:[#allocation9] sm:$0xff]  }
 0x465   : > { %7381 = vmatpush3.bf16.msra.mxu0 %v8658_v56  ;;  %v6270_v40 = vld [vmem:[#allocation2] sm:$0xf]  ;;  %v7353_v20 = vld [vmem:[#allocation11] ss:$0 sm:$0xff] }
 0x466   : > { %7382 = vmatprep.subr.bf16.mxu0 %v8659_v32  ;;  %v6271_v10 = vmax.f32 %v6270_v40, 0.0 }
 0x468   : > { %v6279_v30 = vrot.slane %v6271_v10, %v9147_v57 }
 0x469   : > { %7383 = vmatpush3.bf16.msra.mxu0 %v8660_v16 }
 0x46a   : > { %7384 = vmatprep.subr.bf16.mxu0 %v8661_v18  ;;  %v6280_v48 = vcombine.high %v6279_v30, %v6279_v30  ;;  %v6283_v44 = vpack.c.bf16 %v6279_v30, %v6279_v30 }
 0x46c   : > { %v6284_v11 = vpack.c.bf16 %v6280_v48, %v6280_v48 }
 0x46d   : > { %7385 = vmatpush3.bf16.msra.mxu0 %v8662_v1 }
 0x46e   : > { %7386 = vmatprep.subr.bf16.mxu0 %v8663_v2  ;;  %6452 = vmatprep.mubr.bf16.mxu0 %v6284_v11 }
 0x471   : > { %7387 = vmatpush3.bf16.msra.mxu0 %v8664_v7 }
 0x472   : > { %7388 = vmatprep.subr.bf16.mxu0 %v8665_v39 }
 0x475   : > { %7389 = vmatpush3.bf16.msra.mxu0 %v8666_v45 }
 0x476   : > { %7390 = vmatprep.subr.bf16.mxu0 %v8667_v4 }
 0x479   : > { %7391 = vmatpush3.bf16.msra.mxu0 %v8668_v49 }
 0x47a   : > { %7392 = vmatprep.subr.bf16.mxu0 %v8669_v12 }
 0x47d   : > { %7393 = vmatpush3.bf16.msra.mxu0 %v8670_v13 }
 0x480   : > { %6453 = vmatmul.mubr.bf16.vlgmr.msra.gmra.mxu0 %v6283_v44 }
 0x540   : > { %v7394_v14 = vpop.f32.mrf.mxu0 }
 0x542   : > { %v7395_v15 = vpop.f32.mrf.mxu0 }
 0x543   : > { %v7396_v22 = vadd.f32 %v7395_v15, %v7394_v14 }
 0x544   : > { %v7397_v57 = vpop.f32.mrf.mxu0 }
 0x545   : > { %v6455_v23 = vadd.f32 %v7396_v22, %v7353_v20 }
 0x546   : > { %v7398_v41 = vpop.f32.mrf.mxu0 }
 0x547   : > { %6460 = vst [vmem:[#allocation12] sm:$0x3] %v6455_v23 }
 0x548 PF: > { %p7448_p7 = scmp.eq.s32.totalorder %s8941_s22, 1  ;;  %s8891_s23 = smov [#allocation12]  }
 0x549   : > { %s6468_s24 = sshll.u32 %s8891_s23, 4  ;;  %s6469_s24 = int_to_ptr.vmem [resolvable:$true] %s6468_s24 }
 0x54a   : > { %s8805_s30 = scalar_lea.vmem %s6469_s24, 32  ;;  %p8812_p13 = scmp.lt.s32.totalorder %s6469_s24, %s6469_s24 }
 0x54b   : > { %p8806_p10 = scmp.ne.s32.totalorder %s6469_s24, %s8805_s30  ;;  %p8813_p0 = scmp.lt.s32.totalorder %s8805_s30, %s8805_s30 }
 0x54d   : > { %p8807_p11 = pnand %p8806_p10, %p7448_p7  ;;  %p8814_p12 = por %p8813_p0, %p8812_p13 }
 0x54f   : > { %p8808_p4 = pneg %p8807_p11 }
 0x551   : > { %p8815_p1 = pnand %p8814_p12, %p8808_p4 }
 0x553   : > { %8818 = shalt.err (!%p8815_p1)
}
 0x554   : > { %7421 = dma.vmem_to_hbm [thread:$0]  (%p7448_p7), %s6469_s24, 32, %s10122_s5, [#allocation5]  }
 0x555   : > { %8862 = dma.done.wait (%p7448_p7), [#allocation5], 32  }
 0x556   : > { %8864 = vsyncadd (%p7448_p7), [#allocation5], 4294967264 }
 0x557 PF: > { %p20_p8 = scmp.ge.s32.totalorder %s8993_s25, 4   ;;  %s10137_s18 = smov %s8871_s19 }
 0x558   : > { %s10138_s19 = smov %s8875_s20  ;;  %s10139_s20 = smov %s9003_s28 }
 0x559   : > { %s10140_s21 = smov %s8993_s25  ;;  %22 = sbr.rel (!%p20_p8) target bundleno = 7 (0x7), region = 110 }
 0x55e   :  { %6481 = vsyncpa [#allocation4], 1 }
 0x55f   :  { %6483 = vsyncpa [#allocation4 + $0x1], 1 }
 0x560   :  { %6484 = vsyncpa [#allocation7], 1 }
 0x561   :  { %6486 = vsyncpa [#allocation7 + $0x1], 1 }
 0x562   :  { %6487 = vsyncpa [#allocation10], 1 }
 0x563   :  { %6488 = vsyncpa [#allocation5], 1 }
 0x564   :  { %6490 = vsyncpa [#allocation5 + $0x1], 1 }

</bundles_post_ra>
